<compile_context>
chip_gen: v7x
topology: tpu7x:2x2x1
jax: 0.10.0
libtpu: 0.0.40
codegen_flags: <defaults>
</compile_context>

<pallas_src>
import jax
import jax.numpy as jnp
from jax.experimental import pallas as pl
from jax.experimental.pallas import tpu as pltpu

BN_EPS = 1e-5


def _round_up(x, m):
    return (x + m - 1) // m * m


def down_pallas(x_nchw, params):
    """x_nchw: (N, Cin, Hp, Wp) float32. params in PyTorch layouts."""
    w1, b1, g1, be1, w2, b2, g2, be2 = params
    del b1, b2  # conv bias is exactly removed by the mean subtraction of training-mode BN
    N, Cin, Hp, Wp = x_nchw.shape
    assert Hp % 2 == 0 and Wp % 2 == 0, "MaxPool2d(2) test path assumes even spatial dims"
    H, W = Hp // 2, Wp // 2                      # spatial size after the max-pool
    Cmid, Cout = w1.shape[0], w2.shape[0]
    CP = _round_up(max(Cmid, Cout, 8), 128)      # lane-padded channel width
    M = N * H * W

    # ---- wrapper-side layout glue (pure reshape/transpose/pad, no compute) ----
    # NCHW -> NHWC, then split each W pool-pair into its own (size-2) dim.
    x_nhwc = jnp.transpose(x_nchw, (0, 2, 3, 1)).astype(jnp.float32)
    x4 = x_nhwc.reshape(N * Hp, W, 2, Cin)       # row-major contiguous reshape

    # conv weights OIHW -> HWIO -> zero-padded im2col matrices (9*Cin_pad, CP)
    def im2col_weight(w, cin_pad, cout_pad):
        whwio = jnp.transpose(w, (2, 3, 1, 0)).astype(jnp.float32)   # (3, 3, Cin, Cout)
        _, _, cin, cout = whwio.shape
        whwio = jnp.pad(whwio, ((0, 0), (0, 0), (0, cin_pad - cin), (0, cout_pad - cout)))
        return whwio.reshape(9 * cin_pad, cout_pad)

    w1m = im2col_weight(w1, Cin, CP)             # (9*Cin, CP)
    w2m = im2col_weight(w2, CP, CP)              # (9*CP,  CP)

    def bn_row(v):                               # zero-pad BN params -> padded channels stay 0
        return jnp.pad(v.astype(jnp.float32), (0, CP - v.shape[0])).reshape(1, CP)

    g1r, be1r, g2r, be2r = bn_row(g1), bn_row(be1), bn_row(g2), bn_row(be2)

    # ---- kernel (closure over static shapes) ----
    def kernel(x_ref, w1_ref, g1_ref, be1_ref, w2_ref, g2_ref, be2_ref, o_ref):
        xr = x_ref[...]                                        # (N*Hp, W, 2, Cin)

        # MaxPool2d(2): max over the W pair, then over the H pair (leading-dim reshape only).
        wmax = jnp.maximum(xr[:, :, 0, :], xr[:, :, 1, :])     # (N*Hp, W, Cin)
        wmax = wmax.reshape(N, H, 2, W, Cin)
        xp = jnp.maximum(wmax[:, :, 0], wmax[:, :, 1])         # (N, H, W, Cin)

        def pad_hw(t):
            # value-level zero border (no scratch round trip)
            n, h, w, c = t.shape
            zr = jnp.zeros((n, 1, w, c), jnp.float32)
            t = jnp.concatenate([zr, t, zr], axis=1)
            zc = jnp.zeros((n, h + 2, 1, c), jnp.float32)
            return jnp.concatenate([zc, t, zc], axis=2)        # (n, h+2, w+2, c)

        def conv3x3(tpad, w_ref):
            # im2col: 9 shifted taps concatenated on the lane axis -> one MXU matmul
            n, hp2, wp2, c = tpad.shape
            h, w = hp2 - 2, wp2 - 2
            taps = [tpad[:, dy:dy + h, dx:dx + w, :]
                    for dy in range(3) for dx in range(3)]
            patches = jnp.concatenate(taps, axis=-1).reshape(n * h * w, 9 * c)
            return jnp.dot(patches, w_ref[...], preferred_element_type=jnp.float32)

        def bn_relu(acc, g_row, be_row):
            # one reduction pass (sum, sumsq), then a fused per-channel FMA + ReLU
            m = jnp.float32(acc.shape[0])
            s = jnp.sum(acc, axis=0, keepdims=True)
            sq = jnp.sum(acc * acc, axis=0, keepdims=True)
            mean = s / m
            var = sq / m - mean * mean                         # biased variance over N,H,W
            scale = g_row * jax.lax.rsqrt(var + BN_EPS)        # EUP
            shift = be_row - mean * scale
            return jnp.maximum(acc * scale + shift, 0.0)

        acc1 = conv3x3(pad_hw(xp), w1_ref)                     # (M, CP)
        y1 = bn_relu(acc1, g1_ref[...], be1_ref[...])          # (M, CP), padded chans == 0
        acc2 = conv3x3(pad_hw(y1.reshape(N, H, W, CP)), w2_ref)
        y2 = bn_relu(acc2, g2_ref[...], be2_ref[...])
        o_ref[...] = y2.astype(o_ref.dtype)                    # lane-dense (M, CP) store

    full = lambda shape: pl.BlockSpec(shape, lambda i, _s=shape: (0,) * len(_s))

    out2d = pl.pallas_call(
        kernel,
        out_shape=jax.ShapeDtypeStruct((M, CP), jnp.float32),
        grid_spec=pltpu.PrefetchScalarGridSpec(
            num_scalar_prefetch=0,
            grid=(1,),
            in_specs=[full(x4.shape),
                      full(w1m.shape), full((1, CP)), full((1, CP)),
                      full(w2m.shape), full((1, CP)), full((1, CP))],
            out_specs=full((M, CP)),
        ),
        compiler_params=pltpu.CompilerParams(dimension_semantics=("arbitrary",)),
    )(x4, w1m, g1r, be1r, w2m, g2r, be2r)

    out = out2d[:, :Cout].reshape(N, H, W, Cout)
    return jnp.transpose(out, (0, 3, 1, 2))                    # back to NCHW


def _reference(x_nchw, params):
    """Pure-JAX reference mirroring PyTorch `down` training-mode forward."""
    w1, b1, g1, be1, w2, b2, g2, be2 = params
    N, C, Hp, Wp = x_nchw.shape
    xp = x_nchw.reshape(N, C, Hp // 2, 2, Wp // 2, 2).max(axis=(3, 5))   # MaxPool2d(2)

    def conv_bn_relu(x, w, b, g, be):
        y = jax.lax.conv_general_dilated(
            x, w, (1, 1), 'SAME',
            dimension_numbers=('NCHW', 'OIHW', 'NCHW')) + b[None, :, None, None]
        m = y.mean(axis=(0, 2, 3), keepdims=True)
        v = ((y - m) ** 2).mean(axis=(0, 2, 3), keepdims=True)
        y = (y - m) * jax.lax.rsqrt(v + BN_EPS) * g[None, :, None, None] \
            + be[None, :, None, None]
        return jnp.maximum(y, 0.0)

    return conv_bn_relu(conv_bn_relu(xp, w1, b1, g1, be1), w2, b2, g2, be2)


def _init_params(key, in_ch, out_ch):
    k1, k2, k3, k4 = jax.random.split(key, 4)
    bound1 = 1.0 / (in_ch * 9) ** 0.5
    bound2 = 1.0 / (out_ch * 9) ** 0.5
    w1 = jax.random.uniform(k1, (out_ch, in_ch, 3, 3), jnp.float32, -bound1, bound1)
    b1 = jax.random.uniform(k2, (out_ch,), jnp.float32, -bound1, bound1)
    w2 = jax.random.uniform(k3, (out_ch, out_ch, 3, 3), jnp.float32, -bound2, bound2)
    b2 = jax.random.uniform(k4, (out_ch,), jnp.float32, -bound2, bound2)
    g1 = jnp.ones((out_ch,), jnp.float32)    # BN gamma
    be1 = jnp.zeros((out_ch,), jnp.float32)  # BN beta
    g2 = jnp.ones((out_ch,), jnp.float32)
    be2 = jnp.zeros((out_ch,), jnp.float32)
    # TODO(synk): BatchNorm running-stat updates (training-time side effect) are not
    # reproduced; they do not affect the forward output in training mode.
    return (w1, b1, g1, be1, w2, b2, g2, be2)


if __name__ == "__main__":
    key = jax.random.PRNGKey(0)
    kx, kp = jax.random.split(key)
    N, Cin, Cout, Hin, Win = 2, 4, 8, 16, 16

    x = jax.random.normal(kx, (N, Cin, Hin, Win), jnp.float32)
    params = _init_params(kp, Cin, Cout)

    out = jax.block_until_ready(down_pallas(x, params))
    ref = jax.block_until_ready(_reference(x, params))

    assert out.shape == (N, Cout, Hin // 2, Win // 2), out.shape
    assert jnp.allclose(out, ref, atol=1e-3, rtol=1e-3), \
        float(jnp.max(jnp.abs(out - ref)))
    print("KERNEL_OK")
</pallas_src>

<mosaic_0001>
module attributes {stable_mosaic.version = 11 : i64} {
  func.func @kernel(%arg0: i32, %arg1: memref<32x8x2x4xf32, #tpu.memory_space<vmem>>, %arg2: memref<36x128xf32, #tpu.memory_space<vmem>>, %arg3: memref<1x128xf32, #tpu.memory_space<vmem>>, %arg4: memref<1x128xf32, #tpu.memory_space<vmem>>, %arg5: memref<1152x128xf32, #tpu.memory_space<vmem>>, %arg6: memref<1x128xf32, #tpu.memory_space<vmem>>, %arg7: memref<1x128xf32, #tpu.memory_space<vmem>>, %arg8: memref<128x128xf32, #tpu.memory_space<vmem>>) attributes {dimension_semantics = [#tpu.dimension_semantics<arbitrary>], iteration_bounds = array<i64: 1>, scalar_prefetch = 0 : i64, scratch_operands = 0 : i64, tpu.core_type = #tpu.core_type<tc>, window_params = [{pipeline_mode = #tpu.pipeline_mode<synchronous>, transform_indices = @transform_0, window_bounds = array<i64: 32, 8, 2, 4>}, {pipeline_mode = #tpu.pipeline_mode<synchronous>, transform_indices = @transform_1, window_bounds = array<i64: 36, 128>}, {pipeline_mode = #tpu.pipeline_mode<synchronous>, transform_indices = @transform_2, window_bounds = array<i64: 1, 128>}, {pipeline_mode = #tpu.pipeline_mode<synchronous>, transform_indices = @transform_3, window_bounds = array<i64: 1, 128>}, {pipeline_mode = #tpu.pipeline_mode<synchronous>, transform_indices = @transform_4, window_bounds = array<i64: 1152, 128>}, {pipeline_mode = #tpu.pipeline_mode<synchronous>, transform_indices = @transform_5, window_bounds = array<i64: 1, 128>}, {pipeline_mode = #tpu.pipeline_mode<synchronous>, transform_indices = @transform_6, window_bounds = array<i64: 1, 128>}, {pipeline_mode = #tpu.pipeline_mode<synchronous>, transform_indices = @transform_7, window_bounds = array<i64: 128, 128>}]} {
    %c0 = arith.constant 0 : index
    %c0_0 = arith.constant 0 : index
    %c0_1 = arith.constant 0 : index
    %c0_2 = arith.constant 0 : index
    %0 = vector.load %arg1[%c0, %c0_0, %c0_1, %c0_2] : memref<32x8x2x4xf32, #tpu.memory_space<vmem>>, vector<32x8x2x4xf32>
    %1 = vector.extract_strided_slice %0 {offsets = [0, 0, 0, 0], sizes = [32, 8, 1, 4], strides = [1, 1, 1, 1]} : vector<32x8x2x4xf32> to vector<32x8x1x4xf32>
    %2 = vector.shape_cast %1 : vector<32x8x1x4xf32> to vector<32x8x4xf32>
    %3 = vector.extract_strided_slice %0 {offsets = [0, 0, 1, 0], sizes = [32, 8, 1, 4], strides = [1, 1, 1, 1]} : vector<32x8x2x4xf32> to vector<32x8x1x4xf32>
    %4 = vector.shape_cast %3 : vector<32x8x1x4xf32> to vector<32x8x4xf32>
    %5 = arith.maximumf %2, %4 : vector<32x8x4xf32>
    %6 = vector.shape_cast %5 : vector<32x8x4xf32> to vector<2x8x2x8x4xf32>
    %7 = vector.extract_strided_slice %6 {offsets = [0, 0, 0, 0, 0], sizes = [2, 8, 1, 8, 4], strides = [1, 1, 1, 1, 1]} : vector<2x8x2x8x4xf32> to vector<2x8x1x8x4xf32>
    %8 = vector.shape_cast %7 : vector<2x8x1x8x4xf32> to vector<2x8x8x4xf32>
    %9 = vector.extract_strided_slice %6 {offsets = [0, 0, 1, 0, 0], sizes = [2, 8, 1, 8, 4], strides = [1, 1, 1, 1, 1]} : vector<2x8x2x8x4xf32> to vector<2x8x1x8x4xf32>
    %10 = vector.shape_cast %9 : vector<2x8x1x8x4xf32> to vector<2x8x8x4xf32>
    %11 = arith.maximumf %8, %10 : vector<2x8x8x4xf32>
    %cst = arith.constant 0.000000e+00 : f32
    %12 = vector.broadcast %cst : f32 to vector<2x1x8x4xf32>
    %13 = tpu.concatenate %12, %11, %12 in 1 : vector<2x1x8x4xf32>, vector<2x8x8x4xf32>, vector<2x1x8x4xf32> -> vector<2x10x8x4xf32>
    %cst_3 = arith.constant 0.000000e+00 : f32
    %14 = vector.broadcast %cst_3 : f32 to vector<2x10x1x4xf32>
    %15 = tpu.concatenate %14, %13, %14 in 2 : vector<2x10x1x4xf32>, vector<2x10x8x4xf32>, vector<2x10x1x4xf32> -> vector<2x10x10x4xf32>
    %16 = vector.extract_strided_slice %15 {offsets = [0, 0, 0, 0], sizes = [2, 8, 8, 4], strides = [1, 1, 1, 1]} : vector<2x10x10x4xf32> to vector<2x8x8x4xf32>
    %17 = vector.extract_strided_slice %15 {offsets = [0, 0, 1, 0], sizes = [2, 8, 8, 4], strides = [1, 1, 1, 1]} : vector<2x10x10x4xf32> to vector<2x8x8x4xf32>
    %18 = vector.extract_strided_slice %15 {offsets = [0, 0, 2, 0], sizes = [2, 8, 8, 4], strides = [1, 1, 1, 1]} : vector<2x10x10x4xf32> to vector<2x8x8x4xf32>
    %19 = vector.extract_strided_slice %15 {offsets = [0, 1, 0, 0], sizes = [2, 8, 8, 4], strides = [1, 1, 1, 1]} : vector<2x10x10x4xf32> to vector<2x8x8x4xf32>
    %20 = vector.extract_strided_slice %15 {offsets = [0, 1, 1, 0], sizes = [2, 8, 8, 4], strides = [1, 1, 1, 1]} : vector<2x10x10x4xf32> to vector<2x8x8x4xf32>
    %21 = vector.extract_strided_slice %15 {offsets = [0, 1, 2, 0], sizes = [2, 8, 8, 4], strides = [1, 1, 1, 1]} : vector<2x10x10x4xf32> to vector<2x8x8x4xf32>
    %22 = vector.extract_strided_slice %15 {offsets = [0, 2, 0, 0], sizes = [2, 8, 8, 4], strides = [1, 1, 1, 1]} : vector<2x10x10x4xf32> to vector<2x8x8x4xf32>
    %23 = vector.extract_strided_slice %15 {offsets = [0, 2, 1, 0], sizes = [2, 8, 8, 4], strides = [1, 1, 1, 1]} : vector<2x10x10x4xf32> to vector<2x8x8x4xf32>
    %24 = vector.extract_strided_slice %15 {offsets = [0, 2, 2, 0], sizes = [2, 8, 8, 4], strides = [1, 1, 1, 1]} : vector<2x10x10x4xf32> to vector<2x8x8x4xf32>
    %25 = tpu.concatenate %16, %17, %18, %19, %20, %21, %22, %23, %24 in 3 : vector<2x8x8x4xf32>, vector<2x8x8x4xf32>, vector<2x8x8x4xf32>, vector<2x8x8x4xf32>, vector<2x8x8x4xf32>, vector<2x8x8x4xf32>, vector<2x8x8x4xf32>, vector<2x8x8x4xf32>, vector<2x8x8x4xf32> -> vector<2x8x8x36xf32>
    %26 = vector.shape_cast %25 : vector<2x8x8x36xf32> to vector<128x36xf32>
    %c0_4 = arith.constant 0 : index
    %c0_5 = arith.constant 0 : index
    %27 = vector.load %arg2[%c0_4, %c0_5] : memref<36x128xf32, #tpu.memory_space<vmem>>, vector<36x128xf32>
    %cst_6 = arith.constant dense<0.000000e+00> : vector<128x128xf32>
    %28 = tpu.matmul %26, %27, %cst_6 {dimension_numbers = #tpu.dot_dimension_numbers<[1], [0], [0], [1], [0, 0, 1, 1], [], []>} : vector<128x36xf32>, vector<36x128xf32>, vector<128x128xf32> -> vector<128x128xf32>
    %c0_7 = arith.constant 0 : index
    %c0_8 = arith.constant 0 : index
    %29 = vector.load %arg3[%c0_7, %c0_8] : memref<1x128xf32, #tpu.memory_space<vmem>>, vector<1x128xf32>
    %c0_9 = arith.constant 0 : index
    %c0_10 = arith.constant 0 : index
    %30 = vector.load %arg4[%c0_9, %c0_10] : memref<1x128xf32, #tpu.memory_space<vmem>>, vector<1x128xf32>
    %cst_11 = arith.constant dense<0.000000e+00> : vector<128xf32>
    %31 = vector.multi_reduction <add>, %28, %cst_11 [0] : vector<128x128xf32> to vector<128xf32>
    %32 = vector.shape_cast %31 : vector<128xf32> to vector<1x128xf32>
    %33 = arith.mulf %28, %28 : vector<128x128xf32>
    %cst_12 = arith.constant dense<0.000000e+00> : vector<128xf32>
    %34 = vector.multi_reduction <add>, %33, %cst_12 [0] : vector<128x128xf32> to vector<128xf32>
    %35 = vector.shape_cast %34 : vector<128xf32> to vector<1x128xf32>
    %cst_13 = arith.constant 1.280000e+02 : f32
    %36 = vector.broadcast %cst_13 : f32 to vector<1x128xf32>
    %37 = arith.divf %32, %36 : vector<1x128xf32>
    %cst_14 = arith.constant 1.280000e+02 : f32
    %38 = vector.broadcast %cst_14 : f32 to vector<1x128xf32>
    %39 = arith.divf %35, %38 : vector<1x128xf32>
    %40 = arith.mulf %37, %37 : vector<1x128xf32>
    %41 = arith.subf %39, %40 : vector<1x128xf32>
    %cst_15 = arith.constant 9.99999974E-6 : f32
    %42 = vector.broadcast %cst_15 : f32 to vector<1x128xf32>
    %43 = arith.addf %41, %42 : vector<1x128xf32>
    %44 = math.rsqrt %43 : vector<1x128xf32>
    %45 = arith.mulf %29, %44 : vector<1x128xf32>
    %46 = arith.mulf %37, %45 : vector<1x128xf32>
    %47 = arith.subf %30, %46 : vector<1x128xf32>
    %48 = vector.broadcast %45 : vector<1x128xf32> to vector<128x128xf32>
    %49 = arith.mulf %28, %48 : vector<128x128xf32>
    %50 = vector.broadcast %47 : vector<1x128xf32> to vector<128x128xf32>
    %51 = arith.addf %49, %50 : vector<128x128xf32>
    %cst_16 = arith.constant 0.000000e+00 : f32
    %52 = vector.broadcast %cst_16 : f32 to vector<128x128xf32>
    %53 = arith.maximumf %51, %52 : vector<128x128xf32>
    %54 = vector.shape_cast %53 : vector<128x128xf32> to vector<2x8x8x128xf32>
    %cst_17 = arith.constant 0.000000e+00 : f32
    %55 = vector.broadcast %cst_17 : f32 to vector<2x1x8x128xf32>
    %56 = tpu.concatenate %55, %54, %55 in 1 : vector<2x1x8x128xf32>, vector<2x8x8x128xf32>, vector<2x1x8x128xf32> -> vector<2x10x8x128xf32>
    %cst_18 = arith.constant 0.000000e+00 : f32
    %57 = vector.broadcast %cst_18 : f32 to vector<2x10x1x128xf32>
    %58 = tpu.concatenate %57, %56, %57 in 2 : vector<2x10x1x128xf32>, vector<2x10x8x128xf32>, vector<2x10x1x128xf32> -> vector<2x10x10x128xf32>
    %59 = vector.extract_strided_slice %58 {offsets = [0, 0, 0, 0], sizes = [2, 8, 8, 128], strides = [1, 1, 1, 1]} : vector<2x10x10x128xf32> to vector<2x8x8x128xf32>
    %60 = vector.extract_strided_slice %58 {offsets = [0, 0, 1, 0], sizes = [2, 8, 8, 128], strides = [1, 1, 1, 1]} : vector<2x10x10x128xf32> to vector<2x8x8x128xf32>
    %61 = vector.extract_strided_slice %58 {offsets = [0, 0, 2, 0], sizes = [2, 8, 8, 128], strides = [1, 1, 1, 1]} : vector<2x10x10x128xf32> to vector<2x8x8x128xf32>
    %62 = vector.extract_strided_slice %58 {offsets = [0, 1, 0, 0], sizes = [2, 8, 8, 128], strides = [1, 1, 1, 1]} : vector<2x10x10x128xf32> to vector<2x8x8x128xf32>
    %63 = vector.extract_strided_slice %58 {offsets = [0, 1, 1, 0], sizes = [2, 8, 8, 128], strides = [1, 1, 1, 1]} : vector<2x10x10x128xf32> to vector<2x8x8x128xf32>
    %64 = vector.extract_strided_slice %58 {offsets = [0, 1, 2, 0], sizes = [2, 8, 8, 128], strides = [1, 1, 1, 1]} : vector<2x10x10x128xf32> to vector<2x8x8x128xf32>
    %65 = vector.extract_strided_slice %58 {offsets = [0, 2, 0, 0], sizes = [2, 8, 8, 128], strides = [1, 1, 1, 1]} : vector<2x10x10x128xf32> to vector<2x8x8x128xf32>
    %66 = vector.extract_strided_slice %58 {offsets = [0, 2, 1, 0], sizes = [2, 8, 8, 128], strides = [1, 1, 1, 1]} : vector<2x10x10x128xf32> to vector<2x8x8x128xf32>
    %67 = vector.extract_strided_slice %58 {offsets = [0, 2, 2, 0], sizes = [2, 8, 8, 128], strides = [1, 1, 1, 1]} : vector<2x10x10x128xf32> to vector<2x8x8x128xf32>
    %68 = tpu.concatenate %59, %60, %61, %62, %63, %64, %65, %66, %67 in 3 : vector<2x8x8x128xf32>, vector<2x8x8x128xf32>, vector<2x8x8x128xf32>, vector<2x8x8x128xf32>, vector<2x8x8x128xf32>, vector<2x8x8x128xf32>, vector<2x8x8x128xf32>, vector<2x8x8x128xf32>, vector<2x8x8x128xf32> -> vector<2x8x8x1152xf32>
    %69 = vector.shape_cast %68 : vector<2x8x8x1152xf32> to vector<128x1152xf32>
    %c0_19 = arith.constant 0 : index
    %c0_20 = arith.constant 0 : index
    %70 = vector.load %arg5[%c0_19, %c0_20] : memref<1152x128xf32, #tpu.memory_space<vmem>>, vector<1152x128xf32>
    %cst_21 = arith.constant dense<0.000000e+00> : vector<128x128xf32>
    %71 = tpu.matmul %69, %70, %cst_21 {dimension_numbers = #tpu.dot_dimension_numbers<[1], [0], [0], [1], [0, 0, 1, 1], [], []>} : vector<128x1152xf32>, vector<1152x128xf32>, vector<128x128xf32> -> vector<128x128xf32>
    %c0_22 = arith.constant 0 : index
    %c0_23 = arith.constant 0 : index
    %72 = vector.load %arg6[%c0_22, %c0_23] : memref<1x128xf32, #tpu.memory_space<vmem>>, vector<1x128xf32>
    %c0_24 = arith.constant 0 : index
    %c0_25 = arith.constant 0 : index
    %73 = vector.load %arg7[%c0_24, %c0_25] : memref<1x128xf32, #tpu.memory_space<vmem>>, vector<1x128xf32>
    %cst_26 = arith.constant dense<0.000000e+00> : vector<128xf32>
    %74 = vector.multi_reduction <add>, %71, %cst_26 [0] : vector<128x128xf32> to vector<128xf32>
    %75 = vector.shape_cast %74 : vector<128xf32> to vector<1x128xf32>
    %76 = arith.mulf %71, %71 : vector<128x128xf32>
    %cst_27 = arith.constant dense<0.000000e+00> : vector<128xf32>
    %77 = vector.multi_reduction <add>, %76, %cst_27 [0] : vector<128x128xf32> to vector<128xf32>
    %78 = vector.shape_cast %77 : vector<128xf32> to vector<1x128xf32>
    %cst_28 = arith.constant 1.280000e+02 : f32
    %79 = vector.broadcast %cst_28 : f32 to vector<1x128xf32>
    %80 = arith.divf %75, %79 : vector<1x128xf32>
    %cst_29 = arith.constant 1.280000e+02 : f32
    %81 = vector.broadcast %cst_29 : f32 to vector<1x128xf32>
    %82 = arith.divf %78, %81 : vector<1x128xf32>
    %83 = arith.mulf %80, %80 : vector<1x128xf32>
    %84 = arith.subf %82, %83 : vector<1x128xf32>
    %cst_30 = arith.constant 9.99999974E-6 : f32
    %85 = vector.broadcast %cst_30 : f32 to vector<1x128xf32>
    %86 = arith.addf %84, %85 : vector<1x128xf32>
    %87 = math.rsqrt %86 : vector<1x128xf32>
    %88 = arith.mulf %72, %87 : vector<1x128xf32>
    %89 = arith.mulf %80, %88 : vector<1x128xf32>
    %90 = arith.subf %73, %89 : vector<1x128xf32>
    %91 = vector.broadcast %88 : vector<1x128xf32> to vector<128x128xf32>
    %92 = arith.mulf %71, %91 : vector<128x128xf32>
    %93 = vector.broadcast %90 : vector<1x128xf32> to vector<128x128xf32>
    %94 = arith.addf %92, %93 : vector<128x128xf32>
    %cst_31 = arith.constant 0.000000e+00 : f32
    %95 = vector.broadcast %cst_31 : f32 to vector<128x128xf32>
    %96 = arith.maximumf %94, %95 : vector<128x128xf32>
    %c0_32 = arith.constant 0 : index
    %c0_33 = arith.constant 0 : index
    %97 = vector.load %arg8[%c0_32, %c0_33] : memref<128x128xf32, #tpu.memory_space<vmem>>, vector<128x128xf32>
    tpu.vector_store %arg8[%c0_32, %c0_33], %96 {strides = array<i32>} : memref<128x128xf32, #tpu.memory_space<vmem>>, vector<128x128xf32>,
    return
  }
  func.func @transform_0(%arg0: i32) -> (i32, i32, i32, i32) {
    %c0_i32 = arith.constant 0 : i32
    %c0_i32_0 = arith.constant 0 : i32
    %c0_i32_1 = arith.constant 0 : i32
    %c0_i32_2 = arith.constant 0 : i32
    %c0_i32_3 = arith.constant 0 : i32
    return %c0_i32, %c0_i32_0, %c0_i32_1, %c0_i32_2 : i32, i32, i32, i32
  }
  func.func @transform_1(%arg0: i32) -> (i32, i32) {
    %c0_i32 = arith.constant 0 : i32
    %c0_i32_0 = arith.constant 0 : i32
    %c0_i32_1 = arith.constant 0 : i32
    return %c0_i32, %c0_i32_0 : i32, i32
  }
  func.func @transform_2(%arg0: i32) -> (i32, i32) {
    %c0_i32 = arith.constant 0 : i32
    %c0_i32_0 = arith.constant 0 : i32
    %c0_i32_1 = arith.constant 0 : i32
    return %c0_i32, %c0_i32_0 : i32, i32
  }
  func.func @transform_3(%arg0: i32) -> (i32, i32) {
    %c0_i32 = arith.constant 0 : i32
    %c0_i32_0 = arith.constant 0 : i32
    %c0_i32_1 = arith.constant 0 : i32
    return %c0_i32, %c0_i32_0 : i32, i32
  }
  func.func @transform_4(%arg0: i32) -> (i32, i32) {
    %c0_i32 = arith.constant 0 : i32
    %c0_i32_0 = arith.constant 0 : i32
    %c0_i32_1 = arith.constant 0 : i32
    return %c0_i32, %c0_i32_0 : i32, i32
  }
  func.func @transform_5(%arg0: i32) -> (i32, i32) {
    %c0_i32 = arith.constant 0 : i32
    %c0_i32_0 = arith.constant 0 : i32
    %c0_i32_1 = arith.constant 0 : i32
    return %c0_i32, %c0_i32_0 : i32, i32
  }
  func.func @transform_6(%arg0: i32) -> (i32, i32) {
    %c0_i32 = arith.constant 0 : i32
    %c0_i32_0 = arith.constant 0 : i32
    %c0_i32_1 = arith.constant 0 : i32
    return %c0_i32, %c0_i32_0 : i32, i32
  }
  func.func @transform_7(%arg0: i32) -> (i32, i32) {
    %c0_i32 = arith.constant 0 : i32
    %c0_i32_0 = arith.constant 0 : i32
    %c0_i32_1 = arith.constant 0 : i32
    return %c0_i32, %c0_i32_0 : i32, i32
  }
}

</mosaic_0001>

<bundles_post_ra>
// kernel: tpu_custom_call.1
= control target key start
LH: loop header
LB: loop body
LE: loop exit
PB: predicated region body
PF: predicated region fallthrough
CT: control target
= control target key end

     0   :  { %12 = vsyncpa [#allocation3], 0  ;;  %s7625_s0 = inlined_call_operand.vmem [shape: f32[32,8,2,4], index: 0, kind: input, shape index: {}]   ;;  %s7626_s1 = inlined_call_operand.vmem [shape: f32[36,128], index: 1, kind: input, shape index: {}]   ;;  %s7627_s2 = inlined_call_operand.vmem [shape: f32[1,128], index: 2, kind: input, shape index: {}]   ;;  %s7628_s3 = inlined_call_operand.vmem [shape: f32[1,128], index: 3, kind: input, shape index: {}]   ;;  %s7629_s4 = inlined_call_operand.hbm [shape: f32[1152,128], index: 4, kind: input, shape index: {}]   ;;  %s7630_s5 = inlined_call_operand.vmem [shape: f32[1,128], index: 5, kind: input, shape index: {}]   ;;  %s7631_s6 = inlined_call_operand.vmem [shape: f32[1,128], index: 6, kind: input, shape index: {}]   ;;  %s7632_s7 = inlined_call_operand.hbm [shape: f32[128,128], index: 7, kind: output, shape index: {}]  }
   0x1   :  { %13 = vsyncpa [#allocation4], 0  ;;  %s4949_s24 = smov [#allocation2]   ;;  %s4901_s28 = scalar_lea.hbm %s7629_s4, 18432 }
   0x2   :  { %s27_s25 = sshll.u32 %s4949_s24, 4  ;;  %p4902_p0 = scmp.ne.s32.totalorder %s7629_s4, %s4901_s28  ;;  %s28_s25 = int_to_ptr.vmem [resolvable:$true] %s27_s25 }
   0x3   :  { %p4905_p1 = scmp.lt.u32.totalorder %s4901_s28, %s7629_s4 }
   0x5   :  { %p4907_p2 = pnand %p4905_p1, %p4902_p0 }
   0x7   :  { %4910 = shalt.err (!%p4907_p2)
}
   0x8   :  { %s4911_s10 = scalar_lea.vmem %s28_s25, 18432  ;;  %p4916_p4 = scmp.lt.s32.totalorder %s28_s25, %s28_s25 }
   0x9   :  { %p4912_p3 = scmp.ne.s32.totalorder %s28_s25, %s4911_s10  ;;  %p4917_p5 = scmp.lt.s32.totalorder %s4911_s10, %s4911_s10 }
   0xb   :  { %p4918_p6 = por %p4917_p5, %p4916_p4 }
   0xd   :  { %p4919_p7 = pnand %p4918_p6, %p4912_p3 }
   0xf   :  { %4922 = shalt.err (!%p4919_p7)
}
  0x10   :  { %s4950_s11 = smov 128   ;;  %s4951_s12 = smov 8  }
  0x11   :  { %33 = dma.hbm_to_vmem [thread:$0]  %s7629_s4, 18432, %s28_s25, [#allocation3], %s4950_s11, %s4950_s11, %s4951_s12  }
  0x12   :  { %4945 = dma.done.wait [#allocation3], 18432  }
  0x13   :  { %4946 = vsyncadd [#allocation3], 4294948864  ;;  %vm1843_vm0 = vcmask 1040384   ;;  %v4952_v0 = vmov 0.0   ;;  %vm7646_vm1 = vcmask 1045504   ;;  %vm1908_vm2 = vcmask 1046528  }
  0x14   :  { %v5016_v1 = vrot.slane %v4952_v0, 7  ;;  %s4953_s4 = smov 4   ;;  %v57_v10 = vld [vmem:[%s7625_s0 + $0x20] sm:$0x3]  ;;  %v58_v11 = vld [vmem:[%s7625_s0 + $0x22] sm:$0x3] }
  0x15   :  { %v59_v12 = vld [vmem:[%s7625_s0 + $0x24] sm:$0x3]  ;;  %v60_v13 = vld [vmem:[%s7625_s0 + $0x26] sm:$0x3]  ;;  %v61_v14 = vld [vmem:[%s7625_s0 + $0x28] sm:$0x3] }
  0x16   :  { %7650 = vst [vmem:[#allocation8_spill] sm:$0xff] %v5016_v1  ;;  %v5020_v2 = vsel %vm1843_vm0, 0.0, %v5016_v1  ;;  %v1861_v3 = vsel %vm1843_vm0, %v5016_v1, 0.0  ;;  %v62_v15 = vld [vmem:[%s7625_s0 + $0x2a] sm:$0x3]  ;;  %v569_v25 = vrot.slane %v57_v10, 1 }
  0x17   :  { %v2000_v4 = vrot.slane %v5020_v2, 2  ;;  %v2001_v5 = vrot.slane %v1861_v3, 2  ;;  %v1909_v6 = vrot.slane %v5020_v2, 1  ;;  %v1910_v7 = vrot.slane %v1861_v3, 1  ;;  %v63_v16 = vld [vmem:[%s7625_s0 + $0x2c] sm:$0x3] }
  0x18   :  { %v64_v17 = vld [vmem:[%s7625_s0 + $0x2e] sm:$0x3]  ;;  %v65_v18 = vld [vmem:[%s7625_s0 + $0x30] sm:$0x3]  ;;  %v66_v19 = vld [vmem:[%s7625_s0 + $0x32] sm:$0x3]  ;;  %v1081_v42 = vmax.f32 %v57_v10, %v569_v25 }
  0x19   :  { %v5027_v8 = vsel %vm7646_vm1, %v2000_v4, %v2001_v5  ;;  %v5030_v9 = vsel %vm1908_vm2, %v1909_v6, %v1910_v7  ;;  %v67_v20 = vld [vmem:[%s7625_s0 + $0x34] sm:$0x3]  ;;  %v68_v21 = vld [vmem:[%s7625_s0 + $0x36] sm:$0x3]  ;;  %v69_v22 = vld [vmem:[%s7625_s0 + $0x38] sm:$0x3] }
  0x1a   :  { %7651 = vst [vmem:[#allocation9_spill] sm:$0xff] %v5027_v8  ;;  %7652 = vst [vmem:[#allocation10_spill] sm:$0xff] %v5030_v9  ;;  %2045 = vrot.lane.b32.xlu1 %v5027_v8, %s4951_s12  ;;  %1954 = vrot.lane.b32.xlu0 %v5030_v9, %s4953_s4  ;;  %v70_v23 = vld [vmem:[%s7625_s0 + $0x3a] sm:$0x3]  ;;  %v71_v24 = vld [vmem:[%s7625_s0 + $0x3c] sm:$0x3] }
  0x1b   :  { %3302 = vmatprep.mubr.f32.mxu1 %v5030_v9  ;;  %v570_v26 = vrot.slane %v58_v11, 1  ;;  %v72_v27 = vld [vmem:[%s7625_s0 + $0x3e] sm:$0x3]  ;;  %v571_v28 = vrot.slane %v59_v12, 1  ;;  %v572_v29 = vrot.slane %v60_v13, 1  ;;  %v573_v30 = vrot.slane %v61_v14, 1 }
  0x1c   :  { %v574_v31 = vrot.slane %v62_v15, 1  ;;  %vm1578_vm3 = vcmask 1041409   ;;  %v575_v32 = vrot.slane %v63_v16, 1  ;;  %v576_v33 = vrot.slane %v64_v17, 1  ;;  %v41_v56 = vld [vmem:[%s7625_s0] sm:$0x3] }
  0x1d   :  { %v577_v34 = vrot.slane %v65_v18, 1  ;;  %v578_v35 = vrot.slane %v66_v19, 1  ;;  %vm1581_vm4 = vcmask 1042434   ;;  %v579_v36 = vrot.slane %v67_v20, 1  ;;  %v42_v57 = vld [vmem:[%s7625_s0 + $0x2] sm:$0x3] }
  0x1e   :  { %v580_v37 = vrot.slane %v68_v21, 1  ;;  %v581_v38 = vrot.slane %v69_v22, 1  ;;  %v582_v39 = vrot.slane %v70_v23, 1  ;;  %vm1584_vm5 = vcmask 1043459   ;;  %v43_v62 = vld [vmem:[%s7625_s0 + $0x4] sm:$0x3] }
  0x1f   :  { %v583_v40 = vrot.slane %v71_v24, 1  ;;  %v584_v41 = vrot.slane %v72_v27, 1  ;;  %v1082_v43 = vmax.f32 %v58_v11, %v570_v26  ;;  %vm1587_vm6 = vcmask 1044484   ;;  %v44_v63 = vld [vmem:[%s7625_s0 + $0x6] sm:$0x3]  ;;  %s4954_s20 = smov 12  }
  0x20   :  { %v1083_v44 = vmax.f32 %v59_v12, %v571_v28  ;;  %v1084_v45 = vmax.f32 %v60_v13, %v572_v29  ;;  %v1085_v46 = vmax.f32 %v61_v14, %v573_v30  ;;  %v1086_v47 = vmax.f32 %v62_v15, %v574_v31  ;;  %v45_v0 = vld [vmem:[%s7625_s0 + $0x8] sm:$0x3]  ;;  %v46_v7 = vld [vmem:[%s7625_s0 + $0xa] sm:$0x3]  ;;  %v47_v10 = vld [vmem:[%s7625_s0 + $0xc] sm:$0x3] }
  0x21   :  { %vm1590_vm7 = vcmask 1045509   ;;  %v1087_v48 = vmax.f32 %v63_v16, %v575_v32  ;;  %v1088_v49 = vmax.f32 %v64_v17, %v576_v33  ;;  %v1089_v50 = vmax.f32 %v65_v18, %v577_v34  ;;  %v48_v11 = vld [vmem:[%s7625_s0 + $0xe] sm:$0x3]  ;;  %v49_v15 = vld [vmem:[%s7625_s0 + $0x10] sm:$0x3]  ;;  %s4955_s23 = smov 24  }
  0x22   :  { %v1090_v51 = vmax.f32 %v66_v19, %v578_v35  ;;  %vm1593_vm8 = vcmask 1046534   ;;  %v1091_v52 = vmax.f32 %v67_v20, %v579_v36  ;;  %v1092_v53 = vmax.f32 %v68_v21, %v580_v37  ;;  %v50_v16 = vld [vmem:[%s7625_s0 + $0x12] sm:$0x3]  ;;  %v51_v17 = vld [vmem:[%s7625_s0 + $0x14] sm:$0x3]  ;;  %s4956_s14 = smov 16  }
  0x23   :  { %v1093_v54 = vmax.f32 %v69_v22, %v581_v38  ;;  %v1094_v55 = vmax.f32 %v70_v23, %v582_v39  ;;  %vm7641_vm9 = vcmask 1047559   ;;  %v1095_v58 = vmax.f32 %v71_v24, %v583_v40  ;;  %v52_v23 = vld [vmem:[%s7625_s0 + $0x16] sm:$0x3]  ;;  %v53_v24 = vld [vmem:[%s7625_s0 + $0x18] sm:$0x3]  ;;  %s4957_s29 = smov 20  }
  0x24   :  { %v1096_v59 = vmax.f32 %v72_v27, %v584_v41  ;;  %v1329_v60 = vmax.f32 %v1081_v42, %v1089_v50  ;;  %v1330_v61 = vmax.f32 %v1082_v43, %v1090_v51  ;;  %v1331_v3 = vmax.f32 %v1083_v44, %v1091_v52  ;;  %v54_v28 = vld [vmem:[%s7625_s0 + $0x1a] sm:$0x3]  ;;  %v55_v31 = vld [vmem:[%s7625_s0 + $0x1c] sm:$0x3]  ;;  %v56_v36 = vld [vmem:[%s7625_s0 + $0x1e] sm:$0x3] }
  0x25   :  { %v1332_v4 = vmax.f32 %v1084_v45, %v1092_v53  ;;  %v1333_v5 = vmax.f32 %v1085_v46, %v1093_v54  ;;  %v1334_v6 = vmax.f32 %v1086_v47, %v1094_v55  ;;  %v1335_v12 = vmax.f32 %v1087_v48, %v1095_v58  ;;  %s4958_s26 = smov 28   ;;  %s4959_s21 = smov 32  }
  0x26   :  { %v1336_v13 = vmax.f32 %v1088_v49, %v1096_v59  ;;  %v1598_v14 = vrot.slane %v1330_v61, 7  ;;  %v553_v18 = vrot.slane %v41_v56, 1  ;;  %v1600_v19 = vrot.slane %v1331_v3, 6 }
  0x27   :  { %v1602_v20 = vrot.slane %v1332_v4, 5  ;;  %v1604_v21 = vrot.slane %v1333_v5, 4  ;;  %v1606_v22 = vrot.slane %v1334_v6, 3  ;;  %v1608_v26 = vrot.slane %v1335_v12, 2 }
  0x28   :  { %v1599_v25 = vsel %vm1578_vm3, %v1598_v14, %v1329_v60  ;;  %v1610_v27 = vrot.slane %v1336_v13, 1  ;;  %v554_v29 = vrot.slane %v42_v57, 1  ;;  %v555_v32 = vrot.slane %v43_v62, 1 }
  0x29   :  { %v1601_v30 = vsel %vm1581_vm4, %v1600_v19, %v1599_v25  ;;  %v556_v33 = vrot.slane %v44_v63, 1  ;;  %v557_v34 = vrot.slane %v45_v0, 1  ;;  %v558_v37 = vrot.slane %v46_v7, 1 }
  0x2a   :  { %v1603_v35 = vsel %vm1584_vm5, %v1602_v20, %v1601_v30  ;;  %v559_v38 = vrot.slane %v47_v10, 1  ;;  %v560_v39 = vrot.slane %v48_v11, 1  ;;  %v561_v41 = vrot.slane %v49_v15, 1 }
  0x2b   :  { %v1605_v40 = vsel %vm1587_vm6, %v1604_v21, %v1603_v35  ;;  %v562_v42 = vrot.slane %v50_v16, 1  ;;  %v563_v43 = vrot.slane %v51_v17, 1  ;;  %v564_v45 = vrot.slane %v52_v23, 1  ;;  %v78_v21 = vld [vmem:[%s7625_s0 + $0x4a] sm:$0x3] }
  0x2c   :  { %v1607_v44 = vsel %vm1590_vm7, %v1606_v22, %v1605_v40  ;;  %v565_v46 = vrot.slane %v53_v24, 1  ;;  %v566_v47 = vrot.slane %v54_v28, 1  ;;  %v567_v49 = vrot.slane %v55_v31, 1  ;;  %v79_v22 = vld [vmem:[%s7625_s0 + $0x4c] sm:$0x3] }
  0x2d   :  { %v1609_v48 = vsel %vm1593_vm8, %v1608_v26, %v1607_v44  ;;  %v568_v50 = vrot.slane %v56_v36, 1  ;;  %v1065_v51 = vmax.f32 %v41_v56, %v553_v18  ;;  %v1066_v53 = vmax.f32 %v42_v57, %v554_v29  ;;  %v73_v57 = vld [vmem:[%s7625_s0 + $0x40] sm:$0x3]  ;;  %v83_v29 = vld [vmem:[%s7625_s0 + $0x54] sm:$0x3] }
  0x2e   :  { %v5140_v52 = vsel %vm7641_vm9, %v1610_v27, %v1609_v48  ;;  %v1067_v54 = vmax.f32 %v43_v62, %v555_v32  ;;  %v1068_v55 = vmax.f32 %v44_v63, %v556_v33  ;;  %v1069_v59 = vmax.f32 %v45_v0, %v557_v34  ;;  %v74_v62 = vld [vmem:[%s7625_s0 + $0x42] sm:$0x3]  ;;  %v81_v27 = vld [vmem:[%s7625_s0 + $0x50] sm:$0x3]  ;;  %v84_v35 = vld [vmem:[%s7625_s0 + $0x56] sm:$0x3] }
  0x2f   :  { %v1811_v58 = vrot.slane %v5140_v52, 7  ;;  %v1070_v60 = vmax.f32 %v46_v7, %v558_v37  ;;  %v1071_v61 = vmax.f32 %v47_v10, %v559_v38  ;;  %v1072_v3 = vmax.f32 %v48_v11, %v560_v39  ;;  %v75_v11 = vld [vmem:[%s7625_s0 + $0x44] sm:$0x3]  ;;  %v86_v40 = vld [vmem:[%s7625_s0 + $0x5a] sm:$0x3] }
  0x30   :  { %v1073_v4 = vmax.f32 %v49_v15, %v561_v41  ;;  %v1074_v5 = vmax.f32 %v50_v16, %v562_v42  ;;  %v1075_v6 = vmax.f32 %v51_v17, %v563_v43  ;;  %v1076_v56 = vmax.f32 %v52_v23, %v564_v45  ;;  %v76_v15 = vld [vmem:[%s7625_s0 + $0x46] sm:$0x3]  ;;  %v77_v16 = vld [vmem:[%s7625_s0 + $0x48] sm:$0x3]  ;;  %v80_v23 = vld [vmem:[%s7625_s0 + $0x4e] sm:$0x3] }
  0x31   :  { %v5146_v12 = vsel %vm1843_vm0, 0.0, %v1811_v58  ;;  %v1077_v13 = vmax.f32 %v53_v24, %v565_v46  ;;  %v1078_v14 = vmax.f32 %v54_v28, %v566_v47  ;;  %v1079_v63 = vmax.f32 %v55_v31, %v567_v49  ;;  %v82_v28 = vld [vmem:[%s7625_s0 + $0x52] sm:$0x3]  ;;  %v87_v43 = vld [vmem:[%s7625_s0 + $0x5c] sm:$0x3] }
  0x32   :  { %2094 = vrot.lane.b32.xlu1 %v5146_v12, %s4954_s20  ;;  %v1080_v0 = vmax.f32 %v56_v36, %v568_v50  ;;  %v1321_v7 = vmax.f32 %v1065_v51, %v1073_v4  ;;  %v1322_v10 = vmax.f32 %v1066_v53, %v1074_v5  ;;  %v1323_v17 = vmax.f32 %v1067_v54, %v1075_v6  ;;  %v85_v36 = vld [vmem:[%s7625_s0 + $0x58] sm:$0x3]  ;;  %v88_v48 = vld [vmem:[%s7625_s0 + $0x5e] sm:$0x3] }
  0x33   :  { %v1324_v18 = vmax.f32 %v1068_v55, %v1076_v56  ;;  %v1325_v19 = vmax.f32 %v1069_v59, %v1077_v13  ;;  %v1326_v20 = vmax.f32 %v1070_v60, %v1078_v14  ;;  %v1327_v24 = vmax.f32 %v1071_v61, %v1079_v63 }
  0x34   :  { %v1328_v25 = vmax.f32 %v1072_v3, %v1080_v0  ;;  %v1577_v26 = vrot.slane %v1322_v10, 7  ;;  %v585_v30 = vrot.slane %v73_v57, 1  ;;  %v1580_v31 = vrot.slane %v1323_v17, 6 }
  0x35   :  { %v1583_v32 = vrot.slane %v1324_v18, 5  ;;  %v1586_v33 = vrot.slane %v1325_v19, 4  ;;  %v1589_v34 = vrot.slane %v1326_v20, 3  ;;  %v1592_v38 = vrot.slane %v1327_v24, 2 }
  0x36   :  { %v1579_v37 = vsel %vm1578_vm3, %v1577_v26, %v1321_v7  ;;  %v1595_v39 = vrot.slane %v1328_v25, 1  ;;  %2250 = vrot.lane.b32.xlu1 %v5146_v12, %s4955_s23  ;;  %v586_v41 = vrot.slane %v74_v62, 1  ;;  %v587_v44 = vrot.slane %v75_v11, 1 }
  0x37   :  { %v1582_v42 = vsel %vm1581_vm4, %v1580_v31, %v1579_v37  ;;  %v588_v45 = vrot.slane %v76_v15, 1  ;;  %v589_v46 = vrot.slane %v77_v16, 1  ;;  %v590_v49 = vrot.slane %v78_v21, 1 }
  0x38   :  { %v1585_v47 = vsel %vm1584_vm5, %v1583_v32, %v1582_v42  ;;  %v591_v50 = vrot.slane %v79_v22, 1  ;;  %v592_v51 = vrot.slane %v80_v23, 1  ;;  %v593_v54 = vrot.slane %v81_v27, 1 }
  0x39   :  { %v1588_v53 = vsel %vm1587_vm6, %v1586_v33, %v1585_v47  ;;  %v594_v55 = vrot.slane %v82_v28, 1  ;;  %v595_v59 = vrot.slane %v83_v29, 1  ;;  %v596_v61 = vrot.slane %v84_v35, 1 }
  0x3a   :  { %v1591_v60 = vsel %vm1590_vm7, %v1589_v34, %v1588_v53  ;;  %v597_v3 = vrot.slane %v85_v36, 1  ;;  %v598_v4 = vrot.slane %v86_v40, 1  ;;  %v599_v6 = vrot.slane %v87_v43, 1  ;;  %v94_v53 = vld [vmem:[%s7625_s0 + $0x6a] sm:$0x3] }
  0x3b   :  { %v1594_v5 = vsel %vm1593_vm8, %v1592_v38, %v1591_v60  ;;  %v600_v56 = vrot.slane %v88_v48, 1  ;;  %v1097_v13 = vmax.f32 %v73_v57, %v585_v30  ;;  %v1098_v63 = vmax.f32 %v74_v62, %v586_v41  ;;  %v91_v41 = vld [vmem:[%s7625_s0 + $0x64] sm:$0x3] }
  0x3c   :  { %v1597_v14 = vsel %vm7641_vm9, %v1595_v39, %v1594_v5  ;;  %v1099_v0 = vmax.f32 %v75_v11, %v587_v44  ;;  %v1100_v7 = vmax.f32 %v76_v15, %v588_v45  ;;  %v1101_v17 = vmax.f32 %v77_v16, %v589_v46  ;;  %v89_v39 = vld [vmem:[%s7625_s0 + $0x60] sm:$0x3]  ;;  %v92_v46 = vld [vmem:[%s7625_s0 + $0x66] sm:$0x3]  ;;  %v98_v5 = vld [vmem:[%s7625_s0 + $0x72] sm:$0x3] }
  0x3d   :  { %v1810_v10 = vrot.slane %v1597_v14, 7  ;;  %v1102_v18 = vmax.f32 %v78_v21, %v590_v49  ;;  %v1103_v19 = vmax.f32 %v79_v22, %v591_v50  ;;  %v1104_v20 = vmax.f32 %v80_v23, %v592_v51  ;;  %v93_v51 = vld [vmem:[%s7625_s0 + $0x68] sm:$0x3]  ;;  %v100_v14 = vld [vmem:[%s7625_s0 + $0x76] sm:$0x3] }
  0x3e   :  { %v1105_v24 = vmax.f32 %v81_v27, %v593_v54  ;;  %v1106_v25 = vmax.f32 %v82_v28, %v594_v55  ;;  %v1107_v26 = vmax.f32 %v83_v29, %v595_v59  ;;  %v1108_v33 = vmax.f32 %v84_v35, %v596_v61  ;;  %v95_v54 = vld [vmem:[%s7625_s0 + $0x6c] sm:$0x3] }
  0x3f   :  { %v5208_v31 = vsel %vm1843_vm0, 0.0, %v1810_v10  ;;  %v1862_v32 = vsel %vm1843_vm0, %v1810_v10, 0.0  ;;  %v1109_v57 = vmax.f32 %v85_v36, %v597_v3  ;;  %v1110_v15 = vmax.f32 %v86_v40, %v598_v4  ;;  %v90_v40 = vld [vmem:[%s7625_s0 + $0x62] sm:$0x3]  ;;  %v96_v3 = vld [vmem:[%s7625_s0 + $0x6e] sm:$0x3] }
  0x40   :  { %2092 = vrot.lane.b32.xlu0 %v5208_v31, %s4954_s20  ;;  %v1912_v62 = vrot.slane %v5208_v31, 1  ;;  %v1913_v11 = vrot.slane %v1862_v32, 1  ;;  %v1111_v16 = vmax.f32 %v87_v43, %v599_v6  ;;  %v1112_v21 = vmax.f32 %v88_v48, %v600_v56  ;;  %v97_v4 = vld [vmem:[%s7625_s0 + $0x70] sm:$0x3] }
  0x41   :  { %v1337_v22 = vmax.f32 %v1097_v13, %v1105_v24  ;;  %v1338_v23 = vmax.f32 %v1098_v63, %v1106_v25  ;;  %v1339_v27 = vmax.f32 %v1099_v0, %v1107_v26  ;;  %v1340_v29 = vmax.f32 %v1100_v7, %v1108_v33  ;;  %v99_v13 = vld [vmem:[%s7625_s0 + $0x74] sm:$0x3]  ;;  %v101_v0 = vld [vmem:[%s7625_s0 + $0x78] sm:$0x3]  ;;  %v102_v24 = vld [vmem:[%s7625_s0 + $0x7a] sm:$0x3] }
  0x42   :  { %v1914_v28 = vsel %vm1908_vm2, %v1912_v62, %v1913_v11  ;;  %v1341_v30 = vmax.f32 %v1101_v17, %v1109_v57  ;;  %v1342_v34 = vmax.f32 %v1102_v18, %v1110_v15  ;;  %v1343_v37 = vmax.f32 %v1103_v19, %v1111_v16  ;;  %v103_v25 = vld [vmem:[%s7625_s0 + $0x7c] sm:$0x3]  ;;  %v104_v33 = vld [vmem:[%s7625_s0 + $0x7e] sm:$0x3] }
  0x43   :  { %v1344_v35 = vmax.f32 %v1104_v20, %v1112_v21  ;;  %v1612_v36 = vrot.slane %v1338_v23, 7  ;;  %v1614_v38 = vrot.slane %v1339_v27, 6  ;;  %v1616_v42 = vrot.slane %v1340_v29, 5 }
  0x44   :  { %1956 = vrot.lane.b32.xlu0 %v1914_v28, %s4953_s4  ;;  %v1618_v43 = vrot.slane %v1341_v30, 4  ;;  %v1620_v44 = vrot.slane %v1342_v34, 3  ;;  %v2003_v45 = vrot.slane %v5208_v31, 2  ;;  %v1622_v48 = vrot.slane %v1343_v37, 2 }
  0x45   :  { %v1613_v47 = vsel %vm1578_vm3, %v1612_v36, %v1337_v22  ;;  %v1624_v49 = vrot.slane %v1344_v35, 1  ;;  %v2004_v50 = vrot.slane %v1862_v32, 2  ;;  %v1863_v59 = vsel %vm1843_vm0, %v1811_v58, 0.0 }
  0x46   :  { %v1615_v55 = vsel %vm1581_vm4, %v1614_v38, %v1613_v47  ;;  %v1915_v60 = vrot.slane %v5146_v12, 1  ;;  %v2006_v61 = vrot.slane %v5146_v12, 2  ;;  %v1916_v6 = vrot.slane %v1863_v59, 1 }
  0x47   :  { %v1617_v52 = vsel %vm1584_vm5, %v1616_v42, %v1615_v55  ;;  %v5256_v58 = vsel %vm7646_vm1, %v2003_v45, %v2004_v50  ;;  %v2007_v56 = vrot.slane %v1863_v59, 2  ;;  %v601_v7 = vrot.slane %v89_v39, 1 }
  0x48   :  { %v1619_v63 = vsel %vm1587_vm6, %v1618_v43, %v1617_v52  ;;  %2148 = vrot.lane.b32.xlu0 %v1914_v28, %s4956_s14  ;;  %v602_v10 = vrot.slane %v90_v40, 1  ;;  %v603_v17 = vrot.slane %v91_v41, 1  ;;  %v5271_v19 = vsel %vm1908_vm2, %v1915_v60, %v1916_v6 }
  0x49   :  { %v1621_v18 = vsel %vm1590_vm7, %v1620_v44, %v1619_v63  ;;  %v5274_v20 = vsel %vm7646_vm1, %v2006_v61, %v2007_v56  ;;  %v604_v26 = vrot.slane %v92_v46, 1  ;;  %v605_v57 = vrot.slane %v93_v51, 1 }
  0x4a   :  { %v1623_v32 = vsel %vm1593_vm8, %v1622_v48, %v1621_v18  ;;  %v606_v62 = vrot.slane %v94_v53, 1  ;;  %v607_v11 = vrot.slane %v95_v54, 1  ;;  %v608_v16 = vrot.slane %v96_v3, 1  ;;  %v111_v18 = vld [vmem:[%s7625_s0 + $0x8c] sm:$0x3] }
  0x4b   :  { %v1625_v15 = vsel %vm7641_vm9, %v1624_v49, %v1623_v32  ;;  %v609_v21 = vrot.slane %v97_v4, 1  ;;  %v610_v22 = vrot.slane %v98_v5, 1  ;;  %v611_v27 = vrot.slane %v99_v13, 1 }
  0x4c   :  { %v1812_v23 = vrot.slane %v1625_v15, 7  ;;  %2150 = vrot.lane.b32.xlu0 %v5271_v19, %s4956_s14  ;;  %v612_v28 = vrot.slane %v100_v14, 1  ;;  %v613_v29 = vrot.slane %v101_v0, 1  ;;  %v614_v30 = vrot.slane %v102_v24, 1 }
  0x4d   :  { %v615_v34 = vrot.slane %v103_v25, 1  ;;  %v616_v37 = vrot.slane %v104_v33, 1  ;;  %v5289_v35 = vmax.f32 %v89_v39, %v601_v7  ;;  %v1114_v42 = vmax.f32 %v90_v40, %v602_v10 }
  0x4e   :  { %v5292_v36 = vsel %vm1843_vm0, 0.0, %v1812_v23  ;;  %v1864_v38 = vsel %vm1843_vm0, %v1812_v23, 0.0  ;;  %v1115_v43 = vmax.f32 %v91_v41, %v603_v17  ;;  %v1116_v49 = vmax.f32 %v92_v46, %v604_v26  ;;  %v105_v46 = vld [vmem:[%s7625_s0 + $0x80] sm:$0x3]  ;;  %v110_v17 = vld [vmem:[%s7625_s0 + $0x8a] sm:$0x3] }
  0x4f   :  { %2096 = vrot.lane.b32.xlu1 %v5292_v36, %s4954_s20  ;;  %v1918_v44 = vrot.slane %v5292_v36, 1  ;;  %v1919_v45 = vrot.slane %v1864_v38, 1  ;;  %v2009_v47 = vrot.slane %v5292_v36, 2  ;;  %v2010_v48 = vrot.slane %v1864_v38, 2  ;;  %v116_v23 = vld [vmem:[%s7625_s0 + $0x96] sm:$0x3] }
  0x50   :  { %v1117_v50 = vmax.f32 %v93_v51, %v605_v57  ;;  %v1118_v39 = vmax.f32 %v94_v53, %v606_v62  ;;  %v1119_v55 = vmax.f32 %v95_v54, %v607_v11  ;;  %v1120_v40 = vmax.f32 %v96_v3, %v608_v16  ;;  %v5313_v51 = vld [vmem:[%s7625_s0 + $0x82] sm:$0x3]  ;;  %v114_v57 = vld [vmem:[%s7625_s0 + $0x92] sm:$0x3]  ;;  %v115_v62 = vld [vmem:[%s7625_s0 + $0x94] sm:$0x3] }
  0x51   :  { %v5300_v59 = vsel %vm1908_vm2, %v1918_v44, %v1919_v45  ;;  %v5303_v60 = vsel %vm7646_vm1, %v2009_v47, %v2010_v48  ;;  %v1121_v41 = vmax.f32 %v97_v4, %v609_v21  ;;  %v1122_v61 = vmax.f32 %v98_v5, %v610_v22  ;;  %v107_v5 = vld [vmem:[%s7625_s0 + $0x84] sm:$0x3]  ;;  %v119_v38 = vld [vmem:[%s7625_s0 + $0x9c] sm:$0x3]  ;;  %v120_v47 = vld [vmem:[%s7625_s0 + $0x9e] sm:$0x3] }
  0x52   :  { %1960 = vrot.lane.b32.xlu0 %v5300_v59, %s4953_s4  ;;  %v1123_v52 = vmax.f32 %v99_v13, %v611_v27  ;;  %v1124_v6 = vmax.f32 %v100_v14, %v612_v28  ;;  %v1125_v56 = vmax.f32 %v101_v0, %v613_v29  ;;  %v1126_v53 = vmax.f32 %v102_v24, %v614_v30  ;;  %v108_v13 = vld [vmem:[%s7625_s0 + $0x86] sm:$0x3]  ;;  %v109_v14 = vld [vmem:[%s7625_s0 + $0x88] sm:$0x3]  ;;  %v112_v24 = vld [vmem:[%s7625_s0 + $0x8e] sm:$0x3] }
  0x53   :  { %2047 = vrot.lane.b32.xlu1 %v5256_v58, %s4951_s12  ;;  %v1127_v54 = vmax.f32 %v103_v25, %v615_v34  ;;  %v1128_v3 = vmax.f32 %v104_v33, %v616_v37  ;;  %v1345_v4 = vmax.f32 %v5289_v35, %v1121_v41  ;;  %v1346_v63 = vmax.f32 %v1114_v42, %v1122_v61  ;;  %v113_v33 = vld [vmem:[%s7625_s0 + $0x90] sm:$0x3]  ;;  %v117_v27 = vld [vmem:[%s7625_s0 + $0x98] sm:$0x3]  ;;  %v118_v34 = vld [vmem:[%s7625_s0 + $0x9a] sm:$0x3] }
  0x54   :  { %v1347_v0 = vmax.f32 %v1115_v43, %v1123_v52  ;;  %v1348_v7 = vmax.f32 %v1116_v49, %v1124_v6  ;;  %v1349_v10 = vmax.f32 %v1117_v50, %v1125_v56  ;;  %v1350_v25 = vmax.f32 %v1118_v39, %v1126_v53 }
  0x55   :  { %v1351_v26 = vmax.f32 %v1119_v55, %v1127_v54  ;;  %v1352_v32 = vmax.f32 %v1120_v40, %v1128_v3  ;;  %v617_v11 = vrot.slane %v105_v46, 1  ;;  %v1626_v15 = vrot.slane %v1346_v63, 7 }
  0x56   :  { %2204 = vrot.lane.b32.xlu0 %v5274_v20, %s4957_s29  ;;  %v1628_v16 = vrot.slane %v1347_v0, 6  ;;  %v1630_v21 = vrot.slane %v1348_v7, 5  ;;  %v1632_v22 = vrot.slane %v1349_v10, 4  ;;  %v1634_v28 = vrot.slane %v1350_v25, 3 }
  0x57   :  { %1958 = vrot.lane.b32.xlu1 %v5271_v19, %s4953_s4  ;;  %v1636_v29 = vrot.slane %v1351_v26, 2  ;;  %v1638_v30 = vrot.slane %v1352_v32, 1  ;;  %v618_v37 = vrot.slane %v5313_v51, 1  ;;  %v1627_v35 = vsel %vm1578_vm3, %v1626_v15, %v1345_v4 }
  0x58   :  { %v619_v42 = vrot.slane %v107_v5, 1  ;;  %v620_v43 = vrot.slane %v108_v13, 1  ;;  %v621_v44 = vrot.slane %v109_v14, 1  ;;  %v1629_v45 = vsel %vm1581_vm4, %v1628_v16, %v1627_v35  ;;  %v124_v35 = vld [vmem:[%s7625_s0 + $0xa6] sm:$0x3] }
  0x59   :  { %v622_v48 = vrot.slane %v110_v17, 1  ;;  %v623_v49 = vrot.slane %v111_v18, 1  ;;  %v624_v50 = vrot.slane %v112_v24, 1  ;;  %v1631_v39 = vsel %vm1584_vm5, %v1630_v21, %v1629_v45  ;;  %v126_v45 = vld [vmem:[%s7625_s0 + $0xaa] sm:$0x3] }
  0x5a   :  { %2051 = vrot.lane.b32.xlu0 %v5303_v60, %s4951_s12  ;;  %v625_v55 = vrot.slane %v113_v33, 1  ;;  %v626_v40 = vrot.slane %v114_v57, 1  ;;  %v627_v41 = vrot.slane %v115_v62, 1  ;;  %v1633_v61 = vsel %vm1587_vm6, %v1632_v22, %v1631_v39 }
  0x5b   :  { %2202 = vrot.lane.b32.xlu1 %v5256_v58, %s4957_s29  ;;  %v628_v52 = vrot.slane %v116_v23, 1  ;;  %v629_v6 = vrot.slane %v117_v27, 1  ;;  %v630_v56 = vrot.slane %v118_v34, 1  ;;  %v1635_v53 = vsel %vm1590_vm7, %v1634_v28, %v1633_v61  ;;  %v131_v61 = vld [vmem:[%s7625_s0 + $0xb4] sm:$0x3] }
  0x5c   :  { %v631_v54 = vrot.slane %v119_v38, 1  ;;  %v632_v3 = vrot.slane %v120_v47, 1  ;;  %v5374_v4 = vmax.f32 %v105_v46, %v617_v11  ;;  %v1637_v63 = vsel %vm1593_vm8, %v1636_v29, %v1635_v53  ;;  %v132_v53 = vld [vmem:[%s7625_s0 + $0xb6] sm:$0x3] }
  0x5d   :  { %v1130_v0 = vmax.f32 %v5313_v51, %v618_v37  ;;  %v1131_v7 = vmax.f32 %v107_v5, %v619_v42  ;;  %v1132_v10 = vmax.f32 %v108_v13, %v620_v43  ;;  %v1639_v58 = vsel %vm7641_vm9, %v1638_v30, %v1637_v63  ;;  %v123_v37 = vld [vmem:[%s7625_s0 + $0xa4] sm:$0x3] }
  0x5e   :  { %2252 = vrot.lane.b32.xlu0 %v5292_v36, %s4955_s23  ;;  %v1133_v25 = vmax.f32 %v109_v14, %v621_v44  ;;  %v1134_v26 = vmax.f32 %v110_v17, %v622_v48  ;;  %v1135_v32 = vmax.f32 %v111_v18, %v623_v49  ;;  %v1813_v15 = vrot.slane %v1639_v58, 7  ;;  %v5390_v17 = vld [vmem:[%s7625_s0 + $0xa0] sm:$0x3]  ;;  %v128_v48 = vld [vmem:[%s7625_s0 + $0xae] sm:$0x3] }
  0x5f   :  { %2049 = vrot.lane.b32.xlu1 %v5274_v20, %s4951_s12  ;;  %v1136_v46 = vmax.f32 %v112_v24, %v624_v50  ;;  %v1137_v11 = vmax.f32 %v113_v33, %v625_v55  ;;  %v1138_v16 = vmax.f32 %v114_v57, %v626_v40  ;;  %v1139_v21 = vmax.f32 %v115_v62, %v627_v41  ;;  %v5399_v62 = vld [vmem:[%s7625_s0 + $0xa2] sm:$0x3]  ;;  %v129_v40 = vld [vmem:[%s7625_s0 + $0xb0] sm:$0x3]  ;;  %v130_v41 = vld [vmem:[%s7625_s0 + $0xb2] sm:$0x3] }
  0x60   :  { %v1140_v22 = vmax.f32 %v116_v23, %v628_v52  ;;  %v1141_v51 = vmax.f32 %v117_v27, %v629_v6  ;;  %v1142_v5 = vmax.f32 %v118_v34, %v630_v56  ;;  %v5384_v13 = vsel %vm1843_vm0, 0.0, %v1813_v15 }
  0x61   :  { %v1865_v28 = vsel %vm1843_vm0, %v1813_v15, 0.0  ;;  %v1143_v29 = vmax.f32 %v119_v38, %v631_v54  ;;  %v1144_v14 = vmax.f32 %v120_v47, %v632_v3  ;;  %v1921_v18 = vrot.slane %v5384_v13, 1  ;;  %v125_v38 = vld [vmem:[%s7625_s0 + $0xa8] sm:$0x3]  ;;  %v127_v47 = vld [vmem:[%s7625_s0 + $0xac] sm:$0x3] }
  0x62   :  { %2098 = vrot.lane.b32.xlu0 %v5384_v13, %s4954_s20  ;;  %v1922_v24 = vrot.slane %v1865_v28, 1  ;;  %v2012_v33 = vrot.slane %v5384_v13, 2  ;;  %v2013_v57 = vrot.slane %v1865_v28, 2  ;;  %v1353_v23 = vmax.f32 %v5374_v4, %v1137_v11  ;;  %v133_v54 = vld [vmem:[%s7625_s0 + $0xb8] sm:$0x3] }
  0x63   :  { %2295 = vrot.lane.b32.xlu1 %v5271_v19, %s4958_s26  ;;  %v1354_v27 = vmax.f32 %v1130_v0, %v1138_v16  ;;  %v1355_v30 = vmax.f32 %v1131_v7, %v1139_v21  ;;  %v1356_v34 = vmax.f32 %v1132_v10, %v1140_v22  ;;  %v1357_v43 = vmax.f32 %v1133_v25, %v1141_v51  ;;  %v134_v7 = vld [vmem:[%s7625_s0 + $0xba] sm:$0x3]  ;;  %v135_v25 = vld [vmem:[%s7625_s0 + $0xbc] sm:$0x3] }
  0x64   :  { %v5414_v42 = vsel %vm1908_vm2, %v1921_v18, %v1922_v24  ;;  %v5417_v19 = vsel %vm7646_vm1, %v2012_v33, %v2013_v57  ;;  %v1358_v44 = vmax.f32 %v1134_v26, %v1142_v5  ;;  %v1359_v49 = vmax.f32 %v1135_v32, %v1143_v29 }
  0x65   :  { %v1360_v50 = vmax.f32 %v1136_v46, %v1144_v14  ;;  %v1640_v39 = vrot.slane %v1354_v27, 7  ;;  %v1642_v55 = vrot.slane %v1355_v30, 6  ;;  %v1644_v52 = vrot.slane %v1356_v34, 5  ;;  %v136_v46 = vld [vmem:[%s7625_s0 + $0xbe] sm:$0x3] }
  0x66   :  { %2297 = vrot.lane.b32.xlu0 %v5300_v59, %s4958_s26  ;;  %v1646_v6 = vrot.slane %v1357_v43, 4  ;;  %v1648_v56 = vrot.slane %v1358_v44, 3  ;;  %v633_v3 = vrot.slane %v5390_v17, 1  ;;  %v1650_v63 = vrot.slane %v1359_v49, 2 }
  0x67   :  { %2152 = vrot.lane.b32.xlu1 %v5300_v59, %s4956_s14  ;;  %v1641_v4 = vsel %vm1578_vm3, %v1640_v39, %v1353_v23  ;;  %v1652_v0 = vrot.slane %v1360_v50, 1  ;;  %v634_v10 = vrot.slane %v5399_v62, 1  ;;  %v635_v26 = vrot.slane %v123_v37, 1 }
  0x68   :  { %v1643_v58 = vsel %vm1581_vm4, %v1642_v55, %v1641_v4  ;;  %v636_v32 = vrot.slane %v124_v35, 1  ;;  %v637_v15 = vrot.slane %v125_v38, 1  ;;  %v638_v11 = vrot.slane %v126_v45, 1 }
  0x69   :  { %v1645_v59 = vsel %vm1584_vm5, %v1644_v52, %v1643_v58  ;;  %v639_v16 = vrot.slane %v127_v47, 1  ;;  %v640_v21 = vrot.slane %v128_v48, 1  ;;  %v641_v51 = vrot.slane %v129_v40, 1  ;;  %v140_v58 = vld [vmem:[%s7625_s0 + $0xc6] sm:$0x3] }
  0x6a   :  { %1962 = vrot.lane.b32.xlu0 %v5414_v42, %s4953_s4  ;;  %v1647_v22 = vsel %vm1587_vm6, %v1646_v6, %v1645_v59  ;;  %v642_v5 = vrot.slane %v130_v41, 1  ;;  %v643_v28 = vrot.slane %v131_v61, 1  ;;  %v644_v14 = vrot.slane %v132_v53, 1 }
  0x6b   :  { %2340 = vrot.lane.b32.xlu1 %v5274_v20, %s4959_s21  ;;  %v1649_v29 = vsel %vm1590_vm7, %v1648_v56, %v1647_v22  ;;  %v645_v18 = vrot.slane %v133_v54, 1  ;;  %v646_v24 = vrot.slane %v134_v7, 1  ;;  %v647_v57 = vrot.slane %v135_v25, 1 }
  0x6c   :  { %v1651_v33 = vsel %vm1593_vm8, %v1650_v63, %v1649_v29  ;;  %v648_v23 = vrot.slane %v136_v46, 1  ;;  %v1145_v27 = vmax.f32 %v5390_v17, %v633_v3  ;;  %v1146_v34 = vmax.f32 %v5399_v62, %v634_v10  ;;  %v148_v29 = vld [vmem:[%s7625_s0 + $0xd6] sm:$0x3] }
  0x6d   :  { %v1653_v30 = vsel %vm7641_vm9, %v1652_v0, %v1651_v33  ;;  %v1147_v43 = vmax.f32 %v123_v37, %v635_v26  ;;  %v1148_v44 = vmax.f32 %v124_v35, %v636_v32  ;;  %v1149_v49 = vmax.f32 %v125_v38, %v637_v15 }
  0x6e   :  { %2206 = vrot.lane.b32.xlu0 %v5303_v60, %s4957_s29  ;;  %v1814_v20 = vrot.slane %v1653_v30, 7  ;;  %v1150_v50 = vmax.f32 %v126_v45, %v638_v11  ;;  %v1151_v39 = vmax.f32 %v127_v47, %v639_v16  ;;  %v1152_v55 = vmax.f32 %v128_v48, %v640_v21  ;;  %v144_v11 = vld [vmem:[%s7625_s0 + $0xce] sm:$0x3]  ;;  %v145_v16 = vld [vmem:[%s7625_s0 + $0xd0] sm:$0x3] }
  0x6f   :  { %2154 = vrot.lane.b32.xlu1 %v5414_v42, %s4956_s14  ;;  %v1153_v52 = vmax.f32 %v129_v40, %v641_v51  ;;  %v1154_v6 = vmax.f32 %v130_v41, %v642_v5  ;;  %v1155_v17 = vmax.f32 %v131_v61, %v643_v28  ;;  %v1156_v37 = vmax.f32 %v132_v53, %v644_v14  ;;  %v137_v40 = vld [vmem:[%s7625_s0 + $0xc0] sm:$0x3]  ;;  %v138_v41 = vld [vmem:[%s7625_s0 + $0xc2] sm:$0x3]  ;;  %v139_v61 = vld [vmem:[%s7625_s0 + $0xc4] sm:$0x3] }
  0x70   :  { %v5476_v56 = vsel %vm1843_vm0, 0.0, %v1814_v20  ;;  %v1866_v62 = vsel %vm1843_vm0, %v1814_v20, 0.0  ;;  %v1157_v35 = vmax.f32 %v133_v54, %v645_v18  ;;  %v1158_v47 = vmax.f32 %v134_v7, %v646_v24  ;;  %v146_v5 = vld [vmem:[%s7625_s0 + $0xd2] sm:$0x3]  ;;  %v147_v28 = vld [vmem:[%s7625_s0 + $0xd4] sm:$0x3] }
  0x71   :  { %7653 = vst [vmem:[#allocation11_spill] sm:$0xff] %v5476_v56  ;;  %v1924_v3 = vrot.slane %v5476_v56, 1  ;;  %v1925_v4 = vrot.slane %v1866_v62, 1  ;;  %v2015_v38 = vrot.slane %v5476_v56, 2  ;;  %v2016_v45 = vrot.slane %v1866_v62, 2 }
  0x72   :  { %v1159_v63 = vmax.f32 %v135_v25, %v647_v57  ;;  %v1160_v0 = vmax.f32 %v136_v46, %v648_v23  ;;  %v1361_v48 = vmax.f32 %v1145_v27, %v1153_v52  ;;  %v1362_v7 = vmax.f32 %v1146_v34, %v1154_v6  ;;  %v141_v25 = vld [vmem:[%s7625_s0 + $0xc8] sm:$0x3]  ;;  %v143_v46 = vld [vmem:[%s7625_s0 + $0xcc] sm:$0x3]  ;;  %v149_v23 = vld [vmem:[%s7625_s0 + $0xd8] sm:$0x3] }
  0x73   :  { %2342 = vrot.lane.b32.xlu1 %v5303_v60, %s4959_s21  ;;  %v5493_v53 = vsel %vm1908_vm2, %v1924_v3, %v1925_v4  ;;  %v5496_v54 = vsel %vm7646_vm1, %v2015_v38, %v2016_v45  ;;  %v1363_v10 = vmax.f32 %v1147_v43, %v1155_v17  ;;  %v142_v60 = vld [vmem:[%s7625_s0 + $0xca] sm:$0x3]  ;;  %v1364_v26 = vmax.f32 %v1148_v44, %v1156_v37  ;;  %v150_v34 = vld [vmem:[%s7625_s0 + $0xda] sm:$0x3]  ;;  %v152_v6 = vld [vmem:[%s7625_s0 + $0xde] sm:$0x3] }
  0x74   :  { %1964 = vrot.lane.b32.xlu0 %v5493_v53, %s4953_s4  ;;  %v1365_v32 = vmax.f32 %v1149_v49, %v1157_v35  ;;  %v1366_v15 = vmax.f32 %v1150_v50, %v1158_v47  ;;  %v1367_v59 = vmax.f32 %v1151_v39, %v1159_v63  ;;  %v1368_v21 = vmax.f32 %v1152_v55, %v1160_v0  ;;  %v151_v49 = vld [vmem:[%s7625_s0 + $0xdc] sm:$0x3] }
  0x75   :  { %v1654_v22 = vrot.slane %v1362_v7, 7  ;;  %v1656_v51 = vrot.slane %v1363_v10, 6  ;;  %v649_v14 = vrot.slane %v137_v40, 1  ;;  %v1658_v18 = vrot.slane %v1364_v26, 5 }
  0x76   :  { %v1660_v24 = vrot.slane %v1365_v32, 4  ;;  %v1662_v33 = vrot.slane %v1366_v15, 3  ;;  %v1664_v57 = vrot.slane %v1367_v59, 2  ;;  %v1666_v30 = vrot.slane %v1368_v21, 1 }
  0x77   :  { %2053 = vrot.lane.b32.xlu1 %v5417_v19, %s4951_s12  ;;  %v1655_v27 = vsel %vm1578_vm3, %v1654_v22, %v1361_v48  ;;  %v650_v43 = vrot.slane %v138_v41, 1  ;;  %v651_v44 = vrot.slane %v139_v61, 1  ;;  %v652_v50 = vrot.slane %v140_v58, 1 }
  0x78   :  { %2208 = vrot.lane.b32.xlu0 %v5417_v19, %s4957_s29  ;;  %v1657_v20 = vsel %vm1581_vm4, %v1656_v51, %v1655_v27  ;;  %v653_v39 = vrot.slane %v141_v25, 1  ;;  %v654_v55 = vrot.slane %v142_v60, 1  ;;  %v655_v17 = vrot.slane %v143_v46, 1 }
  0x79   :  { %v1659_v52 = vsel %vm1584_vm5, %v1658_v18, %v1657_v20  ;;  %v656_v62 = vrot.slane %v144_v11, 1  ;;  %v657_v37 = vrot.slane %v145_v16, 1  ;;  %v658_v3 = vrot.slane %v146_v5, 1 }
  0x7a   :  { %v1661_v35 = vsel %vm1587_vm6, %v1660_v24, %v1659_v52  ;;  %v659_v4 = vrot.slane %v147_v28, 1  ;;  %v660_v38 = vrot.slane %v148_v29, 1  ;;  %v661_v47 = vrot.slane %v149_v23, 1 }
  0x7b   :  { %2254 = vrot.lane.b32.xlu1 %v5384_v13, %s4955_s23  ;;  %v1663_v45 = vsel %vm1590_vm7, %v1662_v33, %v1661_v35  ;;  %v662_v63 = vrot.slane %v150_v34, 1  ;;  %v663_v0 = vrot.slane %v151_v49, 1  ;;  %v664_v7 = vrot.slane %v152_v6, 1  ;;  %v162_v35 = vld [vmem:[%s7625_s0 + $0xf2] sm:$0x3] }
  0x7c   :  { %2055 = vrot.lane.b32.xlu0 %v5496_v54, %s4951_s12  ;;  %v1665_v48 = vsel %vm1593_vm8, %v1664_v57, %v1663_v45  ;;  %v1161_v10 = vmax.f32 %v137_v40, %v649_v14  ;;  %v1162_v26 = vmax.f32 %v138_v41, %v650_v43  ;;  %v1163_v15 = vmax.f32 %v139_v61, %v651_v44  ;;  %v154_v14 = vld [vmem:[%s7625_s0 + $0xe2] sm:$0x3]  ;;  %v155_v57 = vld [vmem:[%s7625_s0 + $0xe4] sm:$0x3]  ;;  %v163_v45 = vld [vmem:[%s7625_s0 + $0xf4] sm:$0x3] }
  0x7d   :  { %v1667_v32 = vsel %vm7641_vm9, %v1666_v30, %v1665_v48  ;;  %v1164_v59 = vmax.f32 %v140_v58, %v652_v50  ;;  %v1165_v21 = vmax.f32 %v141_v25, %v653_v39  ;;  %v1166_v51 = vmax.f32 %v142_v60, %v654_v55  ;;  %v158_v50 = vld [vmem:[%s7625_s0 + $0xea] sm:$0x3]  ;;  %v159_v39 = vld [vmem:[%s7625_s0 + $0xec] sm:$0x3] }
  0x7e   :  { %v1815_v22 = vrot.slane %v1667_v32, 7  ;;  %v1167_v18 = vmax.f32 %v143_v46, %v655_v17  ;;  %v1168_v24 = vmax.f32 %v144_v11, %v656_v62  ;;  %v1169_v33 = vmax.f32 %v145_v16, %v657_v37  ;;  %v5570_v11 = vld [vmem:[%s7625_s0 + $0xe0] sm:$0x3]  ;;  %v160_v62 = vld [vmem:[%s7625_s0 + $0xee] sm:$0x3] }
  0x7f   :  { %2100 = vrot.lane.b32.xlu1 %v5476_v56, %s4954_s20  ;;  %v1170_v27 = vmax.f32 %v146_v5, %v658_v3  ;;  %v1171_v20 = vmax.f32 %v147_v28, %v659_v4  ;;  %v1172_v52 = vmax.f32 %v148_v29, %v660_v38  ;;  %v1173_v61 = vmax.f32 %v149_v23, %v661_v47  ;;  %v156_v23 = vld [vmem:[%s7625_s0 + $0xe6] sm:$0x3]  ;;  %v161_v37 = vld [vmem:[%s7625_s0 + $0xf0] sm:$0x3]  ;;  %v164_v47 = vld [vmem:[%s7625_s0 + $0xf6] sm:$0x3] }
  0x80   :  { %2256 = vrot.lane.b32.xlu0 %v5476_v56, %s4955_s23  ;;  %v5559_v40 = vsel %vm1843_vm0, 0.0, %v1815_v22  ;;  %v5562_v41 = vsel %vm1843_vm0, %v1815_v22, 0.0  ;;  %v1174_v58 = vmax.f32 %v150_v34, %v662_v63  ;;  %v1175_v5 = vmax.f32 %v151_v49, %v663_v0  ;;  %v157_v49 = vld [vmem:[%s7625_s0 + $0xe8] sm:$0x3]  ;;  %v165_v63 = vld [vmem:[%s7625_s0 + $0xf8] sm:$0x3] }
  0x81   :  { %7654 = vst [vmem:[#allocation12_spill] sm:$0xff] %v5559_v40  ;;  %v1927_v25 = vrot.slane %v5559_v40, 1  ;;  %v1928_v60 = vrot.slane %v5562_v41, 1  ;;  %v2019_v16 = vrot.slane %v5562_v41, 2  ;;  %v1176_v28 = vmax.f32 %v152_v6, %v664_v7  ;;  %v166_v32 = vld [vmem:[%s7625_s0 + $0xfa] sm:$0x3] }
  0x82   :  { %v1370_v29 = vmax.f32 %v1162_v26, %v1170_v27  ;;  %v1369_v34 = vmax.f32 %v1161_v10, %v1169_v33  ;;  %v1371_v43 = vmax.f32 %v1163_v15, %v1171_v20  ;;  %v1372_v44 = vmax.f32 %v1164_v59, %v1172_v52  ;;  %v167_v59 = vld [vmem:[%s7625_s0 + $0xfc] sm:$0x3]  ;;  %v173_v41 = vld [vmem:[%s7625_s0 + $0x108] sm:$0x3] }
  0x83   :  { %2299 = vrot.lane.b32.xlu1 %v5414_v42, %s4958_s26  ;;  %v5585_v30 = vsel %vm1908_vm2, %v1927_v25, %v1928_v60  ;;  %v1373_v42 = vmax.f32 %v1165_v21, %v1173_v61  ;;  %v1374_v55 = vmax.f32 %v1166_v51, %v1174_v58  ;;  %v1375_v6 = vmax.f32 %v1167_v18, %v1175_v5 }
  0x84   :  { %2102 = vrot.lane.b32.xlu0 %v5559_v40, %s4954_s20  ;;  %v1376_v17 = vmax.f32 %v1168_v24, %v1176_v28  ;;  %v1668_v3 = vrot.slane %v1370_v29, 7  ;;  %v1670_v4 = vrot.slane %v1371_v43, 6  ;;  %v1672_v38 = vrot.slane %v1372_v44, 5  ;;  %v168_v24 = vld [vmem:[%s7625_s0 + $0xfe] sm:$0x3] }
  0x85   :  { %v665_v0 = vrot.slane %v5570_v11, 1  ;;  %v1674_v48 = vrot.slane %v1373_v42, 4  ;;  %v1676_v7 = vrot.slane %v1374_v55, 3  ;;  %v1678_v10 = vrot.slane %v1375_v6, 2 }
  0x86   :  { %v1680_v26 = vrot.slane %v1376_v17, 1  ;;  %v1669_v15 = vsel %vm1578_vm3, %v1668_v3, %v1369_v34  ;;  %v666_v21 = vrot.slane %v154_v14, 1  ;;  %v667_v22 = vrot.slane %v155_v57, 1 }
  0x87   :  { %2156 = vrot.lane.b32.xlu1 %v5493_v53, %s4956_s14  ;;  %v668_v51 = vrot.slane %v156_v23, 1  ;;  %v1671_v18 = vsel %vm1581_vm4, %v1670_v4, %v1669_v15  ;;  %v669_v33 = vrot.slane %v157_v49, 1  ;;  %v670_v27 = vrot.slane %v158_v50, 1 }
  0x88   :  { %2301 = vrot.lane.b32.xlu0 %v5493_v53, %s4958_s26  ;;  %v671_v20 = vrot.slane %v159_v39, 1  ;;  %v1673_v52 = vsel %vm1584_vm5, %v1672_v38, %v1671_v18  ;;  %v672_v61 = vrot.slane %v160_v62, 1  ;;  %v673_v58 = vrot.slane %v161_v37, 1 }
  0x89   :  { %v674_v25 = vrot.slane %v162_v35, 1  ;;  %v1675_v60 = vsel %vm1587_vm6, %v1674_v48, %v1673_v52  ;;  %v675_v5 = vrot.slane %v163_v45, 1  ;;  %v676_v28 = vrot.slane %v164_v47, 1 }
  0x8a   :  { %v677_v29 = vrot.slane %v165_v63, 1  ;;  %v1677_v53 = vsel %vm1590_vm7, %v1676_v7, %v1675_v60  ;;  %v678_v34 = vrot.slane %v166_v32, 1  ;;  %v679_v43 = vrot.slane %v167_v59, 1 }
  0x8b   :  { %2344 = vrot.lane.b32.xlu1 %v5417_v19, %s4959_s21  ;;  %v680_v44 = vrot.slane %v168_v24, 1  ;;  %v1679_v42 = vsel %vm1593_vm8, %v1678_v10, %v1677_v53  ;;  %v1177_v55 = vmax.f32 %v5570_v11, %v665_v0  ;;  %v1178_v6 = vmax.f32 %v154_v14, %v666_v21  ;;  %v170_v0 = vld [vmem:[%s7625_s0 + $0x102] sm:$0x3]  ;;  %v179_v53 = vld [vmem:[%s7625_s0 + $0x114] sm:$0x3] }
  0x8c   :  { %1966 = vrot.lane.b32.xlu0 %v5585_v30, %s4953_s4  ;;  %v1179_v17 = vmax.f32 %v155_v57, %v667_v22  ;;  %v1681_v3 = vsel %vm7641_vm9, %v1680_v26, %v1679_v42  ;;  %v1180_v4 = vmax.f32 %v156_v23, %v668_v51  ;;  %v1181_v38 = vmax.f32 %v157_v49, %v669_v33  ;;  %v171_v51 = vld [vmem:[%s7625_s0 + $0x104] sm:$0x3]  ;;  %v180_v42 = vld [vmem:[%s7625_s0 + $0x116] sm:$0x3] }
  0x8d   :  { %v1182_v48 = vmax.f32 %v158_v50, %v670_v27  ;;  %v1816_v19 = vrot.slane %v1681_v3, 7  ;;  %v1183_v15 = vmax.f32 %v159_v39, %v671_v20  ;;  %v1184_v7 = vmax.f32 %v160_v62, %v672_v61  ;;  %v174_v27 = vld [vmem:[%s7625_s0 + $0x10a] sm:$0x3]  ;;  %v175_v20 = vld [vmem:[%s7625_s0 + $0x10c] sm:$0x3] }
  0x8e   :  { %v1185_v18 = vmax.f32 %v161_v37, %v673_v58  ;;  %v1186_v52 = vmax.f32 %v162_v35, %v674_v25  ;;  %v1187_v60 = vmax.f32 %v163_v45, %v675_v5  ;;  %v1188_v46 = vmax.f32 %v164_v47, %v676_v28  ;;  %v176_v61 = vld [vmem:[%s7625_s0 + $0x10e] sm:$0x3]  ;;  %v177_v28 = vld [vmem:[%s7625_s0 + $0x110] sm:$0x3] }
  0x8f   :  { %2158 = vrot.lane.b32.xlu1 %v5585_v30, %s4956_s14  ;;  %v1189_v10 = vmax.f32 %v165_v63, %v677_v29  ;;  %v5647_v11 = vsel %vm1843_vm0, 0.0, %v1816_v19  ;;  %v1868_v14 = vsel %vm1843_vm0, %v1816_v19, 0.0  ;;  %v1190_v57 = vmax.f32 %v166_v32, %v678_v34  ;;  %v169_v63 = vld [vmem:[%s7625_s0 + $0x100] sm:$0x3]  ;;  %v178_v29 = vld [vmem:[%s7625_s0 + $0x112] sm:$0x3] }
  0x90   :  { %2210 = vrot.lane.b32.xlu0 %v5496_v54, %s4957_s29  ;;  %7655 = vst [vmem:[#allocation13_spill] sm:$0xff] %v5647_v11  ;;  %v1191_v23 = vmax.f32 %v167_v59, %v679_v43  ;;  %v1930_v49 = vrot.slane %v5647_v11, 1  ;;  %v1931_v50 = vrot.slane %v1868_v14, 1  ;;  %v2021_v39 = vrot.slane %v5647_v11, 2 }
  0x91   :  { %v2022_v62 = vrot.slane %v1868_v14, 2  ;;  %v1192_v37 = vmax.f32 %v168_v24, %v680_v44  ;;  %v1377_v35 = vmax.f32 %v1177_v55, %v1185_v18  ;;  %v1378_v45 = vmax.f32 %v1178_v6, %v1186_v52  ;;  %v181_v55 = vld [vmem:[%s7625_s0 + $0x118] sm:$0x3] }
  0x92   :  { %v1379_v47 = vmax.f32 %v1179_v17, %v1187_v60  ;;  %v7656_v26 = vrot.slane %v5559_v40, 2  ;;  %v5668_v59 = vsel %vm1908_vm2, %v1930_v49, %v1931_v50  ;;  %v1380_v21 = vmax.f32 %v1180_v4, %v1188_v46 }
  0x93   :  { %2346 = vrot.lane.b32.xlu1 %v5496_v54, %s4959_s21  ;;  %v1381_v22 = vmax.f32 %v1181_v38, %v1189_v10  ;;  %v172_v54 = vld [vmem:[%s7625_s0 + $0x106] sm:$0x3]  ;;  %v1383_v24 = vmax.f32 %v1183_v15, %v1191_v23  ;;  %v1384_v33 = vmax.f32 %v1184_v7, %v1192_v37  ;;  %v1682_v46 = vrot.slane %v1378_v45, 7  ;;  %v182_v38 = vld [vmem:[%s7625_s0 + $0x11a] sm:$0x3] }
  0x94   :  { %v5665_v32 = vsel %vm7646_vm1, %v7656_v26, %v2019_v16  ;;  %1968 = vrot.lane.b32.xlu0 %v5668_v59, %s4953_s4  ;;  %v1382_v16 = vmax.f32 %v1182_v48, %v1190_v57  ;;  %v1684_v58 = vrot.slane %v1379_v47, 6  ;;  %v1686_v25 = vrot.slane %v1380_v21, 5  ;;  %v183_v15 = vld [vmem:[%s7625_s0 + $0x11c] sm:$0x3]  ;;  %v184_v10 = vld [vmem:[%s7625_s0 + $0x11e] sm:$0x3] }
  0x95   :  { %v1688_v5 = vrot.slane %v1381_v22, 4  ;;  %v5700_v34 = vsel %vm7646_vm1, %v2021_v39, %v2022_v62  ;;  %v1683_v43 = vsel %vm1578_vm3, %v1682_v46, %v1377_v35  ;;  %v681_v6 = vrot.slane %v169_v63, 1 }
  0x96   :  { %v1690_v44 = vrot.slane %v1382_v16, 3  ;;  %v1685_v17 = vsel %vm1581_vm4, %v1684_v58, %v1683_v43  ;;  %v1692_v3 = vrot.slane %v1383_v24, 2  ;;  %v1694_v4 = vrot.slane %v1384_v33, 1 }
  0x97   :  { %2057 = vrot.lane.b32.xlu1 %v5665_v32, %s4951_s12  ;;  %v682_v48 = vrot.slane %v170_v0, 1  ;;  %v1687_v19 = vsel %vm1584_vm5, %v1686_v25, %v1685_v17  ;;  %v683_v7 = vrot.slane %v171_v51, 1  ;;  %v684_v18 = vrot.slane %v172_v54, 1 }
  0x98   :  { %2212 = vrot.lane.b32.xlu0 %v5665_v32, %s4957_s29  ;;  %v685_v52 = vrot.slane %v173_v41, 1  ;;  %v1689_v60 = vsel %vm1587_vm6, %v1688_v5, %v1687_v19  ;;  %v686_v14 = vrot.slane %v174_v27, 1  ;;  %v687_v57 = vrot.slane %v175_v20, 1 }
  0x99   :  { %v688_v23 = vrot.slane %v176_v61, 1  ;;  %v1691_v49 = vsel %vm1590_vm7, %v1690_v44, %v1689_v60  ;;  %v689_v50 = vrot.slane %v177_v28, 1  ;;  %v690_v39 = vrot.slane %v178_v29, 1 }
  0x9a   :  { %v691_v62 = vrot.slane %v179_v53, 1  ;;  %v1693_v37 = vsel %vm1593_vm8, %v1692_v3, %v1691_v49  ;;  %v692_v35 = vrot.slane %v180_v42, 1  ;;  %v693_v45 = vrot.slane %v181_v55, 1  ;;  %v189_v49 = vld [vmem:[%s7625_s0 + $0x128] sm:$0x3] }
  0x9b   :  { %2258 = vrot.lane.b32.xlu1 %v5559_v40, %s4955_s23  ;;  %v694_v47 = vrot.slane %v182_v38, 1  ;;  %v1695_v26 = vsel %vm7641_vm9, %v1694_v4, %v1693_v37  ;;  %v695_v21 = vrot.slane %v183_v15, 1  ;;  %v696_v22 = vrot.slane %v184_v10, 1 }
  0x9c   :  { %2059 = vrot.lane.b32.xlu0 %v5700_v34, %s4951_s12  ;;  %v1193_v16 = vmax.f32 %v169_v63, %v681_v6  ;;  %v1817_v24 = vrot.slane %v1695_v26, 7  ;;  %v1194_v33 = vmax.f32 %v170_v0, %v682_v48  ;;  %v1195_v46 = vmax.f32 %v171_v51, %v683_v7  ;;  %v193_v26 = vld [vmem:[%s7625_s0 + $0x130] sm:$0x3] }
  0x9d   :  { %v1196_v58 = vmax.f32 %v172_v54, %v684_v18  ;;  %v1197_v25 = vmax.f32 %v173_v41, %v685_v52  ;;  %v1198_v5 = vmax.f32 %v174_v27, %v686_v14  ;;  %v1201_v43 = vmax.f32 %v177_v28, %v689_v50  ;;  %v185_v52 = vld [vmem:[%s7625_s0 + $0x120] sm:$0x3]  ;;  %v190_v50 = vld [vmem:[%s7625_s0 + $0x12a] sm:$0x3] }
  0x9e   :  { %v1202_v44 = vmax.f32 %v178_v29, %v690_v39  ;;  %v1199_v17 = vmax.f32 %v175_v20, %v687_v57  ;;  %v1200_v3 = vmax.f32 %v176_v61, %v688_v23  ;;  %v1203_v19 = vmax.f32 %v179_v53, %v691_v62  ;;  %v188_v23 = vld [vmem:[%s7625_s0 + $0x126] sm:$0x3] }
  0x9f   :  { %2104 = vrot.lane.b32.xlu1 %v5647_v11, %s4954_s20  ;;  %v1204_v60 = vmax.f32 %v180_v42, %v692_v35  ;;  %v5737_v63 = vsel %vm1843_vm0, 0.0, %v1817_v24  ;;  %v1869_v0 = vsel %vm1843_vm0, %v1817_v24, 0.0  ;;  %v1205_v51 = vmax.f32 %v181_v55, %v693_v45  ;;  %v191_v45 = vld [vmem:[%s7625_s0 + $0x12c] sm:$0x3]  ;;  %v195_v24 = vld [vmem:[%s7625_s0 + $0x134] sm:$0x3] }
  0xa0   :  { %2260 = vrot.lane.b32.xlu0 %v5647_v11, %s4955_s23  ;;  %v1206_v54 = vmax.f32 %v182_v38, %v694_v47  ;;  %v1207_v41 = vmax.f32 %v183_v15, %v695_v21  ;;  %v1208_v27 = vmax.f32 %v184_v10, %v696_v22  ;;  %v1385_v28 = vmax.f32 %v1193_v16, %v1201_v43  ;;  %v186_v10 = vld [vmem:[%s7625_s0 + $0x122] sm:$0x3]  ;;  %v192_v47 = vld [vmem:[%s7625_s0 + $0x12e] sm:$0x3]  ;;  %v194_v16 = vld [vmem:[%s7625_s0 + $0x132] sm:$0x3] }
  0xa1   :  { %v1386_v29 = vmax.f32 %v1194_v33, %v1202_v44  ;;  %v2142_v6 = vrot.slane %v5737_v63, 1  ;;  %v1387_v20 = vmax.f32 %v1195_v46, %v1203_v19  ;;  %v1388_v61 = vmax.f32 %v1196_v58, %v1204_v60  ;;  %v199_v44 = vld [vmem:[%s7625_s0 + $0x13c] sm:$0x3] }
  0xa2   :  { %v1389_v53 = vmax.f32 %v1197_v25, %v1205_v51  ;;  %v1390_v42 = vmax.f32 %v1198_v5, %v1206_v54  ;;  %v1391_v4 = vmax.f32 %v1199_v17, %v1207_v41  ;;  %v1392_v48 = vmax.f32 %v1200_v3, %v1208_v27  ;;  %v196_v25 = vld [vmem:[%s7625_s0 + $0x136] sm:$0x3]  ;;  %v197_v5 = vld [vmem:[%s7625_s0 + $0x138] sm:$0x3] }
  0xa3   :  { %2303 = vrot.lane.b32.xlu1 %v5585_v30, %s4958_s26  ;;  %v1696_v7 = vrot.slane %v1386_v29, 7  ;;  %v2143_v55 = vrot.slane %v1869_v0, 1  ;;  %v1698_v38 = vrot.slane %v1387_v20, 6  ;;  %v1700_v15 = vrot.slane %v1388_v61, 5  ;;  %v187_v30 = vld [vmem:[%s7625_s0 + $0x124] sm:$0x3]  ;;  %v5815_v61 = vpop.permute.xlu0 %1954 }
  0xa4   :  { %2106 = vrot.lane.b32.xlu0 %v5737_v63, %s4954_s20  ;;  %v1702_v18 = vrot.slane %v1389_v53, 4  ;;  %v1704_v57 = vrot.slane %v1390_v42, 3  ;;  %v1706_v62 = vrot.slane %v1391_v4, 2  ;;  %v2196_v37 = vrot.slane %v5737_v63, 2 }
  0xa5   :  { %v1697_v14 = vsel %vm1578_vm3, %v1696_v7, %v1385_v28  ;;  %v2197_v35 = vrot.slane %v1869_v0, 2  ;;  %v1708_v22 = vrot.slane %v1392_v48, 1  ;;  %v5787_v33 = vsel %vm1908_vm2, %v2142_v6, %v2143_v55  ;;  %v200_v0 = vld [vmem:[%s7625_s0 + $0x13e] sm:$0x3] }
  0xa6   :  { %v1699_v39 = vsel %vm1581_vm4, %v1698_v38, %v1697_v14  ;;  %v697_v17 = vrot.slane %v185_v52, 1  ;;  %v698_v3 = vrot.slane %v186_v10, 1  ;;  %v699_v19 = vrot.slane %v187_v30, 1 }
  0xa7   :  { %2160 = vrot.lane.b32.xlu1 %v5668_v59, %s4956_s14  ;;  %v1701_v21 = vsel %vm1584_vm5, %v1700_v15, %v1699_v39  ;;  %v5791_v58 = vsel %vm7646_vm1, %v2196_v37, %v2197_v35  ;;  %v700_v51 = vrot.slane %v188_v23, 1  ;;  %v701_v54 = vrot.slane %v189_v49, 1 }
  0xa8   :  { %2305 = vrot.lane.b32.xlu0 %v5668_v59, %s4958_s26  ;;  %v1703_v46 = vsel %vm1587_vm6, %v1702_v18, %v1701_v21  ;;  %v198_v59 = vld [vmem:[%s7625_s0 + $0x13a] sm:$0x3]  ;;  %v702_v41 = vrot.slane %v190_v50, 1  ;;  %v703_v28 = vrot.slane %v191_v45, 1  ;;  %v704_v29 = vrot.slane %v192_v47, 1 }
  0xa9   :  { %v1705_v43 = vsel %vm1590_vm7, %v1704_v57, %v1703_v46  ;;  %v705_v6 = vrot.slane %v193_v26, 1  ;;  %v706_v53 = vrot.slane %v194_v16, 1  ;;  %v707_v42 = vrot.slane %v195_v24, 1 }
  0xaa   :  { %v1707_v60 = vsel %vm1593_vm8, %v1706_v62, %v1705_v43  ;;  %v708_v4 = vrot.slane %v196_v25, 1  ;;  %v709_v48 = vrot.slane %v197_v5, 1  ;;  %v710_v7 = vrot.slane %v198_v59, 1  ;;  %v5824_v62 = vpop.permute.xlu1 %2045 }
  0xab   :  { %2348 = vrot.lane.b32.xlu1 %v5665_v32, %s4959_s21  ;;  %v1709_v27 = vsel %vm7641_vm9, %v1708_v22, %v1707_v60  ;;  %v711_v55 = vrot.slane %v199_v44, 1  ;;  %v712_v38 = vrot.slane %v200_v0, 1  ;;  %v1209_v18 = vmax.f32 %v185_v52, %v697_v17 }
  0xac   :  { %2162 = vrot.lane.b32.xlu0 %v5787_v33, %s4956_s14  ;;  %v1818_v20 = vrot.slane %v1709_v27, 7  ;;  %v1210_v14 = vmax.f32 %v186_v10, %v698_v3  ;;  %v1211_v21 = vmax.f32 %v187_v30, %v699_v19  ;;  %v1212_v22 = vmax.f32 %v188_v23, %v700_v51  ;;  %v205_v51 = vld [vmem:[%s7625_s0 + $0x148] sm:$0x3] }
  0xad   :  { %v1213_v46 = vmax.f32 %v189_v49, %v701_v54  ;;  %v1214_v43 = vmax.f32 %v190_v50, %v702_v41  ;;  %v1215_v10 = vmax.f32 %v191_v45, %v703_v28  ;;  %v1216_v17 = vmax.f32 %v192_v47, %v704_v29  ;;  %v206_v29 = vld [vmem:[%s7625_s0 + $0x14a] sm:$0x3] }
  0xae   :  { %v5818_v32 = vsel %vm1843_vm0, 0.0, %v1818_v20  ;;  %v1870_v15 = vsel %vm1843_vm0, %v1818_v20, 0.0  ;;  %v1217_v3 = vmax.f32 %v193_v26, %v705_v6  ;;  %v1218_v27 = vmax.f32 %v194_v16, %v706_v53  ;;  %v201_v16 = vld [vmem:[%s7625_s0 + $0x140] sm:$0x3]  ;;  %v5866_v6 = vld [vmem:[%s7625_s0 + $0x14c] sm:$0x3] }
  0xaf   :  { %7657 = vst [vmem:[#allocation14_spill] sm:$0xff] %v5818_v32  ;;  %2214 = vrot.lane.b32.xlu1 %v5700_v34, %s4957_s29  ;;  %v1933_v57 = vrot.slane %v5818_v32, 1  ;;  %v1934_v39 = vrot.slane %v1870_v15, 1  ;;  %v2024_v37 = vrot.slane %v5818_v32, 2  ;;  %v2025_v35 = vrot.slane %v1870_v15, 2 }
  0xb0   :  { %2350 = vrot.lane.b32.xlu0 %v5700_v34, %s4959_s21  ;;  %v1219_v20 = vmax.f32 %v195_v24, %v707_v42  ;;  %v1220_v1 = vmax.f32 %v196_v25, %v708_v4  ;;  %v1221_v11 = vmax.f32 %v197_v5, %v709_v48  ;;  %v1222_v30 = vmax.f32 %v198_v59, %v710_v7  ;;  %v202_v24 = vld [vmem:[%s7625_s0 + $0x142] sm:$0x3]  ;;  %v5847_v25 = vpop.permute.xlu1 %2094  ;;  %v5871_v53 = vld [vmem:[%s7625_s0 + $0x14e] sm:$0x3]  ;;  %v209_v4 = vld [vmem:[%s7625_s0 + $0x150] sm:$0x3] }
  0xb1   :  { %v5830_v52 = vsel %vm1908_vm2, %v1933_v57, %v1934_v39  ;;  %v5837_v34 = vsel %vm7646_vm1, %v2024_v37, %v2025_v35  ;;  %v1223_v23 = vmax.f32 %v199_v44, %v711_v55  ;;  %v1224_v49 = vmax.f32 %v200_v0, %v712_v38  ;;  %v203_v0 = vld [vmem:[%s7625_s0 + $0x144] sm:$0x3]  ;;  %v210_v48 = vld [vmem:[%s7625_s0 + $0x152] sm:$0x3]  ;;  %v211_v7 = vld [vmem:[%s7625_s0 + $0x154] sm:$0x3] }
  0xb2   :  { %v5832_v60 = vpop.permute.xlu0 %2092  ;;  %v1393_v50 = vmax.f32 %v1209_v18, %v1217_v3  ;;  %v1394_v45 = vmax.f32 %v1210_v14, %v1218_v27  ;;  %v1395_v47 = vmax.f32 %v1211_v21, %v1219_v20  ;;  %v1396_v26 = vmax.f32 %v1212_v22, %v1220_v1  ;;  %v204_v1 = vld [vmem:[%s7625_s0 + $0x146] sm:$0x3]  ;;  %v212_v15 = vld [vmem:[%s7625_s0 + $0x156] sm:$0x3]  ;;  %v213_v18 = vld [vmem:[%s7625_s0 + $0x158] sm:$0x3] }
  0xb3   :  { %1970 = vrot.lane.b32.xlu1 %v5830_v52, %s4953_s4  ;;  %v1397_v5 = vmax.f32 %v1213_v46, %v1221_v11  ;;  %v1398_v59 = vmax.f32 %v1214_v43, %v1222_v30  ;;  %v1399_v44 = vmax.f32 %v1215_v10, %v1223_v23  ;;  %v1400_v19 = vmax.f32 %v1216_v17, %v1224_v49  ;;  %v214_v39 = vld [vmem:[%s7625_s0 + $0x15a] sm:$0x3]  ;;  %v215_v46 = vld [vmem:[%s7625_s0 + $0x15c] sm:$0x3]  ;;  %v216_v20 = vld [vmem:[%s7625_s0 + $0x15e] sm:$0x3] }
  0xb4   :  { %2216 = vrot.lane.b32.xlu0 %v5791_v58, %s4957_s29  ;;  %v1710_v41 = vrot.slane %v1394_v45, 7  ;;  %v1712_v28 = vrot.slane %v1395_v47, 6  ;;  %v1714_v11 = vrot.slane %v1396_v26, 5  ;;  %vm7649_vm10 = vcmask 31744   ;;  %v5905_v3 = vpop.permute.xlu1 %2250 }
  0xb5   :  { %v1716_v42 = vrot.slane %v1397_v5, 4  ;;  %v1718_v38 = vrot.slane %v1398_v59, 3  ;;  %v1722_v57 = vrot.slane %v1400_v19, 1  ;;  %v713_v37 = vrot.slane %v201_v16, 1 }
  0xb6   :  { %v5858_v54 = vpop.permute.xlu0 %1956  ;;  %v1711_v55 = vsel %vm1578_vm3, %v1710_v41, %v1393_v50  ;;  %v714_v35 = vrot.slane %v202_v24, 1  ;;  %v715_v43 = vrot.slane %v203_v0, 1  ;;  %v716_v10 = vrot.slane %v204_v1, 1 }
  0xb7   :  { %2262 = vrot.lane.b32.xlu1 %v5737_v63, %s4955_s23  ;;  %v1720_v63 = vrot.slane %v1399_v44, 2  ;;  %v1713_v14 = vsel %vm1581_vm4, %v1712_v28, %v1711_v55  ;;  %v717_v17 = vrot.slane %v205_v51, 1  ;;  %v718_v30 = vrot.slane %v206_v29, 1 }
  0xb8   :  { %2061 = vrot.lane.b32.xlu0 %v5837_v34, %s4951_s12  ;;  %v1715_v22 = vsel %vm1584_vm5, %v1714_v11, %v1713_v14  ;;  %v719_v23 = vrot.slane %v5866_v6, 1  ;;  %v720_v49 = vrot.slane %v5871_v53, 1  ;;  %v721_v45 = vrot.slane %v209_v4, 1 }
  0xb9   :  { %v1717_v27 = vsel %vm1587_vm6, %v1716_v42, %v1715_v22  ;;  %v722_v47 = vrot.slane %v210_v48, 1  ;;  %v723_v26 = vrot.slane %v211_v7, 1  ;;  %v724_v59 = vrot.slane %v212_v15, 1 }
  0xba   :  { %v5897_v21 = vpop.permute.xlu0 %2148  ;;  %v1719_v50 = vsel %vm1590_vm7, %v1718_v38, %v1717_v27  ;;  %v725_v44 = vrot.slane %v213_v18, 1  ;;  %v726_v19 = vrot.slane %v214_v39, 1  ;;  %v727_v11 = vrot.slane %v215_v46, 1 }
  0xbb   :  { %2108 = vrot.lane.b32.xlu1 %v5818_v32, %s4954_s20  ;;  %v1721_v5 = vsel %vm1593_vm8, %v1720_v63, %v1719_v50  ;;  %v728_v42 = vrot.slane %v216_v20, 1  ;;  %v1225_v55 = vmax.f32 %v201_v16, %v713_v37  ;;  %v1226_v38 = vmax.f32 %v202_v24, %v714_v35 }
  0xbc   :  { %2264 = vrot.lane.b32.xlu0 %v5020_v2, %s4955_s23  ;;  %v1723_v41 = vsel %vm7641_vm9, %v1722_v57, %v1721_v5  ;;  %v1227_v22 = vmax.f32 %v203_v0, %v715_v43  ;;  %v1228_v27 = vmax.f32 %v204_v1, %v716_v10  ;;  %v1229_v32 = vmax.f32 %v205_v51, %v717_v17 }
  0xbd   :  { %v1819_v14 = vrot.slane %v1723_v41, 7  ;;  %v1230_v40 = vmax.f32 %v206_v29, %v718_v30  ;;  %v1233_v63 = vmax.f32 %v209_v4, %v721_v45  ;;  %v1234_v50 = vmax.f32 %v210_v48, %v722_v47 }
  0xbe   :  { %v5918_v28 = vpop.permute.xlu0 %2150  ;;  %v1235_v16 = vmax.f32 %v211_v7, %v723_v26  ;;  %v1236_v37 = vmax.f32 %v212_v15, %v724_v59  ;;  %v1231_v0 = vmax.f32 %v5866_v6, %v719_v23  ;;  %v1232_v1 = vmax.f32 %v5871_v53, %v720_v49  ;;  %v2522_v49 = vld [vmem:[%s7626_s1 + $0x18] sm:$0xff] }
  0xbf   :  { %2307 = vrot.lane.b32.xlu1 %v5787_v33, %s4958_s26  ;;  %v5925_v57 = vsel %vm1843_vm0, 0.0, %v1819_v14  ;;  %v5928_v5 = vsel %vm1843_vm0, %v1819_v14, 0.0  ;;  %v1237_v51 = vmax.f32 %v213_v18, %v725_v44  ;;  %v1238_v29 = vmax.f32 %v214_v39, %v726_v19  ;;  %v5974_v19 = vld [vmem:[%s7625_s0 + $0x160] sm:$0x3]  ;;  %v5986_v14 = vld [vmem:[%s7625_s0 + $0x162] sm:$0x3] }
  0xc0   :  { %2110 = vrot.lane.b32.xlu0 %v5925_v57, %s4954_s20  ;;  %v1936_v33 = vrot.slane %v5925_v57, 1  ;;  %v1937_v24 = vrot.slane %v5928_v5, 1  ;;  %v1239_v4 = vmax.f32 %v215_v46, %v727_v11  ;;  %v1240_v48 = vmax.f32 %v216_v20, %v728_v42 }
  0xc1   :  { %v5922_v56 = vpop.permute.xlu1 %2096  ;;  %v2386_v7 = vsel %vm7649_vm10, %v5020_v2, %v5815_v61  ;;  %vm7648_vm11 = vcmask 64512   ;;  %v1402_v35 = vmax.f32 %v1226_v38, %v1234_v50  ;;  %v1401_v10 = vmax.f32 %v1225_v55, %v1233_v63  ;;  %v5991_v38 = vld [vmem:[%s7625_s0 + $0x164] sm:$0x3] }
  0xc2   :  { %v1403_v17 = vmax.f32 %v1227_v22, %v1235_v16  ;;  %v1404_v6 = vmax.f32 %v1228_v27, %v1236_v37  ;;  %v1405_v30 = vmax.f32 %v1229_v32, %v1237_v51  ;;  %v5947_v53 = vsel %vm1908_vm2, %v1936_v33, %v1937_v24  ;;  %v2519_v32 = vld [vmem:[%s7626_s1] sm:$0xff]  ;;  %v6011_v16 = vld [vmem:[%s7625_s0 + $0x16a] sm:$0x3]  ;;  %v6022_v24 = vld [vmem:[%s7625_s0 + $0x16c] sm:$0x3] }
  0xc3   :  { %2164 = vrot.lane.b32.xlu1 %v5830_v52, %s4956_s14  ;;  %v2387_v52 = vsel %vm7649_vm10, %v5208_v31, %v5858_v54  ;;  %v1406_v18 = vmax.f32 %v1230_v40, %v1238_v29  ;;  %v1407_v2 = vmax.f32 %v1231_v0, %v1239_v4  ;;  %v1408_v61 = vmax.f32 %v1232_v1, %v1240_v48  ;;  %v2520_v31 = vld [vmem:[%s7626_s1 + $0x8] sm:$0xff]  ;;  %v225_v48 = vld [vmem:[%s7625_s0 + $0x170] sm:$0x3] }
  0xc4   :  { %v1961_v15 = vpop.permute.xlu0 %1960  ;;  %2309 = vrot.lane.b32.xlu0 %v5030_v9, %s4958_s26  ;;  %v1724_v39 = vrot.slane %v1402_v35, 7  ;;  %v1726_v46 = vrot.slane %v1403_v17, 6  ;;  %v1728_v20 = vrot.slane %v1404_v6, 5  ;;  %vm7640_vm12 = vcmask 97280   ;;  %v6027_v0 = vld [vmem:[%s7625_s0 + $0x16e] sm:$0x3] }
  0xc5   :  { %v2048_v43 = vpop.permute.xlu1 %2047  ;;  %vm7639_vm13 = vcmask 130048   ;;  %v1730_v23 = vrot.slane %v1405_v30, 4  ;;  %v2027_v47 = vrot.slane %v5925_v57, 2  ;;  %v2028_v26 = vrot.slane %v5928_v5, 2  ;;  %v6006_v5 = vld [vmem:[%s7625_s0 + $0x168] sm:$0x3] }
  0xc6   :  { %v2403_v40 = vsel %vm7648_vm11, %v2387_v52, %v2048_v43  ;;  %v1725_v59 = vsel %vm1578_vm3, %v1724_v39, %v1401_v10  ;;  %v1732_v44 = vrot.slane %v1406_v18, 3  ;;  %v5978_v41 = vsel %vm7648_vm11, %v2386_v7, %v5824_v62  ;;  %v5996_v62 = vld [vmem:[%s7625_s0 + $0x166] sm:$0x3]  ;;  %v226_v7 = vld [vmem:[%s7625_s0 + $0x172] sm:$0x3] }
  0xc7   :  { %2352 = vrot.lane.b32.xlu1 %v5791_v58, %s4959_s21  ;;  %v2521_v58 = vld [vmem:[%s7626_s1 + $0x10] sm:$0xff]  ;;  %v1727_v11 = vsel %vm1581_vm4, %v1726_v46, %v1725_v59  ;;  %v1734_v42 = vrot.slane %v1407_v2, 2  ;;  %v4701_v55 = vpack.c.bf16 %v2520_v31, %v2519_v32  ;;  %v2419_v22 = vsel %vm7640_vm12, %v2403_v40, %v5847_v25  ;;  %v229_v43 = vld [vmem:[%s7625_s0 + $0x178] sm:$0x3]  ;;  %v232_v32 = vld [vmem:[%s7625_s0 + $0x17e] sm:$0x3] }
  0xc8   :  { %v5958_v54 = vpop.permute.xlu0 %2204  ;;  %1972 = vrot.lane.b32.xlu0 %v5947_v53, %s4953_s4  ;;  %v1729_v27 = vsel %vm1584_vm5, %v1728_v20, %v1727_v11  ;;  %v1736_v63 = vrot.slane %v1408_v61, 1  ;;  %v4705_v50 = vpack.c.bf16 %v2522_v49, %v2521_v58  ;;  %v2418_v25 = vsel %vm7640_vm12, %v5978_v41, %v5832_v60  ;;  %v228_v35 = vld [vmem:[%s7625_s0 + $0x176] sm:$0x3]  ;;  %v231_v61 = vld [vmem:[%s7625_s0 + $0x17c] sm:$0x3] }
  0xc9   :  { %v5966_v45 = vpop.permute.xlu1 %1958  ;;  %vm7647_vm14 = vcmask 162816   ;;  %v1731_v33 = vsel %vm1587_vm6, %v1730_v23, %v1729_v27  ;;  %4702 = vmatprep.subr.bf16.mxu0 %v4701_v55  ;;  %v2435_v1 = vsel %vm7639_vm13, %v2418_v25, %v5897_v21  ;;  %v6033_v60 = vsel %vm7649_vm10, %v5292_v36, %v1961_v15  ;;  %v227_v36 = vld [vmem:[%s7625_s0 + $0x174] sm:$0x3] }
  0xca   :  { %v6036_v29 = vsel %vm7646_vm1, %v2027_v47, %v2028_v26  ;;  %v1733_v4 = vsel %vm1590_vm7, %v1732_v44, %v1731_v33  ;;  %4704 = vmatpush3.bf16.msra.mxu0 %v4701_v55  ;;  %v6050_v21 = vsel %vm7639_vm13, %v2419_v22, %v5918_v28  ;;  %vm2468_vm15 = vcmask 195584  }
  0xcb   :  { %2166 = vrot.lane.b32.xlu1 %v5947_v53, %s4956_s14  ;;  %v1735_v15 = vsel %vm1593_vm8, %v1734_v42, %v1733_v4  ;;  %4706 = vmatprep.subr.bf16.mxu0 %v4705_v50  ;;  %v729_v10 = vrot.slane %v5974_v19, 1  ;;  %v730_v17 = vrot.slane %v5986_v14, 1  ;;  %v731_v6 = vrot.slane %v5991_v38, 1 }
  0xcc   :  { %v6016_v37 = vpop.permute.xlu0 %2051  ;;  %2218 = vrot.lane.b32.xlu0 %v5837_v34, %s4957_s29  ;;  %v1737_v28 = vsel %vm7641_vm9, %v1736_v63, %v1735_v15  ;;  %v230_v34 = vld [vmem:[%s7625_s0 + $0x17a] sm:$0x3]  ;;  %v732_v30 = vrot.slane %v5996_v62, 1  ;;  %v733_v39 = vrot.slane %v6006_v5, 1  ;;  %v734_v46 = vrot.slane %v6011_v16, 1 }
  0xcd   :  { %v2203_v51 = vpop.permute.xlu1 %2202  ;;  %v1820_v18 = vrot.slane %v1737_v28, 7  ;;  %v735_v31 = vrot.slane %v6022_v24, 1  ;;  %v736_v40 = vrot.slane %v6027_v0, 1  ;;  %v737_v23 = vrot.slane %v225_v48, 1 }
  0xce   :  { %v2452_v52 = vsel %vm7647_vm14, %v2435_v1, %v2203_v51  ;;  %4708 = vmatpush3.bf16.msra.mxu0 %v4705_v50  ;;  %v738_v58 = vrot.slane %v226_v7, 1  ;;  %vm2485_vm13 = vcmask 228352   ;;  %v739_v26 = vrot.slane %v227_v36, 1 }
  0xcf   :  { %2354 = vrot.lane.b32.xlu1 %v5027_v8, %s4959_s21  ;;  %v6087_v49 = vsel %vm1843_vm0, 0.0, %v1820_v18  ;;  %v1872_v47 = vsel %vm1843_vm0, %v1820_v18, 0.0  ;;  %v740_v59 = vrot.slane %v228_v35, 1  ;;  %vm2502_vm12 = vcmask 261120  }
  0xd0   :  { %v6072_v2 = vpop.permute.xlu0 %2252  ;;  %v1939_v44 = vrot.slane %v6087_v49, 1  ;;  %v1940_v11 = vrot.slane %v1872_v47, 1  ;;  %v741_v42 = vrot.slane %v229_v43, 1  ;;  %v742_v55 = vrot.slane %v230_v34, 1 }
  0xd1   :  { %v6079_v20 = vpop.permute.xlu1 %2049  ;;  %v2030_v27 = vrot.slane %v6087_v49, 2  ;;  %v2031_v63 = vrot.slane %v1872_v47, 2  ;;  %vm2524_vm9 = vcmask 293888   ;;  %v743_v50 = vrot.slane %v231_v61, 1 }
  0xd2   :  { %v744_v25 = vrot.slane %v232_v32, 1  ;;  %v6097_v33 = vsel %vm1908_vm2, %v1939_v44, %v1940_v11  ;;  %v1241_v51 = vmax.f32 %v5974_v19, %v729_v10  ;;  %v1242_v4 = vmax.f32 %v5986_v14, %v730_v17 }
  0xd3   :  { %2063 = vrot.lane.b32.xlu1 %v6036_v29, %s4951_s12  ;;  %v1243_v15 = vmax.f32 %v5991_v38, %v731_v6  ;;  %1974 = vrot.lane.b32.xlu0 %v6097_v33, %s4953_s4  ;;  %v1244_v28 = vmax.f32 %v5996_v62, %v732_v30  ;;  %v1245_v18 = vmax.f32 %v6006_v5, %v733_v39 }
  0xd4   :  { %v6093_v22 = vpop.permute.xlu0 %2098  ;;  %v1246_v47 = vmax.f32 %v6011_v16, %v734_v46  ;;  %v1247_v9 = vmax.f32 %v6022_v24, %v735_v31  ;;  %v1248_v19 = vmax.f32 %v6027_v0, %v736_v40  ;;  %v1249_v10 = vmax.f32 %v225_v48, %v737_v23  ;;  %v6135_v40 = vld [vmem:[%s7625_s0 + $0x182] sm:$0x3] }
  0xd5   :  { %v2296_v1 = vpop.permute.xlu1 %2295  ;;  %v1250_v14 = vmax.f32 %v226_v7, %v738_v58  ;;  %v1251_v17 = vmax.f32 %v227_v36, %v739_v26  ;;  %v1252_v6 = vmax.f32 %v228_v35, %v740_v59  ;;  %v1253_v44 = vmax.f32 %v229_v43, %v741_v42  ;;  %v2523_v35 = vld [vmem:[%s7626_s1 + $0x20] sm:$0xf] }
  0xd6   :  { %v1254_v11 = vmax.f32 %v230_v34, %v742_v55  ;;  %v1255_v8 = vmax.f32 %v231_v61, %v743_v50  ;;  %v2469_v62 = vsel %vm2468_vm15, %v2452_v52, %v5905_v3  ;;  %v1256_v16 = vmax.f32 %v232_v32, %v744_v25  ;;  %v6128_v61 = vld [vmem:[%s7625_s0 + $0x180] sm:$0x3]  ;;  %v6156_v55 = vld [vmem:[%s7625_s0 + $0x188] sm:$0x3] }
  0xd7   :  { %2266 = vrot.lane.b32.xlu1 %v5925_v57, %s4955_s23  ;;  %v1409_v24 = vmax.f32 %v1241_v51, %v1249_v10  ;;  %v1410_v30 = vmax.f32 %v1242_v4, %v1250_v14  ;;  %2220 = vrot.lane.b32.xlu0 %v6036_v29, %s4957_s29  ;;  %v6118_v0 = vsel %vm7646_vm1, %v2030_v27, %v2031_v63  ;;  %vm2573_vm1 = vcmask 1043456   ;;  %v6161_v27 = vld [vmem:[%s7625_s0 + $0x18a] sm:$0x3]  ;;  %v241_v51 = vld [vmem:[%s7625_s0 + $0x190] sm:$0x3] }
  0xd8   :  { %v2298_v38 = vpop.permute.xlu0 %2297  ;;  %v1411_v48 = vmax.f32 %v1243_v15, %v1251_v17  ;;  %v1412_v7 = vmax.f32 %v1244_v28, %v1252_v6  ;;  %v1413_v36 = vmax.f32 %v1245_v18, %v1253_v44  ;;  %v1414_v3 = vmax.f32 %v1246_v47, %v1254_v11  ;;  %4619 = vmatprep.subr.msk.mxu0 %vm2573_vm1, %v2523_v35  ;;  %v243_v18 = vld [vmem:[%s7625_s0 + $0x194] sm:$0x3]  ;;  %v246_v10 = vld [vmem:[%s7625_s0 + $0x19a] sm:$0x3] }
  0xd9   :  { %v6113_v5 = vpop.permute.xlu1 %2152  ;;  %v1415_v43 = vmax.f32 %v1247_v9, %v1255_v8  ;;  %v1416_v34 = vmax.f32 %v1248_v19, %v1256_v16  ;;  %v1738_v52 = vrot.slane %v1410_v30, 7  ;;  %v6140_v8 = vld [vmem:[%s7625_s0 + $0x184] sm:$0x3]  ;;  %v6145_v9 = vld [vmem:[%s7625_s0 + $0x186] sm:$0x3]  ;;  %v2453_v23 = vsel %vm7647_vm14, %v6050_v21, %v5958_v54  ;;  %4620 = vmatpush3.msk.msra.mxu0 %vm2573_vm1, %v2523_v35 }
  0xda   :  { %v1740_v46 = vrot.slane %v1411_v48, 6  ;;  %v1742_v32 = vrot.slane %v1412_v7, 5  ;;  %v1744_v31 = vrot.slane %v1413_v36, 4  ;;  %v2486_v58 = vsel %vm2485_vm13, %v2469_v62, %v2296_v1  ;;  %v6166_v54 = vld [vmem:[%s7625_s0 + $0x18c] sm:$0x3] }
  0xdb   :  { %2112 = vrot.lane.b32.xlu1 %v6087_v49, %s4954_s20  ;;  %v1739_v59 = vsel %vm1578_vm3, %v1738_v52, %v1409_v24  ;;  %v1746_v42 = vrot.slane %v1414_v3, 3  ;;  %v2388_v21 = vsel %vm7649_vm10, %v5146_v12, %v5966_v45  ;;  %2065 = vrot.lane.b32.xlu0 %v6118_v0, %s4951_s12  ;;  %v1748_v25 = vrot.slane %v1415_v43, 2  ;;  %v6179_v1 = vld [vmem:[%s7625_s0 + $0x18e] sm:$0x3]  ;;  %v242_v12 = vld [vmem:[%s7625_s0 + $0x192] sm:$0x3] }
  0xdc   :  { %v6130_v39 = vpop.permute.xlu0 %1962  ;;  %v1741_v50 = vsel %vm1581_vm4, %v1740_v46, %v1739_v59  ;;  %v6190_v45 = vsel %vm7648_vm11, %v6033_v60, %v6016_v37  ;;  %v2470_v4 = vsel %vm2468_vm15, %v2453_v23, %v6072_v2  ;;  %v1750_v28 = vrot.slane %v1416_v34, 1  ;;  %v244_v37 = vld [vmem:[%s7625_s0 + $0x196] sm:$0x3]  ;;  %v245_v19 = vld [vmem:[%s7625_s0 + $0x198] sm:$0x3] }
  0xdd   :  { %v2341_v26 = vpop.permute.xlu1 %2340  ;;  %v1743_v15 = vsel %vm1584_vm5, %v1742_v32, %v1741_v50  ;;  %v2404_v60 = vsel %vm7648_vm11, %v2388_v21, %v6079_v20  ;;  %v2487_v2 = vsel %vm2485_vm13, %v2470_v4, %v2298_v38  ;;  %v745_v14 = vrot.slane %v6128_v61, 1  ;;  %v247_v38 = vld [vmem:[%s7625_s0 + $0x19c] sm:$0x3]  ;;  %v248_v16 = vld [vmem:[%s7625_s0 + $0x19e] sm:$0x3] }
  0xde   :  { %v2503_v63 = vsel %vm2502_vm12, %v2486_v58, %v2341_v26  ;;  %v746_v6 = vrot.slane %v6135_v40, 1  ;;  %v747_v44 = vrot.slane %v6140_v8, 1  ;;  %v748_v11 = vrot.slane %v6145_v9, 1 }
  0xdf   :  { %2311 = vrot.lane.b32.xlu1 %v5947_v53, %s4958_s26  ;;  %4621 = vmatprep.mubr.msk.f32.mxu0 %vm2524_vm9, %v2503_v63  ;;  %v1745_v53 = vsel %vm1587_vm6, %v1744_v31, %v1743_v15  ;;  %v749_v24 = vrot.slane %v6156_v55, 1  ;;  %v750_v30 = vrot.slane %v6161_v27, 1  ;;  %v751_v48 = vrot.slane %v6166_v54, 1 }
  0xe0   :  { %v6208_v47 = vpop.permute.xlu0 %2206  ;;  %v1747_v20 = vsel %vm1590_vm7, %v1746_v42, %v1745_v53  ;;  %2268 = vrot.lane.b32.xlu0 %v6087_v49, %s4955_s23  ;;  %vm7658_vm1 = vcmask 1047559   ;;  %v752_v36 = vrot.slane %v6179_v1, 1  ;;  %v753_v35 = vrot.slane %v241_v51, 1 }
  0xe1   :  { %v6217_v17 = vpop.permute.xlu1 %2154  ;;  %v1749_v62 = vsel %vm1593_vm8, %v1748_v25, %v1747_v20  ;;  %v754_v3 = vrot.slane %v242_v12, 1  ;;  %v755_v34 = vrot.slane %v243_v18, 1  ;;  %v756_v52 = vrot.slane %v244_v37, 1 }
  0xe2   :  { %v1751_v7 = vsel %vm7658_vm1, %v1750_v28, %v1749_v62  ;;  %v757_v46 = vrot.slane %v245_v19, 1  ;;  %v758_v31 = vrot.slane %v246_v10, 1  ;;  %v759_v23 = vrot.slane %v247_v38, 1 }
  0xe3   :  { %2168 = vrot.lane.b32.xlu1 %v6097_v33, %s4956_s14  ;;  %v1821_v43 = vrot.slane %v1751_v7, 7  ;;  %v760_v58 = vrot.slane %v248_v16, 1  ;;  %v6240_v26 = vmax.f32 %v6128_v61, %v745_v14  ;;  %v1258_v50 = vmax.f32 %v6135_v40, %v746_v6 }
  0xe4   :  { %v1259_v4 = vmax.f32 %v6140_v8, %v747_v44  ;;  %v1260_v15 = vmax.f32 %v6145_v9, %v748_v11  ;;  %v1261_v28 = vmax.f32 %v6156_v55, %v749_v24  ;;  %v1263_v40 = vmax.f32 %v6166_v54, %v751_v48 }
  0xe5   :  { %v2343_v32 = vpop.permute.xlu1 %2342  ;;  %v6243_v59 = vsel %vm1843_vm0, 0.0, %v1821_v43  ;;  %v1873_v63 = vsel %vm1843_vm0, %v1821_v43, 0.0  ;;  %v1265_v53 = vmax.f32 %v241_v51, %v753_v35  ;;  %v1266_v20 = vmax.f32 %v242_v12, %v754_v3  ;;  %v252_v3 = vld [vmem:[%s7625_s0 + $0x1a6] sm:$0x3]  ;;  %v253_v43 = vld [vmem:[%s7625_s0 + $0x1a8] sm:$0x3] }
  0xe6   :  { %v2504_v42 = vsel %vm2502_vm12, %v2487_v2, %v2343_v32  ;;  %v6246_v21 = vpop.permute.xlu0 %1964  ;;  %2114 = vrot.lane.b32.xlu0 %v6243_v59, %s4954_s20  ;;  %v1942_v61 = vrot.slane %v6243_v59, 1  ;;  %v1943_v25 = vrot.slane %v1873_v63, 1  ;;  %v1262_v2 = vmax.f32 %v6161_v27, %v750_v30  ;;  %v6282_v30 = vld [vmem:[%s7625_s0 + $0x1a0] sm:$0x3] }
  0xe7   :  { %2356 = vrot.lane.b32.xlu1 %v6036_v29, %s4959_s21  ;;  %4622 = vmatmul.mubr.msk.f32.vlgmr.msra.gmra.mrb[0].mxu0 %vm2524_vm9, %v2504_v42  ;;  %v1267_v6 = vmax.f32 %v243_v18, %v755_v34  ;;  %v1268_v62 = vmax.f32 %v244_v37, %v756_v52  ;;  %vm7659_vm1 = vcmask 97280   ;;  %v1264_v55 = vmax.f32 %v6179_v1, %v752_v36  ;;  %v6305_v34 = vld [vmem:[%s7625_s0 + $0x1aa] sm:$0x3]  ;;  %v259_v42 = vld [vmem:[%s7625_s0 + $0x1b4] sm:$0x3] }
  0xe8   :  { %v6264_v29 = vsel %vm1908_vm2, %v1942_v61, %v1943_v25  ;;  %v2420_v8 = vsel %vm7659_vm1, %v2404_v60, %v5922_v56  ;;  %v1269_v44 = vmax.f32 %v245_v19, %v757_v46  ;;  %v1270_v27 = vmax.f32 %v246_v10, %v758_v31  ;;  %v260_v25 = vld [vmem:[%s7625_s0 + $0x1b6] sm:$0x3] }
  0xe9   :  { %v6261_v14 = vpop.permute.xlu1 %2053  ;;  %v2033_v54 = vrot.slane %v6243_v59, 2  ;;  %v2034_v51 = vrot.slane %v1873_v63, 2  ;;  %v1271_v12 = vmax.f32 %v247_v38, %v759_v23  ;;  %v1272_v18 = vmax.f32 %v248_v16, %v760_v58  ;;  %v6287_v38 = vld [vmem:[%s7625_s0 + $0x1a2] sm:$0x3]  ;;  %v6292_v16 = vld [vmem:[%s7625_s0 + $0x1a4] sm:$0x3] }
  0xea   :  { %v6268_v9 = vpop.permute.xlu0 %2208  ;;  %2313 = vrot.lane.b32.xlu0 %v6097_v33, %s4958_s26  ;;  %v1417_v37 = vmax.f32 %v6240_v26, %v1265_v53  ;;  %v1418_v56 = vmax.f32 %v1258_v50, %v1266_v20  ;;  %v1419_v60 = vmax.f32 %v1259_v4, %v1267_v6  ;;  %v1420_v11 = vmax.f32 %v1260_v15, %v1268_v62  ;;  %v255_v23 = vld [vmem:[%s7625_s0 + $0x1ac] sm:$0x3]  ;;  %v258_v26 = vld [vmem:[%s7625_s0 + $0x1b2] sm:$0x3]  ;;  %v261_v4 = vld [vmem:[%s7625_s0 + $0x1b8] sm:$0x3] }
  0xeb   :  { %2170 = vrot.lane.b32.xlu1 %v6264_v29, %s4956_s14  ;;  %vm7660_vm1 = vcmask 130048   ;;  %v1421_v10 = vmax.f32 %v1261_v28, %v1269_v44  ;;  %v1422_v24 = vmax.f32 %v1262_v2, %v1270_v27  ;;  %v1423_v33 = vmax.f32 %v1263_v40, %v1271_v12  ;;  %v262_v53 = vld [vmem:[%s7625_s0 + $0x1ba] sm:$0x3] }
  0xec   :  { %v2437_v1 = vsel %vm7660_vm1, %v2420_v8, %v6113_v5  ;;  %v1424_v48 = vmax.f32 %v1264_v55, %v1272_v18  ;;  %v1752_v7 = vrot.slane %v1418_v56, 7  ;;  %v1754_v36 = vrot.slane %v1419_v60, 6  ;;  %v263_v8 = vld [vmem:[%s7625_s0 + $0x1bc] sm:$0x3] }
  0xed   :  { %v2255_v19 = vpop.permute.xlu1 %2254  ;;  %v1756_v35 = vrot.slane %v1420_v11, 5  ;;  %vm7661_vm1 = vcmask 97280   ;;  %v6313_v46 = vsel %vm7649_vm10, %v5384_v13, %v6130_v39  ;;  %v2454_v32 = vsel %vm7647_vm14, %v2437_v1, %v6208_v47  ;;  %v257_v13 = vld [vmem:[%s7625_s0 + $0x1b0] sm:$0x3] }
  0xee   :  { %v6294_v5 = vpop.permute.xlu0 %2055  ;;  %v2421_v52 = vsel %vm7661_vm1, %v6190_v45, %v6093_v22  ;;  %1976 = vrot.lane.b32.xlu0 %v6264_v29, %s4953_s4  ;;  %v1758_v31 = vrot.slane %v1421_v10, 4  ;;  %v6327_v22 = vld [vmem:[%s7625_s0 + $0x1ae] sm:$0x3]  ;;  %vm7662_vm1 = vcmask 130048   ;;  %vm7663_vm14 = vcmask 1045504  }
  0xef   :  { %2358 = vrot.lane.b32.xlu1 %v6118_v0, %s4959_s21  ;;  %v6334_v39 = vsel %vm7662_vm1, %v2421_v52, %v6217_v17  ;;  %v6337_v45 = vsel %vm7663_vm14, %v2033_v54, %v2034_v51  ;;  %v1753_v47 = vsel %vm1578_vm3, %v1752_v7, %v1417_v37  ;;  %v1760_v58 = vrot.slane %v1422_v24, 3  ;;  %v264_v51 = vld [vmem:[%s7625_s0 + $0x1be] sm:$0x3] }
  0xf0   :  { %v2471_v63 = vsel %vm2468_vm15, %v2454_v32, %v2255_v19  ;;  %v1755_v17 = vsel %vm1581_vm4, %v1754_v36, %v1753_v47  ;;  %v1762_v61 = vrot.slane %v1423_v33, 2  ;;  %v761_v15 = vrot.slane %v6282_v30, 1 }
  0xf1   :  { %v6347_v50 = vpop.permute.xlu1 %2100  ;;  %v1757_v28 = vsel %vm1584_vm5, %v1756_v35, %v1755_v17  ;;  %v1764_v2 = vrot.slane %v1424_v48, 1  ;;  %v762_v20 = vrot.slane %v6287_v38, 1  ;;  %v763_v6 = vrot.slane %v6292_v16, 1 }
  0xf2   :  { %v6358_v40 = vpop.permute.xlu0 %2256  ;;  %2222 = vrot.lane.b32.xlu0 %v6118_v0, %s4957_s29  ;;  %v1759_v62 = vsel %vm1587_vm6, %v1758_v31, %v1757_v28  ;;  %v764_v55 = vrot.slane %v252_v3, 1  ;;  %v765_v44 = vrot.slane %v253_v43, 1  ;;  %v766_v27 = vrot.slane %v6305_v34, 1 }
  0xf3   :  { %2067 = vrot.lane.b32.xlu1 %v6337_v45, %s4951_s12  ;;  %v1761_v54 = vsel %vm1590_vm7, %v1760_v58, %v1759_v62  ;;  %v767_v0 = vrot.slane %v255_v23, 1  ;;  %v768_v12 = vrot.slane %v6327_v22, 1  ;;  %v769_v18 = vrot.slane %v257_v13, 1 }
  0xf4   :  { %v1763_v37 = vsel %vm1593_vm8, %v1762_v61, %v1761_v54  ;;  %v770_v60 = vrot.slane %v258_v26, 1  ;;  %v771_v11 = vrot.slane %v259_v42, 1  ;;  %v772_v1 = vrot.slane %v260_v25, 1 }
  0xf5   :  { %v2300_v56 = vpop.permute.xlu1 %2299  ;;  %vm7664_vm14 = vcmask 1047559   ;;  %v773_v24 = vrot.slane %v261_v4, 1  ;;  %v774_v33 = vrot.slane %v262_v53, 1  ;;  %v775_v48 = vrot.slane %v263_v8, 1 }
  0xf6   :  { %v1765_v19 = vsel %vm7664_vm14, %v1764_v2, %v1763_v37  ;;  %v6381_v10 = vpop.permute.xlu0 %2102  ;;  %v2488_v36 = vsel %vm2485_vm13, %v2471_v63, %v2300_v56  ;;  %v776_v35 = vrot.slane %v264_v51, 1  ;;  %v1273_v52 = vmax.f32 %v6282_v30, %v761_v15  ;;  %v6418_v56 = vld [vmem:[%s7625_s0 + $0x1c0] sm:$0x3] }
  0xf7   :  { %v1822_v7 = vrot.slane %v1765_v19, 7  ;;  %2270 = vrot.lane.b32.xlu1 %v6243_v59, %s4955_s23  ;;  %v1274_v32 = vmax.f32 %v6287_v38, %v762_v20  ;;  %v1275_v31 = vmax.f32 %v6292_v16, %v763_v6  ;;  %v1276_v47 = vmax.f32 %v252_v3, %v764_v55 }
  0xf8   :  { %v1277_v58 = vmax.f32 %v253_v43, %v765_v44  ;;  %v1281_v63 = vmax.f32 %v257_v13, %v769_v18  ;;  %v1282_v2 = vmax.f32 %v258_v26, %v770_v60  ;;  %v1278_v30 = vmax.f32 %v6305_v34, %v766_v27  ;;  %v6423_v60 = vld [vmem:[%s7625_s0 + $0x1c2] sm:$0x3] }
  0xf9   :  { %v6390_v17 = vsel %vm1843_vm0, 0.0, %v1822_v7  ;;  %v1874_v61 = vsel %vm1843_vm0, %v1822_v7, 0.0  ;;  %v6393_v28 = vpop.permute.xlu1 %2156  ;;  %v1279_v38 = vmax.f32 %v255_v23, %v767_v0  ;;  %v1280_v3 = vmax.f32 %v6327_v22, %v768_v12  ;;  %v7665_v12 = vld [vmem:[#allocation11_spill] sm:$0xff] }
  0xfa   :  { %v1945_v62 = vrot.slane %v6390_v17, 1  ;;  %v1946_v54 = vrot.slane %v1874_v61, 1  ;;  %v2302_v37 = vpop.permute.xlu0 %2301  ;;  %v2036_v16 = vrot.slane %v6390_v17, 2  ;;  %v1283_v43 = vmax.f32 %v259_v42, %v771_v11 }
  0xfb   :  { %2116 = vrot.lane.b32.xlu1 %v6390_v17, %s4954_s20  ;;  %v1284_v15 = vmax.f32 %v260_v25, %v772_v1  ;;  %v1285_v13 = vmax.f32 %v261_v4, %v773_v24  ;;  %v1286_v26 = vmax.f32 %v262_v53, %v774_v33  ;;  %v1287_v6 = vmax.f32 %v263_v8, %v775_v48  ;;  %v6433_v24 = vld [vmem:[%s7625_s0 + $0x1c6] sm:$0x3]  ;;  %v6438_v33 = vld [vmem:[%s7625_s0 + $0x1c8] sm:$0x3] }
  0xfc   :  { %v6402_v20 = vsel %vm1908_vm2, %v1945_v62, %v1946_v54  ;;  %v2037_v34 = vrot.slane %v1874_v61, 2  ;;  %v1288_v55 = vmax.f32 %v264_v51, %v776_v35  ;;  %v1425_v44 = vmax.f32 %v1273_v52, %v1281_v63  ;;  %v273_v61 = vld [vmem:[%s7625_s0 + $0x1d0] sm:$0x3]  ;;  %v274_v54 = vld [vmem:[%s7625_s0 + $0x1d2] sm:$0x3] }
  0xfd   :  { %1978 = vrot.lane.b32.xlu0 %v6402_v20, %s4953_s4  ;;  %v2345_v23 = vpop.permute.xlu1 %2344  ;;  %v1426_v27 = vmax.f32 %v1274_v32, %v1282_v2  ;;  %v1427_v22 = vmax.f32 %v1275_v31, %v1283_v43  ;;  %v1428_v42 = vmax.f32 %v1276_v47, %v1284_v15  ;;  %v1429_v25 = vmax.f32 %v1277_v58, %v1285_v13  ;;  %v270_v32 = vld [vmem:[%s7625_s0 + $0x1ca] sm:$0x3]  ;;  %v272_v58 = vld [vmem:[%s7625_s0 + $0x1ce] sm:$0x3]  ;;  %v278_v13 = vld [vmem:[%s7625_s0 + $0x1da] sm:$0x3] }
  0xfe   :  { %v2505_v0 = vsel %vm2502_vm12, %v2488_v36, %v2345_v23  ;;  %v6407_v18 = vpop.permute.xlu0 %1966  ;;  %v2391_v4 = vsel %vm7649_vm10, %v7665_v12, %v6246_v21  ;;  %v1430_v53 = vmax.f32 %v1278_v30, %v1286_v26  ;;  %v1431_v8 = vmax.f32 %v1279_v38, %v1287_v6  ;;  %v275_v30 = vld [vmem:[%s7625_s0 + $0x1d4] sm:$0x3] }
  0xff   :  { %2315 = vrot.lane.b32.xlu1 %v6264_v29, %s4958_s26  ;;  %4624 = vmatprep.mubr.msk.f32.mxu0 %vm2524_vm9, %v2505_v0  ;;  %v1766_v51 = vrot.slane %v1426_v27, 7  ;;  %v1432_v11 = vmax.f32 %v1280_v3, %v1288_v55  ;;  %v1768_v21 = vrot.slane %v1427_v22, 6  ;;  %v1770_v1 = vrot.slane %v1428_v42, 5  ;;  %v6428_v29 = vld [vmem:[%s7625_s0 + $0x1c4] sm:$0x3] }
 0x100   :  { %v1772_v19 = vrot.slane %v1429_v25, 4  ;;  %v2406_v48 = vsel %vm7648_vm11, %v6313_v46, %v6261_v14  ;;  %vm7666_vm1 = vcmask 162816   ;;  %v1774_v52 = vrot.slane %v1430_v53, 3  ;;  %v271_v14 = vld [vmem:[%s7625_s0 + $0x1cc] sm:$0x3] }
 0x101   :  { %v2455_v7 = vsel %vm7666_vm1, %v6334_v39, %v6268_v9  ;;  %2224 = vrot.lane.b32.xlu0 %v6337_v45, %s4957_s29  ;;  %v6448_v36 = vpop.permute.xlu1 %2158  ;;  %v1767_v35 = vsel %vm1578_vm3, %v1766_v51, %v1425_v44  ;;  %v6459_v46 = vsel %vm7648_vm11, %v2391_v4, %v6294_v5  ;;  %vm7667_vm14 = vcmask 1045504   ;;  %v279_v27 = vld [vmem:[%s7625_s0 + $0x1dc] sm:$0x3]  ;;  %v280_v0 = vld [vmem:[%s7625_s0 + $0x1de] sm:$0x3] }
 0x102   :  { %v6462_v9 = vsel %vm7667_vm14, %v2036_v16, %v2037_v34  ;;  %v1769_v39 = vsel %vm1581_vm4, %v1768_v21, %v1767_v35  ;;  %v1776_v31 = vrot.slane %v1431_v8, 2  ;;  %v6465_v47 = vpop.permute.xlu0 %2210  ;;  %vm7668_vm1 = vcmask 97280   ;;  %v277_v16 = vld [vmem:[%s7625_s0 + $0x1d8] sm:$0x3] }
 0x103   :  { %v6475_v5 = vsel %vm7668_vm1, %v2406_v48, %v6347_v50  ;;  %v2472_v63 = vsel %vm2468_vm15, %v2455_v7, %v6358_v40  ;;  %2172 = vrot.lane.b32.xlu1 %v6402_v20, %s4956_s14  ;;  %v1771_v2 = vsel %vm1584_vm5, %v1770_v1, %v1769_v39  ;;  %v1778_v62 = vrot.slane %v1432_v11, 1  ;;  %v276_v40 = vld [vmem:[%s7625_s0 + $0x1d6] sm:$0x3] }
 0x104   :  { %v2489_v50 = vsel %vm2485_vm13, %v2472_v63, %v2302_v37  ;;  %v1773_v38 = vsel %vm1587_vm6, %v1772_v19, %v1771_v2  ;;  %v777_v3 = vrot.slane %v6418_v56, 1  ;;  %v778_v43 = vrot.slane %v6423_v60, 1 }
 0x105   :  { %2069 = vrot.lane.b32.xlu0 %v6462_v9, %s4951_s12  ;;  %v1775_v15 = vsel %vm1590_vm7, %v1774_v52, %v1773_v38  ;;  %v2347_v37 = vpop.permute.xlu1 %2346  ;;  %v779_v26 = vrot.slane %v6428_v29, 1  ;;  %v780_v6 = vrot.slane %v6433_v24, 1  ;;  %v781_v34 = vrot.slane %v6438_v33, 1 }
 0x106   :  { %v1777_v23 = vsel %vm1593_vm8, %v1776_v31, %v1775_v15  ;;  %v2506_v55 = vsel %vm2502_vm12, %v2489_v50, %v2347_v37  ;;  %v6509_v44 = vpop.permute.xlu0 %1968  ;;  %v782_v22 = vrot.slane %v270_v32, 1  ;;  %v783_v42 = vrot.slane %v271_v14, 1 }
 0x107   :  { %vm7669_vm14 = vcmask 1047559   ;;  %2360 = vrot.lane.b32.xlu1 %v6337_v45, %s4959_s21  ;;  %4625 = vmatmul.mubr.msk.f32.gmra.mrb[2].mxu0 %vm2524_vm9, %v2506_v55  ;;  %v784_v12 = vrot.slane %v272_v58, 1  ;;  %v785_v4 = vrot.slane %v273_v61, 1  ;;  %v786_v53 = vrot.slane %v274_v54, 1 }
 0x108   :  { %v1779_v25 = vsel %vm7669_vm14, %v1778_v62, %v1777_v23  ;;  %v787_v51 = vrot.slane %v275_v30, 1  ;;  %v788_v11 = vrot.slane %v276_v40, 1  ;;  %v789_v21 = vrot.slane %v277_v16, 1 }
 0x109   :  { %v1823_v8 = vrot.slane %v1779_v25, 7  ;;  %2272 = vrot.lane.b32.xlu0 %v6390_v17, %s4955_s23  ;;  %v6523_v1 = vpop.permute.xlu1 %2057  ;;  %v790_v19 = vrot.slane %v278_v13, 1  ;;  %v791_v48 = vrot.slane %v279_v27, 1  ;;  %v792_v7 = vrot.slane %v280_v0, 1 }
 0x10a   :  { %v1289_v35 = vmax.f32 %v6418_v56, %v777_v3  ;;  %v2213_v39 = vpop.permute.xlu0 %2212  ;;  %v1290_v31 = vmax.f32 %v6423_v60, %v778_v43  ;;  %v1291_v63 = vmax.f32 %v6428_v29, %v779_v26  ;;  %v1292_v50 = vmax.f32 %v6433_v24, %v780_v6 }
 0x10b   :  { %v6527_v45 = vsel %vm1843_vm0, 0.0, %v1823_v8  ;;  %v1875_v52 = vsel %vm1843_vm0, %v1823_v8, 0.0  ;;  %v1293_v38 = vmax.f32 %v6438_v33, %v781_v34  ;;  %v1294_v15 = vmax.f32 %v270_v32, %v782_v22 }
 0x10c   :  { %v1948_v2 = vrot.slane %v6527_v45, 1  ;;  %v1949_v62 = vrot.slane %v1875_v52, 1  ;;  %v1295_v37 = vmax.f32 %v271_v14, %v783_v42  ;;  %v1296_v56 = vmax.f32 %v272_v58, %v784_v12 }
 0x10d   :  { %v1297_v3 = vmax.f32 %v273_v61, %v785_v4  ;;  %2118 = vrot.lane.b32.xlu0 %v6527_v45, %s4954_s20  ;;  %v2259_v60 = vpop.permute.xlu1 %2258  ;;  %v1298_v43 = vmax.f32 %v274_v54, %v786_v53  ;;  %v1299_v29 = vmax.f32 %v275_v30, %v787_v51  ;;  %v1300_v26 = vmax.f32 %v276_v40, %v788_v11  ;;  %v284_v53 = vld [vmem:[%s7625_s0 + $0x1e6] sm:$0x3] }
 0x10e   :  { %v6538_v23 = vsel %vm1908_vm2, %v1948_v2, %v1949_v62  ;;  %v2423_v24 = vsel %vm7668_vm1, %v6459_v46, %v6381_v10  ;;  %v6545_v33 = vpop.permute.xlu0 %2059  ;;  %v2039_v32 = vrot.slane %v6527_v45, 2  ;;  %v1301_v14 = vmax.f32 %v277_v16, %v789_v21  ;;  %v285_v21 = vld [vmem:[%s7625_s0 + $0x1e8] sm:$0x3] }
 0x10f   :  { %2174 = vrot.lane.b32.xlu1 %v6538_v23, %s4956_s14  ;;  %v1302_v58 = vmax.f32 %v278_v13, %v790_v19  ;;  %v2040_v61 = vrot.slane %v1875_v52, 2  ;;  %v1303_v6 = vmax.f32 %v279_v27, %v791_v48  ;;  %v1304_v34 = vmax.f32 %v280_v0, %v792_v7  ;;  %v6558_v27 = vld [vmem:[%s7625_s0 + $0x1e0] sm:$0x3]  ;;  %v6563_v0 = vld [vmem:[%s7625_s0 + $0x1e2] sm:$0x3] }
 0x110   :  { %v1433_v55 = vmax.f32 %v1289_v35, %v1297_v3  ;;  %v1434_v54 = vmax.f32 %v1290_v31, %v1298_v43  ;;  %v1435_v30 = vmax.f32 %v1291_v63, %v1299_v29  ;;  %v1436_v40 = vmax.f32 %v1292_v50, %v1300_v26  ;;  %v289_v19 = vld [vmem:[%s7625_s0 + $0x1f0] sm:$0x3]  ;;  %v290_v52 = vld [vmem:[%s7625_s0 + $0x1f2] sm:$0x3]  ;;  %v292_v31 = vld [vmem:[%s7625_s0 + $0x1f6] sm:$0x3] }
 0x111   :  { %v1437_v22 = vmax.f32 %v1293_v38, %v1301_v14  ;;  %vm7670_vm14 = vcmask 130048   ;;  %2317 = vrot.lane.b32.xlu0 %v6402_v20, %s4958_s26  ;;  %v6553_v46 = vpop.permute.xlu1 %2104  ;;  %v1438_v42 = vmax.f32 %v1294_v15, %v1302_v58  ;;  %v1439_v16 = vmax.f32 %v1295_v37, %v1303_v6  ;;  %v287_v37 = vld [vmem:[%s7625_s0 + $0x1ec] sm:$0x3]  ;;  %v293_v43 = vld [vmem:[%s7625_s0 + $0x1f8] sm:$0x3] }
 0x112   :  { %v2439_v10 = vsel %vm7670_vm14, %v6475_v5, %v6393_v28  ;;  %v1440_v13 = vmax.f32 %v1296_v56, %v1304_v34  ;;  %v6568_v28 = vld [vmem:[%s7625_s0 + $0x1e4] sm:$0x3]  ;;  %vm7671_vm1 = vmmov %vm7670_vm14  ;;  %v1780_v5 = vrot.slane %v1434_v54, 7  ;;  %v1782_v25 = vrot.slane %v1435_v30, 6  ;;  %v2261_v4 = vpop.permute.xlu0 %2260  ;;  %v288_v56 = vld [vmem:[%s7625_s0 + $0x1ee] sm:$0x3] }
 0x113   :  { %v2440_v20 = vsel %vm7671_vm1, %v2423_v24, %v6448_v36  ;;  %2362 = vrot.lane.b32.xlu1 %v6462_v9, %s4959_s21  ;;  %v1784_v12 = vrot.slane %v1436_v40, 5  ;;  %vm7672_vm14 = vcmask 162816   ;;  %vm7674_vm10 = vcmask 1045504   ;;  %v294_v58 = vld [vmem:[%s7625_s0 + $0x1fa] sm:$0x3] }
 0x114   :  { %v2456_v8 = vsel %vm7672_vm14, %v2439_v10, %v6465_v47  ;;  %vm7673_vm11 = vmmov %vm7672_vm14  ;;  %v6581_v11 = vsel %vm7674_vm10, %v2039_v32, %v2040_v61  ;;  %v1786_v36 = vrot.slane %v1437_v22, 4  ;;  %v1781_v7 = vsel %vm1578_vm3, %v1780_v5, %v1433_v55  ;;  %v286_v47 = vld [vmem:[%s7625_s0 + $0x1ea] sm:$0x3]  ;;  %v295_v61 = vld [vmem:[%s7625_s0 + $0x1fc] sm:$0x3] }
 0x115   :  { %v2457_v51 = vsel %vm7673_vm11, %v2440_v20, %v2213_v39  ;;  %v2473_v48 = vsel %vm2468_vm15, %v2456_v8, %v2259_v60  ;;  %v1788_v35 = vrot.slane %v1438_v42, 3  ;;  %v291_v39 = vld [vmem:[%s7625_s0 + $0x1f4] sm:$0x3]  ;;  %v793_v63 = vrot.slane %v6558_v27, 1  ;;  %1980 = vrot.lane.b32.xlu0 %v6538_v23, %s4953_s4  ;;  %v2304_v38 = vpop.permute.xlu1 %2303  ;;  %v296_v54 = vld [vmem:[%s7625_s0 + $0x1fe] sm:$0x3] }
 0x116   :  { %v1783_v2 = vsel %vm1581_vm4, %v1782_v25, %v1781_v7  ;;  %v1790_v62 = vrot.slane %v1439_v16, 2  ;;  %v1792_v50 = vrot.slane %v1440_v13, 1  ;;  %v2474_v15 = vsel %vm2468_vm15, %v2457_v51, %v2261_v4  ;;  %v6617_v60 = vpop.permute.xlu0 %2106 }
 0x117   :  { %2071 = vrot.lane.b32.xlu1 %v6581_v11, %s4951_s12  ;;  %v1785_v3 = vsel %vm1584_vm5, %v1784_v12, %v1783_v2  ;;  %v794_v29 = vrot.slane %v6563_v0, 1  ;;  %v795_v26 = vrot.slane %v6568_v28, 1  ;;  %v796_v24 = vrot.slane %v284_v53, 1 }
 0x118   :  { %v1787_v32 = vsel %vm1587_vm6, %v1786_v36, %v1785_v3  ;;  %v2490_v14 = vsel %vm2485_vm13, %v2473_v48, %v2304_v38  ;;  %v797_v6 = vrot.slane %v285_v21, 1  ;;  %v798_v34 = vrot.slane %v286_v47, 1 }
 0x119   :  { %v1789_v55 = vsel %vm1590_vm7, %v1788_v35, %v1787_v32  ;;  %v799_v30 = vrot.slane %v287_v37, 1  ;;  %v800_v40 = vrot.slane %v288_v56, 1  ;;  %v801_v22 = vrot.slane %v289_v19, 1  ;;  %2226 = vrot.lane.b32.xlu0 %v6462_v9, %s4957_s29  ;;  %v6639_v42 = vpop.permute.xlu1 %2160 }
 0x11a   :  { %v1791_v10 = vsel %vm1593_vm8, %v1790_v62, %v1789_v55  ;;  %v802_v16 = vrot.slane %v290_v52, 1  ;;  %v803_v13 = vrot.slane %v291_v39, 1  ;;  %v804_v20 = vrot.slane %v292_v31, 1  ;;  %v2306_v25 = vpop.permute.xlu0 %2305 }
 0x11b   :  { %vm7675_vm10 = vcmask 1047559   ;;  %2274 = vrot.lane.b32.xlu1 %v6527_v45, %s4955_s23  ;;  %v805_v12 = vrot.slane %v293_v43, 1  ;;  %v806_v4 = vrot.slane %v294_v58, 1  ;;  %v807_v8 = vrot.slane %v295_v61, 1 }
 0x11c   :  { %v1793_v5 = vsel %vm7675_vm10, %v1792_v50, %v1791_v10  ;;  %v808_v36 = vrot.slane %v296_v54, 1  ;;  %v1305_v9 = vmax.f32 %v6558_v27, %v793_v63  ;;  %v1306_v48 = vmax.f32 %v6563_v0, %v794_v29 }
 0x11d   :  { %v1824_v51 = vrot.slane %v1793_v5, 7  ;;  %v2491_v7 = vsel %vm2485_vm13, %v2474_v15, %v2306_v25  ;;  %v1307_v35 = vmax.f32 %v6568_v28, %v795_v26  ;;  %v1308_v2 = vmax.f32 %v284_v53, %v796_v24  ;;  %v2349_v3 = vpop.permute.xlu1 %2348 }
 0x11e   :  { %v1309_v62 = vmax.f32 %v285_v21, %v797_v6  ;;  %v1313_v32 = vmax.f32 %v289_v19, %v801_v22  ;;  %v1314_v55 = vmax.f32 %v290_v52, %v802_v16  ;;  %v6655_v27 = vpop.permute.xlu0 %2162  ;;  %v1310_v0 = vmax.f32 %v286_v47, %v798_v34 }
 0x11f   :  { %v6649_v50 = vsel %vm1843_vm0, 0.0, %v1824_v51  ;;  %v1876_v38 = vsel %vm1843_vm0, %v1824_v51, 0.0  ;;  %v1311_v28 = vmax.f32 %v287_v37, %v799_v30  ;;  %v2507_v53 = vsel %vm2502_vm12, %v2490_v14, %v2349_v3 }
 0x120   :  { %v1951_v10 = vrot.slane %v6649_v50, 1  ;;  %v1952_v5 = vrot.slane %v1876_v38, 1  ;;  %2120 = vrot.lane.b32.xlu1 %v6649_v50, %s4954_s20  ;;  %v1312_v21 = vmax.f32 %v288_v56, %v800_v40  ;;  %v1315_v63 = vmax.f32 %v291_v39, %v803_v13  ;;  %4627 = vmatprep.mubr.msk.f32.mxu0 %vm2524_vm9, %v2507_v53 }
 0x121   :  { %v1316_v15 = vmax.f32 %v292_v31, %v804_v20  ;;  %v2042_v19 = vrot.slane %v6649_v50, 2  ;;  %v1317_v52 = vmax.f32 %v293_v43, %v805_v12  ;;  %v1318_v26 = vmax.f32 %v294_v58, %v806_v4  ;;  %v6665_v24 = vpop.permute.xlu1 %2214 }
 0x122   :  { %v6659_v29 = vsel %vm1908_vm2, %v1951_v10, %v1952_v5  ;;  %v1319_v47 = vmax.f32 %v295_v61, %v807_v8  ;;  %v1320_v37 = vmax.f32 %v296_v54, %v808_v36  ;;  %v1441_v14 = vmax.f32 %v1305_v9, %v1313_v32  ;;  %v2351_v30 = vpop.permute.xlu0 %2350 }
 0x123   :  { %1982 = vrot.lane.b32.xlu0 %v6659_v29, %s4953_s4  ;;  %v1442_v56 = vmax.f32 %v1306_v48, %v1314_v55  ;;  %v2043_v39 = vrot.slane %v1876_v38, 2  ;;  %v1443_v31 = vmax.f32 %v1307_v35, %v1315_v63  ;;  %v1444_v6 = vmax.f32 %v1308_v2, %v1316_v15  ;;  %v7679_v15 = vld [vmem:[#allocation12_spill] sm:$0xff] }
 0x124   :  { %2319 = vrot.lane.b32.xlu1 %v6538_v23, %s4958_s26  ;;  %v1445_v34 = vmax.f32 %v1309_v62, %v1317_v52  ;;  %v1446_v40 = vmax.f32 %v1310_v0, %v1318_v26  ;;  %v1447_v43 = vmax.f32 %v1311_v28, %v1319_v47  ;;  %v1448_v58 = vmax.f32 %v1312_v21, %v1320_v37 }
 0x125   :  { %v1794_v22 = vrot.slane %v1442_v56, 7  ;;  %v1796_v16 = vrot.slane %v1443_v31, 6  ;;  %v1798_v13 = vrot.slane %v1444_v6, 5  ;;  %v2508_v61 = vsel %vm2502_vm12, %v2491_v7, %v2351_v30  ;;  %v6673_v23 = vpop.permute.xlu1 %1970  ;;  %v7685_v6 = vld [vmem:[#allocation13_spill] sm:$0xff] }
 0x126   :  { %v1800_v20 = vrot.slane %v1445_v34, 4  ;;  %v1802_v25 = vrot.slane %v1446_v40, 3  ;;  %4628 = vmatmul.mubr.msk.f32.gmra.mrb[4].mxu0 %vm2524_vm9, %v2508_v61  ;;  %vm7676_vm11 = vcmask 1045504   ;;  %v1804_v8 = vrot.slane %v1447_v43, 2  ;;  %v2217_v51 = vpop.permute.xlu0 %2216 }
 0x127   :  { %2228 = vrot.lane.b32.xlu0 %v6581_v11, %s4957_s29  ;;  %v1795_v54 = vsel %vm1578_vm3, %v1794_v22, %v1441_v14  ;;  %v2044_v12 = vsel %vm7676_vm11, %v2042_v19, %v2043_v39  ;;  %v1806_v9 = vrot.slane %v1448_v58, 1  ;;  %vm7677_vm3 = vmmov %vm7675_vm10 }
 0x128   :  { %2176 = vrot.lane.b32.xlu1 %v6659_v29, %s4956_s14  ;;  %v1797_v4 = vsel %vm1581_vm4, %v1796_v16, %v1795_v54  ;;  %vm7678_vm4 = vmmov %vm7676_vm11 }
 0x129   :  { %v1799_v36 = vsel %vm1584_vm5, %v1798_v13, %v1797_v4  ;;  %v2263_v35 = vpop.permute.xlu1 %2262  ;;  %vm7680_vm5 = vcmask 31744  }
 0x12a   :  { %v1801_v48 = vsel %vm1587_vm6, %v1800_v20, %v1799_v36  ;;  %v6687_v62 = vpop.permute.xlu0 %2061  ;;  %v2392_v19 = vsel %vm7680_vm5, %v7679_v15, %v6407_v18  ;;  %vm7681_vm6 = vcmask 64512  }
 0x12b   :  { %2073 = vrot.lane.b32.xlu0 %v2044_v12, %s4951_s12  ;;  %v1803_v7 = vsel %vm1590_vm7, %v1802_v25, %v1801_v48  ;;  %v2408_v52 = vsel %vm7681_vm6, %v2392_v19, %v6523_v1  ;;  %vm7682_vm7 = vcmask 97280   ;;  %vm7687_vm10 = vmmov %vm7681_vm6 }
 0x12c   :  { %v1805_v2 = vsel %vm1593_vm8, %v1804_v8, %v1803_v7  ;;  %2364 = vrot.lane.b32.xlu1 %v6581_v11, %s4959_s21  ;;  %v2424_v47 = vsel %vm7682_vm7, %v2408_v52, %v6553_v46  ;;  %vm7683_vm8 = vmmov %vm7671_vm1 }
 0x12d   :  { %v1807_v38 = vsel %vm7677_vm3, %v1806_v9, %v1805_v2  ;;  %v2109_v32 = vpop.permute.xlu1 %2108  ;;  %v2441_v56 = vsel %vm7683_vm8, %v2424_v47, %v6639_v42  ;;  %vm7684_vm1 = vmmov %vm7672_vm14 }
 0x12e   :  { %v1825_v3 = vrot.slane %v1807_v38, 7  ;;  %v6695_v5 = vpop.permute.xlu0 %2264  ;;  %v2458_v18 = vsel %vm7684_vm1, %v2441_v56, %v6665_v24  ;;  %vm7686_vm14 = vmmov %vm7680_vm5 }
 0x12f   :  { %2276 = vrot.lane.b32.xlu0 %v6649_v50, %s4955_s23  ;;  %v2475_v1 = vsel %vm2468_vm15, %v2458_v18, %v2263_v35  ;;  %v2393_v42 = vsel %vm7686_vm14, %v7685_v6, %v6509_v44  ;;  %vm7688_vm11 = vmmov %vm7682_vm7 }
 0x130   :  { %v1860_v55 = vsel %vm1843_vm0, 0.0, %v1825_v3  ;;  %v1877_v10 = vsel %vm1843_vm0, %v1825_v3, 0.0  ;;  %2230 = vrot.lane.b32.xlu1 %v2044_v12, %s4957_s29  ;;  %v2409_v24 = vsel %vm7687_vm10, %v2393_v42, %v6545_v33  ;;  %vm7689_vm3 = vmmov %vm7683_vm8  ;;  %v7694_v3 = vld [vmem:[#allocation14_spill] sm:$0xff] }
 0x131   :  { %v2199_v0 = vrot.slane %v1860_v55, 2  ;;  %v2200_v28 = vrot.slane %v1877_v10, 2  ;;  %v2145_v11 = vrot.slane %v1860_v55, 1  ;;  %v2146_v53 = vrot.slane %v1877_v10, 1  ;;  %v2308_v63 = vpop.permute.xlu1 %2307  ;;  %vm7691_vm5 = vmmov %vm7682_vm7 }
 0x132   :  { %v2111_v26 = vpop.permute.xlu0 %2110  ;;  %v2492_v46 = vsel %vm2485_vm13, %v2475_v1, %v2308_v63  ;;  %v2425_v30 = vsel %vm7688_vm11, %v2409_v24, %v6617_v60  ;;  %v2426_v8 = vsel %vm7691_vm5, %v5978_v41, %v2109_v32  ;;  %vm7692_vm6 = vmmov %vm7689_vm3 }
 0x133   :  { %2122 = vrot.lane.b32.xlu0 %v1860_v55, %s4954_s20  ;;  %v2201_v21 = vsel %vm7678_vm4, %v2199_v0, %v2200_v28  ;;  %v2147_v37 = vsel %vm1908_vm2, %v2145_v11, %v2146_v53  ;;  %v2442_v43 = vsel %vm7689_vm3, %v2425_v30, %v6655_v27  ;;  %vm7690_vm4 = vmmov %vm7684_vm1 }
 0x134   :  { %2232 = vrot.lane.b32.xlu1 %v2201_v21, %s4957_s29  ;;  %v2459_v58 = vsel %vm7690_vm4, %v2442_v43, %v2217_v51  ;;  %vm7693_vm7 = vmmov %vm7684_vm1 }
 0x135   :  { %v2165_v14 = vpop.permute.xlu1 %2164  ;;  %v2476_v44 = vsel %vm2468_vm15, %v2459_v58, %v6695_v5  ;;  %vm7695_vm8 = vmmov %vm7686_vm14 }
 0x136   :  { %v6716_v39 = vpop.permute.xlu0 %2309  ;;  %v2443_v36 = vsel %vm7692_vm6, %v2426_v8, %v2165_v14  ;;  %vm7696_vm1 = vmmov %vm7687_vm10 }
 0x137   :  { %2321 = vrot.lane.b32.xlu0 %v6659_v29, %s4958_s26  ;;  %v2493_v33 = vsel %vm2485_vm13, %v2476_v44, %v6716_v39  ;;  %vm7697_vm14 = vmmov %vm7691_vm5 }
 0x138   :  { %2323 = vrot.lane.b32.xlu1 %v2147_v37, %s4958_s26  ;;  %vm7698_vm10 = vmmov %vm7689_vm3 }
 0x139   :  { %v2353_v29 = vpop.permute.xlu1 %2352  ;;  %vm7699_vm11 = vmmov %vm7690_vm4 }
 0x13a   :  { %v2509_v31 = vsel %vm2502_vm12, %v2492_v46, %v2353_v29  ;;  %v1973_v34 = vpop.permute.xlu0 %1972  ;;  %vm7700_vm3 = vmmov %vm7695_vm8 }
 0x13b   :  { %2178 = vrot.lane.b32.xlu0 %v2147_v37, %s4956_s14  ;;  %4630 = vmatprep.mubr.msk.f32.mxu0 %vm2524_vm9, %v2509_v31  ;;  %v2395_v14 = vsel %vm7700_vm3, %v5925_v57, %v1973_v34  ;;  %vm7701_vm4 = vmmov %vm7696_vm1 }
 0x13d   :  { %v2167_v40 = vpop.permute.xlu1 %2166 }
 0x13e   :  { %v2219_v16 = vpop.permute.xlu0 %2218 }
 0x13f   :  { %2366 = vrot.lane.b32.xlu0 %v2044_v12, %s4959_s21  ;;  %v2460_v9 = vsel %vm7693_vm7, %v2443_v36, %v2219_v16 }
 0x141   :  { %v6738_v22 = vpop.permute.xlu1 %2354 }
 0x142   :  { %v2510_v60 = vsel %vm2502_vm12, %v2493_v33, %v6738_v22 }
 0x143   :  { %2278 = vrot.lane.b32.xlu0 %v1860_v55, %s4955_s23  ;;  %4631 = vmatmul.mubr.msk.f32.gmra.mrb[6].mxu0 %vm2524_vm9, %v2510_v60  ;;  %v2394_v55 = vsel %vm7695_vm8, %v7694_v3, %v6673_v23  ;;  %vm7702_vm8 = vmmov %vm7700_vm3 }
 0x144   :  { %v2410_v41 = vsel %vm7696_vm1, %v2394_v55, %v6687_v62 }
 0x145   :  { %v2064_v27 = vpop.permute.xlu1 %2063  ;;  %v1975_v13 = vpop.permute.xlu0 %1974  ;;  %v2427_v32 = vsel %vm7697_vm14, %v2410_v41, %v2111_v26  ;;  %vm7703_vm14 = vmmov %vm7691_vm5 }
 0x146   :  { %v2444_v28 = vsel %vm7698_vm10, %v2427_v32, %v2167_v40  ;;  %v2411_v18 = vsel %vm7701_vm4, %v2395_v14, %v2064_v27  ;;  %v2396_v57 = vsel %vm7702_vm8, %v6087_v49, %v1975_v13  ;;  %vm7704_vm10 = vmmov %vm7692_vm6 }
 0x147   :  { %2368 = vrot.lane.b32.xlu0 %v2201_v21, %s4959_s21  ;;  %vm7706_vm4 = vmmov %vm7696_vm1 }
 0x148   :  { %vm7707_vm8 = vmmov %vm7700_vm3 }
 0x149   :  { %v2267_v20 = vpop.permute.xlu1 %2266  ;;  %v2221_v61 = vpop.permute.xlu0 %2220 }
 0x14a   :  { %v2477_v48 = vsel %vm2468_vm15, %v2460_v9, %v2267_v20  ;;  %v2461_v11 = vsel %vm7699_vm11, %v2444_v28, %v2221_v61  ;;  %vm7705_vm11 = vmmov %vm7693_vm7 }
 0x14d   :  { %v2113_v54 = vpop.permute.xlu1 %2112  ;;  %v2066_v25 = vpop.permute.xlu0 %2065 }
 0x14e   :  { %v2428_v1 = vsel %vm7691_vm5, %v2411_v18, %v2113_v54  ;;  %v2412_v34 = vsel %vm7696_vm1, %v2396_v57, %v2066_v25 }
 0x151   :  { %v2312_v12 = vpop.permute.xlu1 %2311 }
 0x152   :  { %v2269_v4 = vpop.permute.xlu0 %2268  ;;  %v2494_v7 = vsel %vm2485_vm13, %v2477_v48, %v2312_v12 }
 0x153   :  { %v2478_v53 = vsel %vm2468_vm15, %v2461_v11, %v2269_v4 }
 0x155   :  { %v2169_v51 = vpop.permute.xlu1 %2168 }
 0x156   :  { %v2445_v29 = vsel %vm7692_vm6, %v2428_v1, %v2169_v51 }
 0x158   :  { %v2115_v35 = vpop.permute.xlu0 %2114 }
 0x159   :  { %v2357_v2 = vpop.permute.xlu1 %2356  ;;  %v2429_v44 = vsel %vm7703_vm14, %v2412_v34, %v2115_v35  ;;  %vm7708_vm14 = vmmov %vm7691_vm5 }
 0x15a   :  { %v2511_v38 = vsel %vm2502_vm12, %v2494_v7, %v2357_v2 }
 0x15b   :  { %4633 = vmatprep.mubr.msk.f32.mxu0 %vm2524_vm9, %v2511_v38 }
 0x15c   :  { %v2314_v10 = vpop.permute.xlu0 %2313 }
 0x15d   :  { %v2171_v0 = vpop.permute.xlu1 %2170  ;;  %v2495_v21 = vsel %vm2485_vm13, %v2478_v53, %v2314_v10 }
 0x15e   :  { %v2446_v60 = vsel %vm7704_vm10, %v2429_v44, %v2171_v0  ;;  %vm7709_vm10 = vmmov %vm7692_vm6 }
 0x160   :  { %v1977_v15 = vpop.permute.xlu0 %1976 }
 0x161   :  { %v2359_v63 = vpop.permute.xlu1 %2358  ;;  %v2397_v9 = vsel %vm7700_vm3, %v6243_v59, %v1977_v15 }
 0x162   :  { %v2512_v23 = vsel %vm2502_vm12, %v2495_v21, %v2359_v63 }
 0x163   :  { %4634 = vmatmul.mubr.msk.f32.gmra.mrb[8].mxu0 %vm2524_vm9, %v2512_v23 }
 0x164   :  { %v2223_v62 = vpop.permute.xlu0 %2222 }
 0x165   :  { %v2068_v19 = vpop.permute.xlu1 %2067  ;;  %v2462_v31 = vsel %vm7693_vm7, %v2445_v29, %v2223_v62 }
 0x166   :  { %v2413_v48 = vsel %vm7706_vm4, %v2397_v9, %v2068_v19  ;;  %vm7712_vm4 = vmmov %vm7696_vm1 }
 0x169   :  { %v2271_v52 = vpop.permute.xlu1 %2270 }
 0x16a   :  { %v2479_v42 = vsel %vm2468_vm15, %v2462_v31, %v2271_v52 }
 0x16d   :  { %v2117_v26 = vpop.permute.xlu1 %2116 }
 0x16e   :  { %v2430_v35 = vsel %vm7691_vm5, %v2413_v48, %v2117_v26 }
 0x16f   :  { %v1979_v47 = vpop.permute.xlu0 %1978 }
 0x170   :  { %v2398_v21 = vsel %vm7707_vm8, %v6390_v17, %v1979_v47 }
 0x171   :  { %v2316_v37 = vpop.permute.xlu1 %2315 }
 0x172   :  { %v2496_v24 = vsel %vm2485_vm13, %v2479_v42, %v2316_v37 }
 0x173   :  { %v2225_v56 = vpop.permute.xlu0 %2224 }
 0x174   :  { %v2463_v16 = vsel %vm7705_vm11, %v2446_v60, %v2225_v56  ;;  %vm7710_vm11 = vmmov %vm7700_vm3 }
 0x175   :  { %v2173_v46 = vpop.permute.xlu1 %2172  ;;  %vm7711_vm3 = vmmov %vm7693_vm7 }
 0x176   :  { %v2447_v38 = vsel %vm7692_vm6, %v2430_v35, %v2173_v46  ;;  %vm7713_vm6 = vmmov %vm7707_vm8 }
 0x177   :  { %v2070_v6 = vpop.permute.xlu0 %2069  ;;  %vm7715_vm8 = vmmov %vm7696_vm1 }
 0x178   :  { %v2414_v63 = vsel %vm7696_vm1, %v2398_v21, %v2070_v6  ;;  %vm7716_vm1 = vmmov %vm7711_vm3  ;;  %v3111_v21 = vld [vmem:[#allocation2 + $0x88] sm:$0xff] }
 0x179   :  { %v2361_v30 = vpop.permute.xlu1 %2360 }
 0x17a   :  { %v2513_v40 = vsel %vm2502_vm12, %v2496_v24, %v2361_v30 }
 0x17b   :  { %v2273_v43 = vpop.permute.xlu0 %2272  ;;  %4636 = vmatprep.mubr.msk.f32.mxu0 %vm2524_vm9, %v2513_v40 }
 0x17c   :  { %v2480_v27 = vsel %vm2468_vm15, %v2463_v16, %v2273_v43 }
 0x17f   :  { %v2119_v58 = vpop.permute.xlu0 %2118 }
 0x180   :  { %v2431_v23 = vsel %vm7708_vm14, %v2414_v63, %v2119_v58  ;;  %vm7717_vm14 = vmmov %vm7691_vm5  ;;  %v3126_v63 = vld [vmem:[#allocation2 + $0x100] sm:$0xff] }
 0x181   :  { %v2175_v33 = vpop.permute.xlu1 %2174 }
 0x182   :  { %v2448_v19 = vsel %vm7709_vm10, %v2431_v23, %v2175_v33  ;;  %v3127_v23 = vld [vmem:[#allocation2 + $0x108] sm:$0xff] }
 0x183   :  { %v2318_v20 = vpop.permute.xlu0 %2317 }
 0x184   :  { %v2497_v61 = vsel %vm2485_vm13, %v2480_v27, %v2318_v20 }
 0x185   :  { %v2363_v54 = vpop.permute.xlu1 %2362 }
 0x186   :  { %v2514_v12 = vsel %vm2502_vm12, %v2497_v61, %v2363_v54 }
 0x187   :  { %4637 = vmatmul.mubr.msk.f32.gmra.mrb[10].mxu0 %vm2524_vm9, %v2514_v12  ;;  %v1981_v49 = vpop.permute.xlu0 %1980 }
 0x188   :  { %v2399_v17 = vsel %vm7713_vm6, %v6527_v45, %v1981_v49 }
 0x189   :  { %v2072_v13 = vpop.permute.xlu1 %2071 }
 0x18a   :  { %v2415_v46 = vsel %vm7715_vm8, %v2399_v17, %v2072_v13 }
 0x18b   :  { %v2227_v4 = vpop.permute.xlu0 %2226 }
 0x18c   :  { %v2464_v3 = vsel %vm7693_vm7, %v2447_v38, %v2227_v4  ;;  %vm7714_vm7 = vmmov %vm7709_vm10 }
 0x18d   :  { %v2275_v25 = vpop.permute.xlu1 %2274  ;;  %vm7718_vm10 = vmmov %vm7714_vm7 }
 0x18e   :  { %v2481_v55 = vsel %vm2468_vm15, %v2464_v3, %v2275_v25 }
 0x192   :  { %v2121_v8 = vpop.permute.xlu1 %2120 }
 0x193   :  { %v2432_v31 = vsel %vm7717_vm14, %v2415_v46, %v2121_v8 }
 0x195   :  { %v1983_v51 = vpop.permute.xlu0 %1982 }
 0x196   :  { %v2320_v36 = vpop.permute.xlu1 %2319  ;;  %v2400_v62 = vsel %vm7710_vm11, %v6649_v50, %v1983_v51  ;;  %vm7719_vm11 = vmmov %vm7716_vm1 }
 0x197   :  { %v2498_v32 = vsel %vm2485_vm13, %v2481_v55, %v2320_v36 }
 0x199   :  { %v2229_v7 = vpop.permute.xlu0 %2228 }
 0x19a   :  { %v2177_v2 = vpop.permute.xlu1 %2176  ;;  %v2465_v52 = vsel %vm7711_vm3, %v2448_v19, %v2229_v7  ;;  %v4743_v19 = vpack.c.bf16 %v3127_v23, %v3126_v63  ;;  %v3152_v23 = vld [vmem:[#allocation2 + $0x1d0] sm:$0xff] }
 0x19b   :  { %v2449_v6 = vsel %vm7718_vm10, %v2432_v31, %v2177_v2  ;;  %v3097_v31 = vld [vmem:[#allocation2 + $0x18] sm:$0xff] }
 0x19d   :  { %v2074_v41 = vpop.permute.xlu0 %2073 }
 0x19e   :  { %v2365_v10 = vpop.permute.xlu1 %2364  ;;  %v2416_v26 = vsel %vm7712_vm4, %v2400_v62, %v2074_v41  ;;  %v3094_v62 = vld [vmem:[#allocation2] sm:$0xff] }
 0x19f   :  { %v2515_v0 = vsel %vm2502_vm12, %v2498_v32, %v2365_v10 }
 0x1a0   :  { %4639 = vmatprep.mubr.msk.f32.mxu0 %vm2524_vm9, %v2515_v0 }
 0x1a1   :  { %v2277_v59 = vpop.permute.xlu0 %2276 }
 0x1a2   :  { %v2231_v53 = vpop.permute.xlu1 %2230  ;;  %v2482_v14 = vsel %vm2468_vm15, %v2465_v52, %v2277_v59  ;;  %v3142_v59 = vld [vmem:[#allocation2 + $0x180] sm:$0xff]  ;;  %v3095_v52 = vld [vmem:[#allocation2 + $0x8] sm:$0xff] }
 0x1a3   :  { %v2466_v42 = vsel %vm7719_vm11, %v2449_v6, %v2231_v53 }
 0x1a5   :  { %v2123_v28 = vpop.permute.xlu0 %2122 }
 0x1a6   :  { %v2233_v37 = vpop.permute.xlu1 %2232  ;;  %v2433_v56 = vsel %vm7691_vm5, %v2416_v26, %v2123_v28  ;;  %v3143_v28 = vld [vmem:[#allocation2 + $0x188] sm:$0xff]  ;;  %v4711_v26 = vpack.c.bf16 %v3095_v52, %v3094_v62  ;;  %v3121_v52 = vld [vmem:[#allocation2 + $0xd8] sm:$0xff] }
 0x1a7   :  { %v4741_v53 = vpack.c.bf16 %v3143_v28, %v3142_v59  ;;  %v3135_v59 = vld [vmem:[#allocation2 + $0x148] sm:$0xff] }
 0x1a9   :  { %v2322_v11 = vpop.permute.xlu0 %2321  ;;  %4742 = vmatprep.subr.bf16.mxu0 %v4741_v53  ;;  %v3102_v53 = vld [vmem:[#allocation2 + $0x40] sm:$0xff] }
 0x1aa   :  { %v2499_v47 = vsel %vm2485_vm13, %v2482_v14, %v2322_v11  ;;  %v2324_v40 = vpop.permute.xlu1 %2323  ;;  %v3110_v11 = vld [vmem:[#allocation2 + $0x80] sm:$0xff]  ;;  %4744 = vmatpush3.bf16.msra.mxu0 %v4743_v19  ;;  %v3145_v14 = vld [vmem:[#allocation2 + $0x198] sm:$0xff]  ;;  %v3120_v19 = vld [vmem:[#allocation2 + $0xd0] sm:$0xff] }
 0x1ad   :  { %v2179_v15 = vpop.permute.xlu0 %2178 }
 0x1ae   :  { %v2450_v18 = vsel %vm7714_vm7, %v2433_v56, %v2179_v15  ;;  %v4709_v15 = vpack.c.bf16 %v3111_v21, %v3110_v11  ;;  %v3112_v56 = vld [vmem:[#allocation2 + $0x90] sm:$0xff]  ;;  %v3103_v21 = vld [vmem:[#allocation2 + $0x48] sm:$0xff] }
 0x1af   :  { %v2467_v50 = vsel %vm7716_vm1, %v2450_v18, %v2233_v37  ;;  %v3144_v37 = vld [vmem:[#allocation2 + $0x190] sm:$0xff]  ;;  %v4727_v63 = vpack.c.bf16 %v3103_v21, %v3102_v53  ;;  %v3159_v53 = vld [vmem:[#allocation2 + $0x208] sm:$0xff] }
 0x1b0   :  { %v2484_v45 = vsel %vm2468_vm15, %v2467_v50, %v6695_v5  ;;  %4710 = vmatprep.subr.bf16.mxu1 %v4709_v15  ;;  %v4745_v17 = vpack.c.bf16 %v3145_v14, %v3144_v37  ;;  %v3128_v18 = vld [vmem:[#allocation2 + $0x110] sm:$0xff]  ;;  %v3153_v15 = vld [vmem:[#allocation2 + $0x1d8] sm:$0xff]  ;;  %v4729_v14 = vpack.c.bf16 %v3121_v52, %v3120_v19 }
 0x1b1   :  { %v2367_v1 = vpop.permute.xlu0 %2366  ;;  %v2501_v43 = vsel %vm2485_vm13, %v2484_v45, %v6716_v39  ;;  %4712 = vmatpush3.bf16.msra.mxu1 %v4711_v26  ;;  %v3147_v45 = vld [vmem:[#allocation2 + $0x1a8] sm:$0xff]  ;;  %v4761_v62 = vpack.c.bf16 %v3153_v15, %v3152_v23  ;;  %v3136_v26 = vld [vmem:[#allocation2 + $0x150] sm:$0xff]  ;;  %v3137_v37 = vld [vmem:[#allocation2 + $0x158] sm:$0xff] }
 0x1b2   :  { %v2516_v29 = vsel %vm2502_vm12, %v2499_v47, %v2367_v1  ;;  %v2518_v44 = vsel %vm2502_vm12, %v2501_v43, %v6738_v22  ;;  %v3113_v47 = vld [vmem:[#allocation2 + $0x98] sm:$0xff]  ;;  %4746 = vmatprep.subr.bf16.mxu0 %v4745_v17  ;;  %v3130_v43 = vld [vmem:[#allocation2 + $0x120] sm:$0xff]  ;;  %v3104_v17 = vld [vmem:[#allocation2 + $0x50] sm:$0xff] }
 0x1b3   :  { %4640 = vmatmul.mubr.msk.f32.gmra.mrb[12].mxu0 %vm2524_vm9, %v2516_v29  ;;  %v3129_v1 = vld [vmem:[#allocation2 + $0x118] sm:$0xff]  ;;  %v4713_v46 = vpack.c.bf16 %v3113_v47, %v3112_v56  ;;  %v3096_v29 = vld [vmem:[#allocation2 + $0x10] sm:$0xff]  ;;  %v4763_v56 = vpack.c.bf16 %v3137_v37, %v3136_v26  ;;  %v3178_v26 = vld [vmem:[#allocation2 + $0x2a0] sm:$0xff] }
 0x1b4   :  { %v4747_v50 = vpack.c.bf16 %v3129_v1, %v3128_v18  ;;  %v4715_v6 = vpack.c.bf16 %v3097_v31, %v3096_v29  ;;  %v3105_v47 = vld [vmem:[#allocation2 + $0x58] sm:$0xff]  ;;  %v3122_v29 = vld [vmem:[#allocation2 + $0xe0] sm:$0xff]  ;;  %v3160_v19 = vld [vmem:[#allocation2 + $0x210] sm:$0xff] }
 0x1b5   :  { %v2279_v24 = vpop.permute.xlu0 %2278  ;;  %4714 = vmatprep.subr.bf16.mxu1 %v4713_v46  ;;  %v4731_v18 = vpack.c.bf16 %v3105_v47, %v3104_v17  ;;  %v3154_v46 = vld [vmem:[#allocation2 + $0x1e0] sm:$0xff]  ;;  %v3177_v23 = vld [vmem:[#allocation2 + $0x298] sm:$0xff]  ;;  %v3179_v37 = vld [vmem:[#allocation2 + $0x2a8] sm:$0xff] }
 0x1b6   :  { %v2483_v30 = vsel %vm2468_vm15, %v2466_v42, %v2279_v24  ;;  %4748 = vmatpush3.bf16.msra.mxu0 %v4747_v50  ;;  %v3146_v42 = vld [vmem:[#allocation2 + $0x1a0] sm:$0xff]  ;;  %4716 = vmatpush3.bf16.msra.mxu1 %v4715_v6  ;;  %v3155_v50 = vld [vmem:[#allocation2 + $0x1e8] sm:$0xff] }
 0x1b7   :  { %v2500_v57 = vsel %vm2485_vm13, %v2483_v30, %v2324_v40  ;;  %v3114_v24 = vld [vmem:[#allocation2 + $0xa0] sm:$0xff]  ;;  %v4749_v30 = vpack.c.bf16 %v3147_v45, %v3146_v42  ;;  %v3115_v40 = vld [vmem:[#allocation2 + $0xa8] sm:$0xff]  ;;  %v4765_v6 = vpack.c.bf16 %v3155_v50, %v3154_v46 }
 0x1b8   :  { %v3123_v42 = vld [vmem:[#allocation2 + $0xe8] sm:$0xff]  ;;  %v3138_v45 = vld [vmem:[#allocation2 + $0x160] sm:$0xff] }
 0x1b9   :  { %v2369_v34 = vpop.permute.xlu0 %2368  ;;  %4750 = vmatprep.subr.bf16.mxu0 %v4749_v30  ;;  %v3162_v17 = vld [vmem:[#allocation2 + $0x220] sm:$0xff]  ;;  %v3163_v47 = vld [vmem:[#allocation2 + $0x228] sm:$0xff] }
 0x1ba   :  { %v2517_v58 = vsel %vm2502_vm12, %v2500_v57, %v2369_v34  ;;  %v6827_v5 = vpop.f32.mrb[0].mxu0  ;;  %v3131_v57 = vld [vmem:[#allocation2 + $0x128] sm:$0xff]  ;;  %v4717_v34 = vpack.c.bf16 %v3115_v40, %v3114_v24  ;;  %v4783_v46 = vpack.c.bf16 %v3163_v47, %v3162_v17  ;;  %vm7724_vm12 = vcmask 1045504  }
 0x1bb   :  { %4642 = vmatprep.mubr.msk.f32.mxu0 %vm2524_vm9, %v2517_v58  ;;  %v2746_v33 = vmul.f32 %v6827_v5, %v6827_v5  ;;  %v6831_v60 = vpop.f32.mrb[1].mxu0  ;;  %v4751_v58 = vpack.c.bf16 %v3131_v57, %v3130_v43  ;;  %v3139_v24 = vld [vmem:[#allocation2 + $0x168] sm:$0xff]  ;;  %v4733_v43 = vpack.c.bf16 %v3123_v42, %v3122_v29  ;;  %vm7725_vm13 = vmmov %vm7724_vm12 }
 0x1bc   :  { %4643 = vmatmul.mubr.msk.f32.gmra.mrb[14].mxu0 %vm2524_vm9, %v2518_v44  ;;  %v2724_v39 = vadd.f32 %v6827_v5, %v6831_v60  ;;  %v2745_v16 = vmul.f32 %v6831_v60, %v6831_v60  ;;  %v3098_v44 = vld [vmem:[#allocation2 + $0x20] sm:$0xff]  ;;  %4718 = vmatprep.subr.bf16.mxu1 %v4717_v34  ;;  %v4767_v57 = vpack.c.bf16 %v3139_v24, %v3138_v45  ;;  %vm6884_vm9 = vmneg %vm1843_vm0  ;;  %v3180_v24 = vld [vmem:[#allocation2 + $0x2b0] sm:$0xff] }
 0x1bd   :  { %4752 = vmatpush3.bf16.msra.mxu0 %v4751_v58  ;;  %v3106_v34 = vld [vmem:[#allocation2 + $0x60] sm:$0xff]  ;;  %v3107_v58 = vld [vmem:[#allocation2 + $0x68] sm:$0xff]  ;;  %vm7726_vm15 = vmmov %vm7724_vm12 }
 0x1be   :  { %v2761_v27 = vadd.f32 %v2746_v33, %v2745_v16  ;;  %v3099_v33 = vld [vmem:[#allocation2 + $0x28] sm:$0xff]  ;;  %v3148_v16 = vld [vmem:[#allocation2 + $0x1b0] sm:$0xff]  ;;  %vm7727_vm3 = vmmov %vm7724_vm12 }
 0x1bf   :  { %vm7728_vm4 = vmmov %vm7727_vm3 }
 0x1c0   :  { %vm7729_vm5 = vmmov %vm7727_vm3 }
 0x1c1   :  { %vm7730_vm6 = vmmov %vm7727_vm3 }
 0x1c2   :  { %vm7732_vm7 = vmmov %vm7727_vm3 }
 0x1c3   :  { %vm7733_vm8 = vmmov %vm7727_vm3 }
 0x1c4   :  { %vm7734_vm1 = vmmov %vm7727_vm3 }
 0x1c5   :  { %vm7735_vm14 = vmmov %vm7734_vm1 }
 0x1c6   :  { %vm7736_vm10 = vmmov %vm7734_vm1 }
 0x1c7   :  { %vm7737_vm11 = vmmov %vm7734_vm1 }
 0x1da   :  { %v6837_v20 = vpop.f32.mrb[2].mxu0 }
 0x1db   :  { %v6839_v61 = vpop.f32.mrb[3].mxu0  ;;  %v2748_v12 = vmul.f32 %v6837_v20, %v6837_v20 }
 0x1dc   :  { %v2725_v22 = vadd.f32 %v2724_v39, %v6839_v61  ;;  %v2747_v54 = vmul.f32 %v6839_v61, %v6839_v61  ;;  %v4719_v39 = vpack.c.bf16 %v3099_v33, %v3098_v44  ;;  %v4735_v44 = vpack.c.bf16 %v3107_v58, %v3106_v34  ;;  %v3165_v34 = vld [vmem:[#allocation2 + $0x238] sm:$0xff] }
 0x1de   :  { %v2762_v49 = vadd.f32 %v2761_v27, %v2747_v54  ;;  %v2726_v13 = vadd.f32 %v6837_v20, %v2725_v22  ;;  %v3149_v27 = vld [vmem:[#allocation2 + $0x1b8] sm:$0xff]  ;;  %v3116_v22 = vld [vmem:[#allocation2 + $0xb0] sm:$0xff]  ;;  %4720 = vmatpush3.bf16.msra.mxu1 %v4719_v39 }
 0x1df   :  { %v4753_v54 = vpack.c.bf16 %v3149_v27, %v3148_v16  ;;  %v3156_v27 = vld [vmem:[#allocation2 + $0x1f0] sm:$0xff] }
 0x1e0   :  { %v2763_v25 = vadd.f32 %v2762_v49, %v2748_v12  ;;  %v3117_v12 = vld [vmem:[#allocation2 + $0xb8] sm:$0xff]  ;;  %v3132_v49 = vld [vmem:[#allocation2 + $0x130] sm:$0xff] }
 0x1e1   :  { %4754 = vmatprep.subr.bf16.mxu0 %v4753_v54 }
 0x1f9   :  { %v6847_v4 = vpop.f32.mrb[4].mxu0 }
 0x1fa   :  { %v6849_v8 = vpop.f32.mrb[5].mxu0  ;;  %v2750_v9 = vmul.f32 %v6847_v4, %v6847_v4 }
 0x1fb   :  { %v2727_v51 = vadd.f32 %v2726_v13, %v6849_v8  ;;  %v2749_v36 = vmul.f32 %v6849_v8, %v6849_v8  ;;  %v3133_v13 = vld [vmem:[#allocation2 + $0x138] sm:$0xff] }
 0x1fd   :  { %v2764_v48 = vadd.f32 %v2763_v25, %v2749_v36  ;;  %v2728_v7 = vadd.f32 %v6847_v4, %v2727_v51  ;;  %v4721_v25 = vpack.c.bf16 %v3117_v12, %v3116_v22  ;;  %v4755_v51 = vpack.c.bf16 %v3133_v13, %v3132_v49  ;;  %v3100_v36 = vld [vmem:[#allocation2 + $0x30] sm:$0xff]  ;;  %v3125_v12 = vld [vmem:[#allocation2 + $0xf8] sm:$0xff] }
 0x1fe   :  { %v3124_v22 = vld [vmem:[#allocation2 + $0xf0] sm:$0xff]  ;;  %v3141_v13 = vld [vmem:[#allocation2 + $0x178] sm:$0xff] }
 0x1ff   :  { %v2765_v35 = vadd.f32 %v2764_v48, %v2750_v9  ;;  %v3101_v9 = vld [vmem:[#allocation2 + $0x38] sm:$0xff]  ;;  %4722 = vmatprep.subr.bf16.mxu1 %v4721_v25  ;;  %4756 = vmatpush3.bf16.msra.mxu0 %v4755_v51  ;;  %v3140_v49 = vld [vmem:[#allocation2 + $0x170] sm:$0xff]  ;;  %v4737_v51 = vpack.c.bf16 %v3125_v12, %v3124_v22 }
 0x200   :  { %v4723_v48 = vpack.c.bf16 %v3101_v9, %v3100_v36  ;;  %v4771_v36 = vpack.c.bf16 %v3141_v13, %v3140_v49  ;;  %v3108_v9 = vld [vmem:[#allocation2 + $0x70] sm:$0xff]  ;;  %v3169_v13 = vld [vmem:[#allocation2 + $0x258] sm:$0xff] }
 0x201   :  { %v3184_v22 = vld [vmem:[#allocation2 + $0x2d0] sm:$0xff] }
 0x202   :  { %4724 = vmatpush3.bf16.msra.mxu1 %v4723_v48  ;;  %v3109_v48 = vld [vmem:[#allocation2 + $0x78] sm:$0xff]  ;;  %v3168_v49 = vld [vmem:[#allocation2 + $0x250] sm:$0xff] }
 0x216   :  { %v6857_v2 = vpop.f32.mrb[6].mxu0 }
 0x217   :  { %v6859_v38 = vpop.f32.mrb[7].mxu0  ;;  %v2752_v41 = vmul.f32 %v6857_v2, %v6857_v2 }
 0x218   :  { %v2729_v3 = vadd.f32 %v2728_v7, %v6859_v38  ;;  %v2751_v55 = vmul.f32 %v6859_v38, %v6859_v38  ;;  %v3150_v7 = vld [vmem:[#allocation2 + $0x1c0] sm:$0xff] }
 0x21a   :  { %v2766_v32 = vadd.f32 %v2765_v35, %v2751_v55  ;;  %v6867_v10 = vadd.f32 %v6857_v2, %v2729_v3  ;;  %v3151_v35 = vld [vmem:[#allocation2 + $0x1c8] sm:$0xff]  ;;  %v3118_v3 = vld [vmem:[#allocation2 + $0xc0] sm:$0xff] }
 0x21b   :  { %v4757_v55 = vpack.c.bf16 %v3151_v35, %v3150_v7  ;;  %v4739_v7 = vpack.c.bf16 %v3109_v48, %v3108_v9  ;;  %v3206_v35 = vld [vmem:[#allocation2 + $0x380] sm:$0xff] }
 0x21c   :  { %v6869_v0 = vadd.f32 %v2766_v32, %v2752_v41  ;;  %v3119_v41 = vld [vmem:[#allocation2 + $0xc8] sm:$0xff]  ;;  %v3134_v32 = vld [vmem:[#allocation2 + $0x140] sm:$0xff] }
 0x21d   :  { %v4725_v28 = vpack.c.bf16 %v3119_v41, %v3118_v3  ;;  %v4759_v11 = vpack.c.bf16 %v3135_v59, %v3134_v32  ;;  %4758 = vmatprep.subr.bf16.mxu0 %v4757_v55  ;;  %v3207_v3 = vld [vmem:[#allocation2 + $0x388] sm:$0xff]  ;;  %v7722_v41 = vld [vmem:[#allocation8_spill] sm:$0xff] }
 0x21e   :  { %v4805_v55 = vpack.c.bf16 %v3207_v3, %v3206_v35  ;;  %v3174_v32 = vld [vmem:[#allocation2 + $0x280] sm:$0xff]  ;;  %v3175_v59 = vld [vmem:[#allocation2 + $0x288] sm:$0xff]  ;;  %v3188_v3 = vld [vmem:[#allocation2 + $0x2f0] sm:$0xff] }
 0x21f   :  { %4726 = vmatprep.subr.bf16.mxu1 %v4725_v28  ;;  %4760 = vmatpush3.bf16.msra.mxu0 %v4759_v11  ;;  %v4773_v28 = vpack.c.bf16 %v3175_v59, %v3174_v32  ;;  %v3158_v11 = vld [vmem:[#allocation2 + $0x200] sm:$0xff]  ;;  %v3172_v32 = vld [vmem:[#allocation2 + $0x270] sm:$0xff] }
 0x220   :  { %4728 = vmatpush3.bf16.msra.mxu1 %v4727_v63  ;;  %4762 = vmatprep.subr.bf16.mxu0 %v4761_v62  ;;  %v4775_v21 = vpack.c.bf16 %v3159_v53, %v3158_v11  ;;  %v3176_v63 = vld [vmem:[#allocation2 + $0x290] sm:$0xff]  ;;  %v3161_v62 = vld [vmem:[#allocation2 + $0x218] sm:$0xff]  ;;  %v3170_v48 = vld [vmem:[#allocation2 + $0x260] sm:$0xff] }
 0x221   :  { %4730 = vmatprep.subr.bf16.mxu1 %v4729_v14  ;;  %v4777_v15 = vpack.c.bf16 %v3177_v23, %v3176_v63  ;;  %v4779_v52 = vpack.c.bf16 %v3161_v62, %v3160_v19  ;;  %v4781_v14 = vpack.c.bf16 %v3179_v37, %v3178_v26  ;;  %v3222_v11 = vld [vmem:[#allocation2 + $0x400] sm:$0xff]  ;;  %v3223_v53 = vld [vmem:[#allocation2 + $0x408] sm:$0xff] }
 0x222   :  { %v6901_v63 = vpack.c.bf16 %v3223_v53, %v3222_v11 }
 0x223   :  { %4764 = vmatpush3.bf16.msra.mxu0 %v4763_v56 }
 0x224   :  { %4732 = vmatpush3.bf16.msra.mxu1 %v4731_v18  ;;  %4766 = vmatprep.subr.bf16.mxu0 %v4765_v6 }
 0x225   :  { %4734 = vmatprep.subr.bf16.mxu1 %v4733_v43 }
 0x227   :  { %4768 = vmatpush3.bf16.msra.mxu0 %v4767_v57  ;;  %v3164_v57 = vld [vmem:[#allocation2 + $0x230] sm:$0xff] }
 0x228   :  { %4736 = vmatpush3.bf16.msra.mxu1 %v4735_v44  ;;  %v4787_v58 = vpack.c.bf16 %v3165_v34, %v3164_v57  ;;  %v3182_v44 = vld [vmem:[#allocation2 + $0x2c0] sm:$0xff] }
 0x229   :  { %4738 = vmatprep.subr.bf16.mxu1 %v4737_v51  ;;  %v3186_v51 = vld [vmem:[#allocation2 + $0x2e0] sm:$0xff] }
 0x22c   :  { %4740 = vmatpush3.bf16.msra.mxu1 %v4739_v7  ;;  %v3171_v7 = vld [vmem:[#allocation2 + $0x268] sm:$0xff] }
 0x22d   :  { %4774 = vmatprep.subr.bf16.mxu1 %v4773_v28  ;;  %v4799_v35 = vpack.c.bf16 %v3171_v7, %v3170_v48  ;;  %v3173_v28 = vld [vmem:[#allocation2 + $0x278] sm:$0xff]  ;;  %v2723_v7 = vld [vmem:[%s7628_s3] sm:$0x1] }
 0x22f   :  { %4143 = vmatmul.mubr.msk.f32.vlgmr.msra.gmra.mrb[0].mxu1 %vm6884_vm9, %v7722_v41 }
 0x230   :  { %4776 = vmatpush3.bf16.msra.mxu1 %v4775_v21  ;;  %v4803_v21 = vpack.c.bf16 %v3173_v28, %v3172_v32 }
 0x231   :  { %4778 = vmatprep.subr.bf16.mxu1 %v4777_v15 }
 0x234   :  { %4780 = vmatpush3.bf16.msra.mxu1 %v4779_v52 }
 0x235   :  { %4782 = vmatprep.subr.bf16.mxu1 %v4781_v14 }
 0x236   :  { %v6871_v1 = vpop.f32.mrb[8].mxu0 }
 0x237   :  { %v6873_v31 = vpop.f32.mrb[9].mxu0  ;;  %v2754_v33 = vmul.f32 %v6871_v1, %v6871_v1 }
 0x238   :  { %v2731_v30 = vadd.f32 %v6867_v10, %v6873_v31  ;;  %v2753_v40 = vmul.f32 %v6873_v31, %v6873_v31  ;;  %v3157_v10 = vld [vmem:[#allocation2 + $0x1f8] sm:$0xff]  ;;  %4784 = vmatpush3.bf16.msra.mxu1 %v4783_v46 }
 0x239   :  { %v4769_v54 = vpack.c.bf16 %v3157_v10, %v3156_v27  ;;  %v3167_v27 = vld [vmem:[#allocation2 + $0x248] sm:$0xff] }
 0x23a   :  { %v2768_v39 = vadd.f32 %v6869_v0, %v2753_v40  ;;  %v2732_v16 = vadd.f32 %v6871_v1, %v2731_v30  ;;  %v3181_v30 = vld [vmem:[#allocation2 + $0x2b8] sm:$0xff] }
 0x23b   :  { %4770 = vmatprep.subr.bf16.mxu0 %v4769_v54  ;;  %v4785_v43 = vpack.c.bf16 %v3181_v30, %v3180_v24  ;;  %v3185_v54 = vld [vmem:[#allocation2 + $0x2d8] sm:$0xff] }
 0x23c   :  { %v2769_v25 = vadd.f32 %v2768_v39, %v2754_v33  ;;  %4772 = vmatpush3.bf16.msra.mxu0 %v4771_v36  ;;  %v3183_v33 = vld [vmem:[#allocation2 + $0x2c8] sm:$0xff]  ;;  %v4793_v12 = vpack.c.bf16 %v3185_v54, %v3184_v22 }
 0x23d   :  { %4806 = vmatprep.subr.bf16.mxu0 %v4805_v55  ;;  %4786 = vmatprep.subr.bf16.mxu1 %v4785_v43  ;;  %v4789_v39 = vpack.c.bf16 %v3183_v33, %v3182_v44  ;;  %v3187_v36 = vld [vmem:[#allocation2 + $0x2e8] sm:$0xff]  ;;  %v3189_v55 = vld [vmem:[#allocation2 + $0x2f8] sm:$0xff] }
 0x23e   :  { %4788 = vmatpush3.bf16.msra.mxu1 %v4787_v58  ;;  %v4797_v9 = vpack.c.bf16 %v3187_v36, %v3186_v51  ;;  %v4801_v59 = vpack.c.bf16 %v3189_v55, %v3188_v3  ;;  %v2722_v51 = vld [vmem:[%s7627_s2] sm:$0x1] }
 0x23f   :  { %4790 = vmatprep.subr.bf16.mxu1 %v4789_v39 }
 0x25a   :  { %v6891_v56 = vpop.f32.mrb[10].mxu0 }
 0x25b   :  { %v6893_v18 = vpop.f32.mrb[11].mxu0  ;;  %v2756_v6 = vmul.f32 %v6891_v56, %v6891_v56 }
 0x25c   :  { %v2733_v50 = vadd.f32 %v2732_v16, %v6893_v18  ;;  %v2755_v29 = vmul.f32 %v6893_v18, %v6893_v18  ;;  %v3166_v16 = vld [vmem:[#allocation2 + $0x240] sm:$0xff] }
 0x25d   :  { %v4791_v10 = vpack.c.bf16 %v3167_v27, %v3166_v16 }
 0x25e   :  { %v2770_v42 = vadd.f32 %v2769_v25, %v2755_v29  ;;  %v2734_v45 = vadd.f32 %v6891_v56, %v2733_v50  ;;  %v4795_v25 = vpack.c.bf16 %v3169_v13, %v3168_v49  ;;  %v2793_v13 = vlaneseq }
 0x25f   :  { %4792 = vmatpush3.bf16.msra.mxu1 %v4791_v10 }
 0x260   :  { %v2771_v40 = vadd.f32 %v2770_v42, %v2756_v6  ;;  %4794 = vmatprep.subr.bf16.mxu1 %v4793_v12 }
 0x263   :  { %4796 = vmatpush3.bf16.msra.mxu1 %v4795_v25  ;;  %v2794_v25 = vshrl.u32 %v2793_v13, 7  ;;  %v3211_v13 = vld [vmem:[#allocation2 + $0x3a8] sm:$0xff] }
 0x264   :  { %4798 = vmatprep.subr.bf16.mxu1 %v4797_v9 }
 0x265   :  { %v6917_v36 = vsub.s32 0, %v2794_v25 }
 0x267   :  { %4800 = vmatpush3.bf16.msra.mxu1 %v4799_v35 }
 0x268   :  { %4802 = vmatprep.subr.bf16.mxu1 %v4801_v59 }
 0x26b   :  { %4804 = vmatpush3.bf16.msra.mxu1 %v4803_v21 }
 0x26c   :  { %4869 = vmatprep.subr.bf16.mxu1 %v6901_v63 }
 0x286   :  { %v6904_v23 = vpop.f32.mrb[12].mxu0 }
 0x287   :  { %v2703_v15 = vpop.f32.mrb[13].mxu0  ;;  %v2758_v52 = vmul.f32 %v6904_v23, %v6904_v23 }
 0x288   :  { %v2735_v19 = vadd.f32 %v2734_v45, %v2703_v15  ;;  %v2757_v62 = vmul.f32 %v2703_v15, %v2703_v15 }
 0x28a   :  { %v2772_v26 = vadd.f32 %v2771_v40, %v2757_v62  ;;  %v2736_v37 = vadd.f32 %v6904_v23, %v2735_v19 }
 0x28c   :  { %v2773_v14 = vadd.f32 %v2772_v26, %v2758_v52  ;;  %v3190_v26 = vld [vmem:[#allocation2 + $0x300] sm:$0xff] }
 0x28f   :  { %v6909_v17 = vpop.f32.mrb[14].mxu0 }
 0x290   :  { %v2713_v47 = vpop.f32.mrb[15].mxu0  ;;  %v2760_v29 = vmul.f32 %v6909_v17, %v6909_v17 }
 0x291   :  { %v2737_v46 = vadd.f32 %v2736_v37, %v2713_v47  ;;  %v2759_v50 = vmul.f32 %v2713_v47, %v2713_v47  ;;  %v3191_v37 = vld [vmem:[#allocation2 + $0x308] sm:$0xff] }
 0x293   :  { %v2738_v6 = vadd.f32 %v6909_v17, %v2737_v46  ;;  %v2774_v42 = vadd.f32 %v2773_v14, %v2759_v50 }
 0x295   :  { %v2739_v45 = vrot.slane %v2738_v6, 4  ;;  %v2775_v24 = vadd.f32 %v2774_v42, %v2760_v29  ;;  %v3192_v42 = vld [vmem:[#allocation2 + $0x310] sm:$0xff] }
 0x297   :  { %v2740_v30 = vadd.f32 %v2739_v45, %v2738_v6  ;;  %v2776_v43 = vrot.slane %v2775_v24, 4  ;;  %v3209_v6 = vld [vmem:[#allocation2 + $0x398] sm:$0xff] }
 0x298   :  { %v3193_v45 = vld [vmem:[#allocation2 + $0x318] sm:$0xff] }
 0x299   :  { %v2741_v57 = vrot.slane %v2740_v30, 2  ;;  %v2777_v40 = vadd.f32 %v2776_v43, %v2775_v24 }
 0x29b   :  { %v2742_v34 = vadd.f32 %v2741_v57, %v2740_v30  ;;  %v2778_v58 = vrot.slane %v2777_v40, 2  ;;  %v4807_v30 = vpack.c.bf16 %v3191_v37, %v3190_v26 }
 0x29d   :  { %v2743_v44 = vrot.slane %v2742_v34, 1  ;;  %v2779_v33 = vadd.f32 %v2778_v58, %v2777_v40  ;;  %v4811_v58 = vpack.c.bf16 %v3193_v45, %v3192_v42 }
 0x29f   :  { %v2744_v39 = vadd.f32 %v2743_v44, %v2742_v34  ;;  %v2780_v16 = vrot.slane %v2779_v33, 1 }
 0x2a1   :  { %v2781_v27 = vadd.f32 %v2780_v16, %v2779_v33  ;;  %v2783_v10 = vmul.f32 0.0078125, %v2744_v39 }
 0x2a3   :  { %v2784_v22 = vmul.f32 0.0078125, %v2781_v27  ;;  %v2785_v54 = vmul.f32 %v2783_v10, %v2783_v10  ;;  %v7723_v27 = vld [vmem:[#allocation9_spill] sm:$0xff] }
 0x2a5   :  { %v2786_v12 = vsub.f32 %v2784_v22, %v2785_v54 }
 0x2a7   :  { %v2787_v49 = vadd.f32 1e-05, %v2786_v12 }
 0x2a9   :  { %4897 = vrsqrt.f32 %v2787_v49  ;;  %v3210_v49 = vld [vmem:[#allocation2 + $0x3a0] sm:$0xff] }
 0x2b3   :  { %v4898_v9 = vpop.eup %4897 }
 0x2b4   :  { %v2789_v48 = vmul.f32 %v4898_v9, %v2722_v51 }
 0x2b6   :  { %v2790_v35 = vmul.f32 %v2789_v48, %v2783_v10  ;;  %v6923_v3 = vrot.slane %v2789_v48, %v6917_v36 }
 0x2b8   :  { %v2791_v55 = vsub.f32 %v2723_v7, %v2790_v35  ;;  %v2812_v32 = vmul.f32 %v6923_v3, %v2713_v47  ;;  %v2798_v59 = vmul.f32 %v6923_v3, %v6831_v60  ;;  %v2799_v28 = vmul.f32 %v6827_v5, %v6923_v3 }
 0x2b9   :  { %v2800_v11 = vmul.f32 %v6923_v3, %v6839_v61  ;;  %v2801_v53 = vmul.f32 %v6837_v20, %v6923_v3  ;;  %v2802_v21 = vmul.f32 %v6923_v3, %v6849_v8  ;;  %v2803_v19 = vmul.f32 %v6847_v4, %v6923_v3 }
 0x2ba   :  { %v6939_v62 = vrot.slane %v2791_v55, %v6917_v36  ;;  %v2804_v60 = vmul.f32 %v6923_v3, %v6859_v38  ;;  %v6945_v5 = vmul.f32 %v6857_v2, %v6923_v3  ;;  %v6949_v61 = vmul.f32 %v6923_v3, %v6873_v31 }
 0x2bb   :  { %v6953_v20 = vmul.f32 %v6871_v1, %v6923_v3  ;;  %v6957_v4 = vmul.f32 %v6923_v3, %v6893_v18  ;;  %v6961_v8 = vmul.f32 %v6891_v56, %v6923_v3  ;;  %v6964_v38 = vmul.f32 %v6923_v3, %v2703_v15  ;;  %v3208_v18 = vld [vmem:[#allocation2 + $0x390] sm:$0xff] }
 0x2bc   :  { %v6967_v2 = vadd.f32 %v6939_v62, %v2812_v32  ;;  %v2820_v31 = vadd.f32 %v6939_v62, %v2798_v59  ;;  %v2821_v52 = vadd.f32 %v6939_v62, %v2799_v28  ;;  %v2822_v1 = vadd.f32 %v6939_v62, %v2800_v11 }
 0x2bd   :  { %v2823_v14 = vadd.f32 %v6939_v62, %v2801_v53  ;;  %v2824_v56 = vadd.f32 %v6939_v62, %v2802_v21  ;;  %v6975_v47 = vadd.f32 %v6939_v62, %v2803_v19  ;;  %v6978_v15 = vadd.f32 %v6939_v62, %v2804_v60  ;;  %v3194_v53 = vld [vmem:[#allocation2 + $0x320] sm:$0xff]  ;;  %v3195_v21 = vld [vmem:[#allocation2 + $0x328] sm:$0xff] }
 0x2be   :  { %v2836_v46 = vmax.f32 %v2820_v31, 0.0  ;;  %v2837_v50 = vmax.f32 %v2821_v52, 0.0  ;;  %v2838_v29 = vmax.f32 %v2822_v1, 0.0  ;;  %v4809_v34 = vpack.c.bf16 %v3209_v6, %v3208_v18  ;;  %v3212_v52 = vld [vmem:[#allocation2 + $0x3b0] sm:$0xff]  ;;  %v3213_v1 = vld [vmem:[#allocation2 + $0x3b8] sm:$0xff] }
 0x2bf   :  { %v2839_v57 = vmax.f32 %v2823_v14, 0.0  ;;  %v2840_v48 = vmax.f32 %v2824_v56, 0.0  ;;  %v4813_v11 = vpack.c.bf16 %v3211_v13, %v3210_v49  ;;  %v2841_v14 = vmax.f32 %v6975_v47, 0.0 }
 0x2c0   :  { %v2868_v24 = vrot.slane %v2836_v46, 7  ;;  %v6980_v43 = vrot.slane %v2837_v50, 7  ;;  %v6982_v40 = vrot.slane %v2838_v29, 7  ;;  %v4815_v56 = vpack.c.bf16 %v3195_v21, %v3194_v53  ;;  %v3196_v50 = vld [vmem:[#allocation2 + $0x330] sm:$0xff] }
 0x2c1   :  { %v6996_v9 = vrot.slane %v2839_v57, 7  ;;  %v7023_v18 = vrot.slane %v2840_v48, 7  ;;  %v2842_v46 = vmax.f32 %v6978_v15, 0.0  ;;  %v4817_v45 = vpack.c.bf16 %v3213_v1, %v3212_v52  ;;  %v3215_v57 = vld [vmem:[#allocation2 + $0x3c8] sm:$0xff]  ;;  %v3217_v48 = vld [vmem:[#allocation2 + $0x3d8] sm:$0xff] }
 0x2c2   :  { %4175 = vmatprep.mubr.msk.f32.mxu0 %vm6884_vm9, %v2868_v24  ;;  %v2900_v44 = vsel %vm1843_vm0, 0.0, %v2868_v24  ;;  %v2916_v33 = vsel %vm1843_vm0, %v2868_v24, 0.0  ;;  %v2901_v39 = vsel %vm1843_vm0, 0.0, %v6980_v43  ;;  %v2917_v16 = vsel %vm1843_vm0, %v6980_v43, 0.0 }
 0x2c3   :  { %3448 = vmatmul.mubr.f32.vlgmr.msra.gmra.mrb[16].mxu0 %v7723_v27  ;;  %v2960_v10 = vrot.slane %v2900_v44, 1  ;;  %v2961_v22 = vrot.slane %v2916_v33, 1  ;;  %v3017_v54 = vrot.slane %v2900_v44, 2  ;;  %v3018_v12 = vrot.slane %v2916_v33, 2 }
 0x2c4   :  { %4808 = vmatpush3.bf16.msra.mxu0 %v4807_v30  ;;  %4177 = vmatprep.mubr.msk.f32.mxu0 %vm6884_vm9, %v6980_v43  ;;  %v2963_v25 = vrot.slane %v2901_v39, 1  ;;  %v2964_v51 = vrot.slane %v2917_v16, 1  ;;  %v2902_v55 = vsel %vm1843_vm0, 0.0, %v6982_v40  ;;  %v2918_v32 = vsel %vm1843_vm0, %v6982_v40, 0.0  ;;  %v3214_v30 = vld [vmem:[#allocation2 + $0x3c0] sm:$0xff] }
 0x2c5   :  { %v6999_v7 = vsel %vm1908_vm2, %v2960_v10, %v2961_v22  ;;  %v7002_v35 = vsel %vm7724_vm12, %v3017_v54, %v3018_v12  ;;  %4810 = vmatprep.subr.bf16.mxu0 %v4809_v34  ;;  %v3020_v59 = vrot.slane %v2901_v39, 2  ;;  %v3021_v28 = vrot.slane %v2917_v16, 2  ;;  %v3198_v22 = vld [vmem:[#allocation2 + $0x340] sm:$0xff]  ;;  %vm7738_vm12 = vmmov %vm7734_vm1 }
 0x2c6   :  { %3307 = vmatprep.mubr.f32.mxu1 %v6999_v7  ;;  %v7013_v19 = vsel %vm1908_vm2, %v2963_v25, %v2964_v51  ;;  %v2966_v60 = vrot.slane %v2902_v55, 1  ;;  %v2967_v31 = vrot.slane %v2918_v32, 1  ;;  %v2903_v26 = vsel %vm1843_vm0, 0.0, %v6996_v9  ;;  %v3199_v25 = vld [vmem:[#allocation2 + $0x348] sm:$0xff]  ;;  %v3216_v51 = vld [vmem:[#allocation2 + $0x3d0] sm:$0xff] }
 0x2c7   :  { %4145 = vmatmul.mubr.msk.f32.gmra.mrb[2].mxu1 %vm6884_vm9, %v2868_v24  ;;  %3453 = vmatmul.mubr.f32.gmra.mrb[18].mxu0 %v7002_v35  ;;  %v2919_v37 = vsel %vm1843_vm0, %v6996_v9, 0.0  ;;  %v7028_v29 = vsel %vm7725_vm13, %v3020_v59, %v3021_v28  ;;  %v3023_v6 = vrot.slane %v2902_v55, 2  ;;  %v3024_v42 = vrot.slane %v2918_v32, 2  ;;  %v3197_v24 = vld [vmem:[#allocation2 + $0x338] sm:$0xff]  ;;  %vm7739_vm13 = vmmov %vm7734_vm1 }
 0x2c8   :  { %3312 = vmatprep.mubr.f32.mxu1 %v7013_v19  ;;  %4179 = vmatprep.mubr.msk.f32.mxu0 %vm6884_vm9, %v6982_v40  ;;  %v7035_v47 = vsel %vm1908_vm2, %v2966_v60, %v2967_v31  ;;  %v2969_v15 = vrot.slane %v2903_v26, 1  ;;  %v2970_v34 = vrot.slane %v2919_v37, 1  ;;  %v2920_v44 = vsel %vm1843_vm0, %v7023_v18, 0.0  ;;  %v3200_v31 = vld [vmem:[#allocation2 + $0x350] sm:$0xff] }
 0x2c9   :  { %4812 = vmatpush3.bf16.msra.mxu0 %v4811_v58  ;;  %v2904_v58 = vsel %vm1843_vm0, 0.0, %v7023_v18  ;;  %v7045_v33 = vrot.slane %v2841_v14, 7  ;;  %v7047_v39 = vrot.slane %v2842_v46, 7  ;;  %v4819_v16 = vpack.c.bf16 %v3197_v24, %v3196_v50  ;;  %v3218_v14 = vld [vmem:[#allocation2 + $0x3e0] sm:$0xff] }
 0x2ca   :  { %4814 = vmatprep.subr.bf16.mxu0 %v4813_v11  ;;  %v4821_v10 = vpack.c.bf16 %v3215_v57, %v3214_v30  ;;  %v7050_v54 = vsel %vm7726_vm15, %v3023_v6, %v3024_v42  ;;  %v3026_v12 = vrot.slane %v2903_v26, 2  ;;  %v3027_v49 = vrot.slane %v2919_v37, 2  ;;  %v3202_v57 = vld [vmem:[#allocation2 + $0x360] sm:$0xff] }
 0x2cb   :  { %4147 = vmatmul.mubr.msk.f32.gmra.mrb[4].mxu1 %vm6884_vm9, %v6980_v43  ;;  %3458 = vmatmul.mubr.f32.gmra.mrb[20].mxu0 %v7028_v29  ;;  %v7054_v13 = vadd.f32 %v6939_v62, %v6945_v5  ;;  %v7061_v55 = vsel %vm1908_vm2, %v2969_v15, %v2970_v34  ;;  %v2972_v32 = vrot.slane %v2904_v58, 1  ;;  %v2973_v59 = vrot.slane %v2920_v44, 1 }
 0x2cc   :  { %3317 = vmatprep.mubr.f32.mxu1 %v7035_v47  ;;  %4181 = vmatprep.mubr.msk.f32.mxu0 %vm6884_vm9, %v6996_v9  ;;  %v2828_v28 = vadd.f32 %v6939_v62, %v6949_v61  ;;  %v2905_v5 = vsel %vm1843_vm0, 0.0, %v7045_v33  ;;  %v2921_v11 = vsel %vm1843_vm0, %v7045_v33, 0.0  ;;  %v7075_v53 = vadd.f32 %v6939_v62, %v6953_v20 }
 0x2cd   :  { %4816 = vmatpush3.bf16.msra.mxu0 %v4815_v56  ;;  %v7079_v21 = vadd.f32 %v6939_v62, %v6957_v4  ;;  %v4823_v61 = vpack.c.bf16 %v3199_v25, %v3198_v22  ;;  %v4825_v60 = vpack.c.bf16 %v3217_v48, %v3216_v51  ;;  %v7083_v52 = vadd.f32 %v6939_v62, %v6961_v8  ;;  %v3201_v4 = vld [vmem:[#allocation2 + $0x358] sm:$0xff]  ;;  %v3219_v56 = vld [vmem:[#allocation2 + $0x3e8] sm:$0xff] }
 0x2ce   :  { %4818 = vmatprep.subr.bf16.mxu0 %v4817_v45  ;;  %v7087_v1 = vadd.f32 %v6939_v62, %v6964_v38  ;;  %v7090_v26 = vsel %vm7727_vm3, %v3026_v12, %v3027_v49  ;;  %v3029_v20 = vrot.slane %v2904_v58, 2  ;;  %v3030_v37 = vrot.slane %v2920_v44, 2  ;;  %v3221_v22 = vld [vmem:[#allocation2 + $0x3f8] sm:$0xff] }
 0x2cf   :  { %4149 = vmatmul.mubr.msk.f32.gmra.mrb[6].mxu1 %vm6884_vm9, %v6982_v40  ;;  %3463 = vmatmul.mubr.f32.gmra.mrb[22].mxu0 %v7050_v54  ;;  %v2811_v46 = vmul.f32 %v6904_v23, %v6923_v3  ;;  %v7099_v8 = vsel %vm1908_vm2, %v2972_v32, %v2973_v59  ;;  %v2975_v38 = vrot.slane %v2905_v5, 1  ;;  %v2976_v50 = vrot.slane %v2921_v11, 1 }
 0x2d0   :  { %3322 = vmatprep.mubr.f32.mxu1 %v7061_v55  ;;  %4183 = vmatprep.mubr.msk.f32.mxu0 %vm6884_vm9, %v7023_v18  ;;  %v2906_v23 = vsel %vm1843_vm0, 0.0, %v7047_v39  ;;  %v2922_v6 = vsel %vm1843_vm0, %v7047_v39, 0.0  ;;  %v2844_v42 = vmax.f32 %v2828_v28, 0.0  ;;  %v4827_v24 = vpack.c.bf16 %v3201_v4, %v3200_v31 }
 0x2d1   :  { %4820 = vmatpush3.bf16.msra.mxu0 %v4819_v16  ;;  %v7110_v45 = vadd.f32 %v6939_v62, %v2811_v46  ;;  %v4829_v30 = vpack.c.bf16 %v3219_v56, %v3218_v14  ;;  %v7113_v15 = vsel %vm7728_vm4, %v3029_v20, %v3030_v37  ;;  %v3032_v34 = vrot.slane %v2905_v5, 2  ;;  %v3203_v16 = vld [vmem:[#allocation2 + $0x368] sm:$0xff] }
 0x2d2   :  { %4822 = vmatprep.subr.bf16.mxu0 %v4821_v10  ;;  %v3033_v58 = vrot.slane %v2921_v11, 2  ;;  %v2843_v44 = vmax.f32 %v7054_v13, 0.0  ;;  %v3220_v10 = vld [vmem:[#allocation2 + $0x3f0] sm:$0xff]  ;;  %v7121_v12 = vsel %vm1908_vm2, %v2975_v38, %v2976_v50  ;;  %v2978_v49 = vrot.slane %v2906_v23, 1 }
 0x2d3   :  { %4151 = vmatmul.mubr.msk.f32.gmra.mrb[8].mxu1 %vm6884_vm9, %v6996_v9  ;;  %3468 = vmatmul.mubr.f32.gmra.mrb[24].mxu0 %v7090_v26  ;;  %v2979_v25 = vrot.slane %v2922_v6, 1  ;;  %v2876_v13 = vrot.slane %v2844_v42, 7  ;;  %v2845_v51 = vmax.f32 %v7075_v53, 0.0  ;;  %v4831_v48 = vpack.c.bf16 %v3203_v16, %v3202_v57 }
 0x2d4   :  { %3327 = vmatprep.mubr.f32.mxu1 %v7099_v8  ;;  %4185 = vmatprep.mubr.msk.f32.mxu0 %vm6884_vm9, %v7045_v33  ;;  %v4833_v32 = vpack.c.bf16 %v3221_v22, %v3220_v10  ;;  %v7129_v59 = vsel %vm7729_vm5, %v3032_v34, %v3033_v58  ;;  %v7131_v28 = vrot.slane %v2843_v44, 7  ;;  %v3035_v5 = vrot.slane %v2906_v23, 2 }
 0x2d5   :  { %4824 = vmatpush3.bf16.msra.mxu0 %v4823_v61  ;;  %v3036_v11 = vrot.slane %v2922_v6, 2  ;;  %v3204_v61 = vld [vmem:[#allocation2 + $0x370] sm:$0xff]  ;;  %v7138_v53 = vsel %vm1908_vm2, %v2978_v49, %v2979_v25  ;;  %v2908_v31 = vsel %vm1843_vm0, 0.0, %v2876_v13  ;;  %v2924_v20 = vsel %vm1843_vm0, %v2876_v13, 0.0 }
 0x2d6   :  { %4826 = vmatprep.subr.bf16.mxu0 %v4825_v60  ;;  %v3205_v60 = vld [vmem:[#allocation2 + $0x378] sm:$0xff]  ;;  %v7146_v37 = vrot.slane %v2845_v51, 7  ;;  %v2846_v4 = vmax.f32 %v7079_v21, 0.0  ;;  %v2981_v46 = vrot.slane %v2908_v31, 1  ;;  %v2982_v38 = vrot.slane %v2924_v20, 1  ;;  %v7731_v21 = vld [vmem:[#allocation10_spill] sm:$0xff] }
 0x2d7   :  { %4153 = vmatmul.mubr.msk.f32.gmra.mrb[10].mxu1 %vm6884_vm9, %v7023_v18  ;;  %3473 = vmatmul.mubr.f32.gmra.mrb[26].mxu0 %v7113_v15  ;;  %v4835_v14 = vpack.c.bf16 %v3205_v60, %v3204_v61  ;;  %v7150_v56 = vsel %vm7730_vm6, %v3035_v5, %v3036_v11  ;;  %v2847_v50 = vmax.f32 %v7083_v52, 0.0  ;;  %v3039_v57 = vrot.slane %v2924_v20, 2 }
 0x2d8   :  { %3332 = vmatprep.mubr.f32.mxu1 %v7121_v12  ;;  %4187 = vmatprep.mubr.msk.f32.mxu0 %vm6884_vm9, %v7047_v39  ;;  %v2909_v23 = vsel %vm1843_vm0, 0.0, %v7146_v37  ;;  %v2925_v6 = vsel %vm1843_vm0, %v7146_v37, 0.0  ;;  %v7164_v42 = vrot.slane %v2846_v4, 7  ;;  %v7174_v52 = vsel %vm1908_vm2, %v2981_v46, %v2982_v38 }
 0x2d9   :  { %4828 = vmatpush3.bf16.msra.mxu0 %v4827_v24  ;;  %v2813_v24 = vmul.f32 %v6909_v17, %v6923_v3  ;;  %v2984_v34 = vrot.slane %v2909_v23, 1  ;;  %v2985_v58 = vrot.slane %v2925_v6, 1  ;;  %v7187_v16 = vrot.slane %v2847_v50, 7 }
 0x2da   :  { %4830 = vmatprep.subr.bf16.mxu0 %v4829_v30  ;;  %v3038_v30 = vrot.slane %v2908_v31, 2  ;;  %v2910_v17 = vsel %vm1843_vm0, 0.0, %v7164_v42  ;;  %v2926_v3 = vsel %vm1843_vm0, %v7164_v42, 0.0  ;;  %v2848_v10 = vmax.f32 %v7087_v1, 0.0 }
 0x2db   :  { %4155 = vmatmul.mubr.msk.f32.gmra.mrb[12].mxu1 %vm6884_vm9, %v7045_v33  ;;  %3478 = vmatmul.mubr.f32.gmra.mrb[28].mxu0 %v7129_v59  ;;  %v7177_v44 = vadd.f32 %v6939_v62, %v2813_v24  ;;  %v3041_v62 = vrot.slane %v2909_v23, 2  ;;  %v3042_v49 = vrot.slane %v2925_v6, 2  ;;  %v7197_v25 = vsel %vm1908_vm2, %v2984_v34, %v2985_v58 }
 0x2dc   :  { %3337 = vmatprep.mubr.f32.mxu1 %v7138_v53  ;;  %4189 = vmatprep.mubr.msk.f32.mxu0 %vm6884_vm9, %v7131_v28  ;;  %v7191_v22 = vsel %vm7732_vm7, %v3038_v30, %v3039_v57  ;;  %v2987_v51 = vrot.slane %v2910_v17, 1  ;;  %v2911_v1 = vsel %vm1843_vm0, 0.0, %v7187_v16  ;;  %v2849_v5 = vmax.f32 %v7110_v45, 0.0 }
 0x2dd   :  { %4832 = vmatpush3.bf16.msra.mxu0 %v4831_v48  ;;  %v2988_v48 = vrot.slane %v2926_v3, 1  ;;  %v7211_v11 = vsel %vm7733_vm8, %v3041_v62, %v3042_v49  ;;  %v3044_v61 = vrot.slane %v2910_v17, 2  ;;  %v3045_v60 = vrot.slane %v2926_v3, 2 }
 0x2de   :  { %4834 = vmatprep.subr.bf16.mxu0 %v4833_v32  ;;  %v2927_v32 = vsel %vm1843_vm0, %v7187_v16, 0.0  ;;  %v2990_v20 = vrot.slane %v2911_v1, 1  ;;  %v7229_v38 = vrot.slane %v2849_v5, 7  ;;  %v3047_v23 = vrot.slane %v2911_v1, 2 }
 0x2df   :  { %4157 = vmatmul.mubr.msk.f32.gmra.mrb[14].mxu1 %vm6884_vm9, %v7047_v39  ;;  %3483 = vmatmul.mubr.f32.gmra.mrb[30].mxu0 %v7150_v56  ;;  %v7218_v31 = vsel %vm1908_vm2, %v2987_v51, %v2988_v48  ;;  %v2991_v4 = vrot.slane %v2927_v32, 1  ;;  %v7232_v50 = vsel %vm7734_vm1, %v3044_v61, %v3045_v60  ;;  %v3048_v6 = vrot.slane %v2927_v32, 2 }
 0x2e0   :  { %4191 = vmatprep.mubr.msk.f32.mxu0 %vm6884_vm9, %v2876_v13  ;;  %3342 = vmatprep.mubr.f32.mxu1 %v7731_v21  ;;  %v2913_v34 = vsel %vm1843_vm0, 0.0, %v7229_v38  ;;  %v2929_v58 = vsel %vm1843_vm0, %v7229_v38, 0.0  ;;  %v2851_v60 = vmax.f32 %v7177_v44, 0.0 }
 0x2e1   :  { %4836 = vmatpush3.bf16.msra.mxu0 %v4835_v14  ;;  %v2850_v14 = vmax.f32 %v6967_v2, 0.0  ;;  %v7239_v2 = vsel %vm1908_vm2, %v2990_v20, %v2991_v4  ;;  %v7252_v17 = vsel %vm7735_vm14, %v3047_v23, %v3048_v6  ;;  %v2996_v49 = vrot.slane %v2913_v34, 1 }
 0x2e2   :  { %4838 = vmatprep.subr.bf16.mxu0 %v6901_v63  ;;  %v2997_v51 = vrot.slane %v2929_v58, 1  ;;  %v3053_v5 = vrot.slane %v2913_v34, 2  ;;  %v3054_v61 = vrot.slane %v2929_v58, 2  ;;  %v7287_v44 = vrot.slane %v2851_v60, 7  ;;  %v3225_v34 = vld [vmem:[#allocation2 + $0x418] sm:$0xff] }
 0x2e3   :  { %4159 = vmatmul.mubr.msk.f32.gmra.mrb[16].mxu1 %vm6884_vm9, %v7722_v41  ;;  %3488 = vmatmul.mubr.f32.gmra.mrb[32].mxu0 %v7723_v27  ;;  %v7241_v57 = vrot.slane %v2850_v14, 7 }
 0x2e4   :  { %3347 = vmatprep.mubr.f32.mxu1 %v7174_v52  ;;  %4193 = vmatprep.mubr.msk.f32.mxu0 %vm6884_vm9, %v7146_v37  ;;  %v7278_v20 = vsel %vm1908_vm2, %v2996_v49, %v2997_v51  ;;  %v3233_v51 = vld [vmem:[#allocation2 + $0x458] sm:$0xff] }
 0x2e5   :  { %v2914_v48 = vsel %vm1843_vm0, 0.0, %v7241_v57  ;;  %v2930_v1 = vsel %vm1843_vm0, %v7241_v57, 0.0 }
 0x2e6   :  { %v2999_v4 = vrot.slane %v2914_v48, 1  ;;  %v3000_v14 = vrot.slane %v2930_v1, 1  ;;  %v3057_v23 = vrot.slane %v2930_v1, 2 }
 0x2e7   :  { %4161 = vmatmul.mubr.msk.f32.gmra.mrb[18].mxu1 %vm6884_vm9, %v2876_v13  ;;  %3493 = vmatmul.mubr.f32.gmra.mrb[34].mxu0 %v7191_v22  ;;  %v7207_v13 = vrot.slane %v2848_v10, 7 }
 0x2e8   :  { %3352 = vmatprep.mubr.f32.mxu1 %v7197_v25  ;;  %4195 = vmatprep.mubr.msk.f32.mxu0 %vm6884_vm9, %v7164_v42  ;;  %v7294_v6 = vsel %vm1908_vm2, %v2999_v4, %v3000_v14  ;;  %v3236_v14 = vld [vmem:[#allocation2 + $0x470] sm:$0xff] }
 0x2e9   :  { %v2912_v45 = vsel %vm1843_vm0, 0.0, %v7207_v13  ;;  %v2928_v46 = vsel %vm1843_vm0, %v7207_v13, 0.0 }
 0x2ea   :  { %v2993_v24 = vrot.slane %v2912_v45, 1  ;;  %v2994_v30 = vrot.slane %v2928_v46, 1  ;;  %v3050_v3 = vrot.slane %v2912_v45, 2  ;;  %v3051_v10 = vrot.slane %v2928_v46, 2 }
 0x2eb   :  { %4163 = vmatmul.mubr.msk.f32.gmra.mrb[20].mxu1 %vm6884_vm9, %v7146_v37  ;;  %3498 = vmatmul.mubr.f32.gmra.mrb[36].mxu0 %v7211_v11  ;;  %v7285_v45 = vsel %vm7737_vm11, %v3053_v5, %v3054_v61  ;;  %v3056_v46 = vrot.slane %v2914_v48, 2  ;;  %v2923_v48 = vsel %vm1843_vm0, %v7131_v28, 0.0  ;;  %v3234_v5 = vld [vmem:[#allocation2 + $0x460] sm:$0xff]  ;;  %v3235_v61 = vld [vmem:[#allocation2 + $0x468] sm:$0xff] }
 0x2ec   :  { %3357 = vmatprep.mubr.f32.mxu1 %v7218_v31  ;;  %4197 = vmatprep.mubr.msk.f32.mxu0 %vm6884_vm9, %v7187_v16  ;;  %v7259_v62 = vsel %vm1908_vm2, %v2993_v24, %v2994_v30  ;;  %v7270_v32 = vsel %vm7736_vm10, %v3050_v3, %v3051_v10  ;;  %v3224_v30 = vld [vmem:[#allocation2 + $0x410] sm:$0xff]  ;;  %v3226_v3 = vld [vmem:[#allocation2 + $0x420] sm:$0xff]  ;;  %v3227_v10 = vld [vmem:[#allocation2 + $0x428] sm:$0xff]  ;;  %v3079_v1 = vrot.slane %v2923_v48, 1  ;;  %v4861_v60 = vpack.c.bf16 %v3235_v61, %v3234_v5 }
 0x2ed   :  { %v7301_v24 = vsel %vm7738_vm12, %v3056_v46, %v3057_v23  ;;  %v4841_v58 = vpack.c.bf16 %v3225_v34, %v3224_v30  ;;  %v3087_v4 = vrot.slane %v2923_v48, 2  ;;  %v3237_v46 = vld [vmem:[#allocation2 + $0x478] sm:$0xff] }
 0x2ef   :  { %4165 = vmatmul.mubr.msk.f32.gmra.mrb[22].mxu1 %vm6884_vm9, %v7164_v42  ;;  %3503 = vmatmul.mubr.f32.gmra.mrb[38].mxu0 %v7232_v50 }
 0x2f0   :  { %3362 = vmatprep.mubr.f32.mxu1 %v7239_v2  ;;  %4199 = vmatprep.mubr.msk.f32.mxu0 %vm6884_vm9, %v7207_v13 }
 0x2f3   :  { %4167 = vmatmul.mubr.msk.f32.gmra.mrb[24].mxu1 %vm6884_vm9, %v7187_v16  ;;  %3508 = vmatmul.mubr.f32.gmra.mrb[40].mxu0 %v7252_v17 }
 0x2f4   :  { %3367 = vmatprep.mubr.f32.mxu1 %v7259_v62  ;;  %4201 = vmatprep.mubr.msk.f32.mxu0 %vm6884_vm9, %v7229_v38 }
 0x2f7   :  { %4169 = vmatmul.mubr.msk.f32.gmra.mrb[26].mxu1 %vm6884_vm9, %v7207_v13  ;;  %3513 = vmatmul.mubr.f32.gmra.mrb[42].mxu0 %v7270_v32 }
 0x2f8   :  { %3372 = vmatprep.mubr.f32.mxu1 %v7278_v20  ;;  %4203 = vmatprep.mubr.msk.f32.mxu0 %vm6884_vm9, %v7241_v57 }
 0x2fb   :  { %4171 = vmatmul.mubr.msk.f32.gmra.mrb[28].mxu1 %vm6884_vm9, %v7229_v38  ;;  %3518 = vmatmul.mubr.f32.gmra.mrb[44].mxu0 %v7285_v45 }
 0x2fc   :  { %3377 = vmatprep.mubr.f32.mxu1 %v7294_v6  ;;  %4205 = vmatprep.mubr.msk.f32.mxu0 %vm6884_vm9, %v7287_v44 }
 0x2ff   :  { %4173 = vmatmul.mubr.msk.f32.gmra.mrb[30].mxu1 %vm6884_vm9, %v7241_v57  ;;  %3523 = vmatmul.mubr.f32.gmra.mrb[46].mxu0 %v7301_v24 }
 0x300   :  { %3592 = vmatprep.mubr.f32.mxu1 %v7002_v35  ;;  %3737 = vmatprep.mubr.f32.mxu0 %v7013_v19  ;;  %v4845_v35 = vpack.c.bf16 %v3227_v10, %v3226_v3 }
 0x302   :  { %v4291_v23 = vpop.f32.mrb[0].mxu1 }
 0x303   :  { %3593 = vmatmul.mubr.f32.vlgmr.msra.gmra.mrb[32].mxu1 %v6999_v7  ;;  %4207 = vmatmul.mubr.msk.f32.vlgmr.msra.gmra.mrb[48].mxu0 %vm6884_vm9, %v6980_v43  ;;  %v3228_v7 = vld [vmem:[#allocation2 + $0x430] sm:$0xff]  ;;  %v3229_v43 = vld [vmem:[#allocation2 + $0x438] sm:$0xff]  ;;  %v4292_v30 = vpop.f32.mrb[1].mxu1 }
 0x304   :  { %4840 = vmatpush3.bf16.msra.mxu0 %v6901_v63  ;;  %3597 = vmatprep.mubr.f32.mxu1 %v7028_v29  ;;  %v4849_v49 = vpack.c.bf16 %v3229_v43, %v3228_v7  ;;  %v7351_v34 = vadd.f32 %v4292_v30, %v4291_v23 }
 0x305   :  { %3742 = vmatprep.mubr.f32.mxu0 %v7035_v47  ;;  %4842 = vmatprep.subr.bf16.mxu0 %v4841_v58 }
 0x306   :  { %4877 = vmatpush3.bf16.msra.mxu1 %v6901_v63  ;;  %v3230_v63 = vld [vmem:[#allocation2 + $0x440] sm:$0xff] }
 0x307   :  { %3598 = vmatmul.mubr.f32.gmra.mrb[34].mxu1 %v7013_v19  ;;  %4209 = vmatmul.mubr.msk.f32.gmra.mrb[50].mxu0 %vm6884_vm9, %v6982_v40  ;;  %v3231_v19 = vld [vmem:[#allocation2 + $0x448] sm:$0xff] }
 0x308   :  { %3602 = vmatprep.mubr.f32.mxu1 %v7050_v54  ;;  %3747 = vmatprep.mubr.f32.mxu0 %v7061_v55  ;;  %v4853_v40 = vpack.c.bf16 %v3231_v19, %v3230_v63 }
 0x309   :  { %4844 = vmatpush3.bf16.msra.mxu0 %v4841_v58  ;;  %4870 = vmatprep.subr.bf16.mxu1 %v4841_v58 }
 0x30a   :  { %4846 = vmatprep.subr.bf16.mxu0 %v4845_v35  ;;  %4878 = vmatpush3.bf16.msra.mxu1 %v4841_v58 }
 0x30b   :  { %3603 = vmatmul.mubr.f32.gmra.mrb[36].mxu1 %v7035_v47  ;;  %4211 = vmatmul.mubr.msk.f32.gmra.mrb[52].mxu0 %vm6884_vm9, %v6996_v9  ;;  %v3232_v47 = vld [vmem:[#allocation2 + $0x450] sm:$0xff]  ;;  %v2907_v9 = vsel %vm1843_vm0, 0.0, %v7131_v28 }
 0x30c   :  { %3607 = vmatprep.mubr.f32.mxu1 %v7090_v26  ;;  %3752 = vmatprep.mubr.f32.mxu0 %v7099_v8 }
 0x30d   :  { %4848 = vmatpush3.bf16.msra.mxu0 %v4845_v35  ;;  %4871 = vmatprep.subr.bf16.mxu1 %v4845_v35 }
 0x30e   :  { %4850 = vmatprep.subr.bf16.mxu0 %v4849_v49  ;;  %4879 = vmatpush3.bf16.msra.mxu1 %v4845_v35 }
 0x30f   :  { %3608 = vmatmul.mubr.f32.gmra.mrb[38].mxu1 %v7061_v55  ;;  %4213 = vmatmul.mubr.msk.f32.gmra.mrb[54].mxu0 %vm6884_vm9, %v7023_v18  ;;  %v4857_v55 = vpack.c.bf16 %v3233_v51, %v3232_v47  ;;  %v3078_v18 = vrot.slane %v2907_v9, 1 }
 0x310   :  { %3612 = vmatprep.mubr.f32.mxu1 %v7113_v15  ;;  %3757 = vmatprep.mubr.f32.mxu0 %v7121_v12 }
 0x311   :  { %4852 = vmatpush3.bf16.msra.mxu0 %v4849_v49  ;;  %4872 = vmatprep.subr.bf16.mxu1 %v4849_v49 }
 0x312   :  { %4854 = vmatprep.subr.bf16.mxu0 %v4853_v40  ;;  %4880 = vmatpush3.bf16.msra.mxu1 %v4849_v49 }
 0x313   :  { %3613 = vmatmul.mubr.f32.gmra.mrb[40].mxu1 %v7099_v8  ;;  %4215 = vmatmul.mubr.msk.f32.gmra.mrb[56].mxu0 %vm6884_vm9, %v7045_v33  ;;  %v3080_v33 = vsel %vm1908_vm2, %v3078_v18, %v3079_v1  ;;  %v3086_v8 = vrot.slane %v2907_v9, 2 }
 0x314   :  { %3617 = vmatprep.mubr.f32.mxu1 %v7129_v59  ;;  %3762 = vmatprep.mubr.f32.mxu0 %v7138_v53 }
 0x315   :  { %4856 = vmatpush3.bf16.msra.mxu0 %v4853_v40  ;;  %4873 = vmatprep.subr.bf16.mxu1 %v4853_v40 }
 0x316   :  { %4858 = vmatprep.subr.bf16.mxu0 %v4857_v55  ;;  %4881 = vmatpush3.bf16.msra.mxu1 %v4853_v40 }
 0x317   :  { %3618 = vmatmul.mubr.f32.gmra.mrb[42].mxu1 %v7121_v12  ;;  %4217 = vmatmul.mubr.msk.f32.gmra.mrb[58].mxu0 %vm6884_vm9, %v7047_v39  ;;  %v4865_v12 = vpack.c.bf16 %v3237_v46, %v3236_v14  ;;  %v3088_v39 = vsel %vm7739_vm13, %v3086_v8, %v3087_v4 }
 0x318   :  { %3622 = vmatprep.mubr.f32.mxu1 %v7150_v56  ;;  %3767 = vmatprep.mubr.f32.mxu0 %v3080_v33 }
 0x319   :  { %4860 = vmatpush3.bf16.msra.mxu0 %v4857_v55  ;;  %4874 = vmatprep.subr.bf16.mxu1 %v4857_v55 }
 0x31a   :  { %4862 = vmatprep.subr.bf16.mxu0 %v4861_v60  ;;  %4882 = vmatpush3.bf16.msra.mxu1 %v4857_v55 }
 0x31b   :  { %3623 = vmatmul.mubr.f32.gmra.mrb[44].mxu1 %v7138_v53  ;;  %4219 = vmatmul.mubr.msk.f32.gmra.mrb[60].mxu0 %vm6884_vm9, %v7131_v28  ;;  %v2915_v28 = vsel %vm1843_vm0, 0.0, %v7287_v44  ;;  %v2931_v53 = vsel %vm1843_vm0, %v7287_v44, 0.0  ;;  %vm7740_vm0 = vmmov %vm7734_vm1 }
 0x31c   :  { %3627 = vmatprep.mubr.f32.mxu1 %v3088_v39  ;;  %3772 = vmatprep.mubr.f32.mxu0 %v7731_v21 }
 0x31d   :  { %4864 = vmatpush3.bf16.msra.mxu0 %v4861_v60  ;;  %4875 = vmatprep.subr.bf16.mxu1 %v4861_v60 }
 0x31e   :  { %4866 = vmatprep.subr.bf16.mxu0 %v4865_v12  ;;  %4883 = vmatpush3.bf16.msra.mxu1 %v4861_v60 }
 0x31f   :  { %3628 = vmatmul.mubr.f32.gmra.mrb[46].mxu1 %v3080_v33  ;;  %4221 = vmatmul.mubr.msk.f32.gmra.mrb[62].mxu0 %vm6884_vm9, %v7722_v41 }
 0x320   :  { %3632 = vmatprep.mubr.f32.mxu1 %v7191_v22  ;;  %3777 = vmatprep.mubr.f32.mxu0 %v7197_v25  ;;  %v3090_v22 = vrot.slane %v2931_v53, 2 }
 0x321   :  { %4868 = vmatpush3.bf16.msra.mxu0 %v4865_v12  ;;  %4876 = vmatprep.subr.bf16.mxu1 %v4865_v12 }
 0x322   :  { %4884 = vmatpush3.bf16.msra.mxu1 %v4865_v12 }
 0x323   :  { %3633 = vmatmul.mubr.f32.gmra.mrb[48].mxu1 %v7174_v52  ;;  %4223 = vmatmul.mubr.msk.f32.gmra.mrb[64].mxu0 %vm6884_vm9, %v7146_v37  ;;  %v3081_v37 = vrot.slane %v2915_v28, 1 }
 0x324   :  { %3637 = vmatprep.mubr.f32.mxu1 %v7211_v11  ;;  %3782 = vmatprep.mubr.f32.mxu0 %v7218_v31 }
 0x327   :  { %3638 = vmatmul.mubr.f32.gmra.mrb[50].mxu1 %v7197_v25  ;;  %4225 = vmatmul.mubr.msk.f32.gmra.mrb[66].mxu0 %vm6884_vm9, %v7164_v42  ;;  %v3082_v42 = vrot.slane %v2931_v53, 1 }
 0x328   :  { %3642 = vmatprep.mubr.f32.mxu1 %v7232_v50  ;;  %3787 = vmatprep.mubr.f32.mxu0 %v7239_v2 }
 0x329   :  { %v3083_v52 = vsel %vm1908_vm2, %v3081_v37, %v3082_v42 }
 0x32b   :  { %3643 = vmatmul.mubr.f32.gmra.mrb[52].mxu1 %v7218_v31  ;;  %4227 = vmatmul.mubr.msk.f32.gmra.mrb[68].mxu0 %vm6884_vm9, %v7187_v16  ;;  %v3089_v16 = vrot.slane %v2915_v28, 2 }
 0x32c   :  { %3647 = vmatprep.mubr.f32.mxu1 %v7252_v17  ;;  %3792 = vmatprep.mubr.f32.mxu0 %v7259_v62 }
 0x32d   :  { %v3091_v25 = vsel %vm7740_vm0, %v3089_v16, %v3090_v22 }
 0x32f   :  { %3648 = vmatmul.mubr.f32.gmra.mrb[54].mxu1 %v7239_v2  ;;  %4229 = vmatmul.mubr.msk.f32.gmra.mrb[70].mxu0 %vm6884_vm9, %v7207_v13 }
 0x330   :  { %3652 = vmatprep.mubr.f32.mxu1 %v7270_v32  ;;  %3797 = vmatprep.mubr.f32.mxu0 %v7278_v20 }
 0x333   :  { %3653 = vmatmul.mubr.f32.gmra.mrb[56].mxu1 %v7259_v62  ;;  %4231 = vmatmul.mubr.msk.f32.gmra.mrb[72].mxu0 %vm6884_vm9, %v7229_v38 }
 0x334   :  { %3657 = vmatprep.mubr.f32.mxu1 %v7285_v45  ;;  %3802 = vmatprep.mubr.f32.mxu0 %v7294_v6 }
 0x337   :  { %3658 = vmatmul.mubr.f32.gmra.mrb[58].mxu1 %v7278_v20  ;;  %4233 = vmatmul.mubr.msk.f32.gmra.mrb[74].mxu0 %vm6884_vm9, %v7241_v57 }
 0x338   :  { %3662 = vmatprep.mubr.f32.mxu1 %v7301_v24  ;;  %3807 = vmatprep.mubr.f32.mxu0 %v3083_v52 }
 0x33b   :  { %3663 = vmatmul.mubr.f32.gmra.mrb[60].mxu1 %v7294_v6  ;;  %4235 = vmatmul.mubr.msk.f32.gmra.mrb[76].mxu0 %vm6884_vm9, %v7287_v44 }
 0x33c   :  { %3667 = vmatprep.mubr.f32.mxu1 %v3091_v25  ;;  %3812 = vmatprep.mubr.f32.mxu0 %v7731_v21 }
 0x33f   :  { %3668 = vmatmul.mubr.f32.gmra.mrb[62].mxu1 %v3083_v52  ;;  %4237 = vmatmul.mubr.msk.f32.gmra.mrb[78].mxu0 %vm6884_vm9, %v7722_v41 }
 0x340   :  { %4677 = vmatprep.mubr.f32.mxu0 %v7028_v29  ;;  %4683 = vmatprep.mubr.f32.mxu1 %v7129_v59 }
 0x343   :  { %4678 = vmatmul.mubr.f32.vlgmr.msra.gmra.mrb[80].mxu0 %v7050_v54  ;;  %4684 = vmatmul.mubr.f32.vlgmr.msra.gmra.mrb[64].mxu1 %v7150_v56 }
 0x344   :  { %4680 = vmatprep.mubr.f32.mxu0 %v7090_v26  ;;  %4686 = vmatprep.mubr.f32.mxu1 %v3088_v39 }
 0x347   :  { %4681 = vmatmul.mubr.f32.gmra.mrb[82].mxu0 %v7113_v15  ;;  %4687 = vmatmul.mubr.f32.gmra.mrb[66].mxu1 %v7723_v27 }
 0x348   :  { %4689 = vmatprep.mubr.f32.mxu1 %v7211_v11 }
 0x34b   :  { %4690 = vmatmul.mubr.f32.gmra.mrb[68].mxu1 %v7232_v50 }
 0x34c   :  { %4692 = vmatprep.mubr.f32.mxu1 %v7252_v17 }
 0x34f   :  { %4693 = vmatmul.mubr.f32.gmra.mrb[70].mxu1 %v7270_v32 }
 0x350   :  { %4695 = vmatprep.mubr.f32.mxu1 %v7285_v45 }
 0x353   :  { %4696 = vmatmul.mubr.f32.gmra.mrb[72].mxu1 %v7301_v24 }
 0x354   :  { %4698 = vmatprep.mubr.f32.mxu1 %v3091_v25 }
 0x357   :  { %4699 = vmatmul.mubr.f32.gmra.mrb[74].mxu1 %v7723_v27 }
 0x396   :  { %v4371_v0 = vpop.f32.mrb[16].mxu0 }
 0x397   :  { %v4372_v41 = vpop.f32.mrb[17].mxu0 }
 0x398   :  { %v4373_v29 = vadd.f32 %v4372_v41, %v4371_v0 }
 0x39a   :  { %v7428_v54 = vadd.f32 %v4373_v29, %v7351_v34  ;;  %v4294_v26 = vpop.f32.mrb[2].mxu1  ;;  %v4374_v15 = vpop.f32.mrb[18].mxu0 }
 0x39b   :  { %v4295_v59 = vpop.f32.mrb[3].mxu1  ;;  %v4375_v56 = vpop.f32.mrb[19].mxu0 }
 0x39c   :  { %v4296_v21 = vadd.f32 %v4295_v59, %v4294_v26  ;;  %v4376_v13 = vadd.f32 %v4375_v56, %v4374_v15 }
 0x39e   :  { %v7430_v11 = vadd.f32 %v4376_v13, %v4296_v21  ;;  %v4297_v31 = vpop.f32.mrb[4].mxu1  ;;  %v4377_v38 = vpop.f32.mrb[20].mxu0 }
 0x39f   :  { %v4298_v50 = vpop.f32.mrb[5].mxu1  ;;  %v4378_v2 = vpop.f32.mrb[21].mxu0 }
 0x3a0   :  { %v4299_v57 = vadd.f32 %v4298_v50, %v4297_v31  ;;  %v4379_v27 = vadd.f32 %v4378_v2, %v4377_v38 }
 0x3a2   :  { %v7432_v17 = vadd.f32 %v4379_v27, %v4299_v57  ;;  %v4300_v62 = vpop.f32.mrb[6].mxu1  ;;  %v4380_v32 = vpop.f32.mrb[22].mxu0 }
 0x3a3   :  { %v4301_v20 = vpop.f32.mrb[7].mxu1  ;;  %v4381_v45 = vpop.f32.mrb[23].mxu0 }
 0x3a4   :  { %v4302_v44 = vadd.f32 %v4301_v20, %v4300_v62  ;;  %v4382_v6 = vadd.f32 %v4381_v45, %v4380_v32 }
 0x3a6   :  { %v7434_v24 = vadd.f32 %v4382_v6, %v4302_v44  ;;  %v4303_v58 = vpop.f32.mrb[8].mxu1  ;;  %v4383_v3 = vpop.f32.mrb[24].mxu0 }
 0x3a7   :  { %v4304_v10 = vpop.f32.mrb[9].mxu1  ;;  %v4384_v35 = vpop.f32.mrb[25].mxu0 }
 0x3a8   :  { %v4305_v7 = vadd.f32 %v4304_v10, %v4303_v58  ;;  %v4385_v43 = vadd.f32 %v4384_v35, %v4383_v3 }
 0x3aa   :  { %v7436_v49 = vadd.f32 %v4385_v43, %v4305_v7  ;;  %v4306_v63 = vpop.f32.mrb[10].mxu1  ;;  %v4386_v19 = vpop.f32.mrb[26].mxu0 }
 0x3ab   :  { %v4307_v40 = vpop.f32.mrb[11].mxu1  ;;  %v4387_v47 = vpop.f32.mrb[27].mxu0 }
 0x3ac   :  { %v4308_v51 = vadd.f32 %v4307_v40, %v4306_v63  ;;  %v4388_v9 = vadd.f32 %v4387_v47, %v4386_v19 }
 0x3ae   :  { %v7438_v48 = vadd.f32 %v4388_v9, %v4308_v51  ;;  %v4309_v55 = vpop.f32.mrb[12].mxu1  ;;  %v4389_v18 = vpop.f32.mrb[28].mxu0 }
 0x3af   :  { %v4310_v1 = vpop.f32.mrb[13].mxu1  ;;  %v4390_v5 = vpop.f32.mrb[29].mxu0 }
 0x3b0   :  { %v4311_v61 = vadd.f32 %v4310_v1, %v4309_v55  ;;  %v4391_v60 = vadd.f32 %v4390_v5, %v4389_v18 }
 0x3b2   :  { %v7440_v33 = vadd.f32 %v4391_v60, %v4311_v61  ;;  %v4312_v8 = vpop.f32.mrb[14].mxu1  ;;  %v4392_v4 = vpop.f32.mrb[30].mxu0 }
 0x3b3   :  { %v4313_v14 = vpop.f32.mrb[15].mxu1  ;;  %v4393_v46 = vpop.f32.mrb[31].mxu0 }
 0x3b4   :  { %v4314_v23 = vadd.f32 %v4313_v14, %v4312_v8  ;;  %v4394_v30 = vadd.f32 %v4393_v46, %v4392_v4 }
 0x3b6   :  { %v7442_v34 = vadd.f32 %v4394_v30, %v4314_v23  ;;  %v4315_v12 = vpop.f32.mrb[16].mxu1  ;;  %v4395_v39 = vpop.f32.mrb[32].mxu0 }
 0x3b7   :  { %v4316_v28 = vpop.f32.mrb[17].mxu1  ;;  %v4396_v53 = vpop.f32.mrb[33].mxu0 }
 0x3b8   :  { %v4317_v37 = vadd.f32 %v4316_v28, %v4315_v12  ;;  %v4397_v42 = vadd.f32 %v4396_v53, %v4395_v39 }
 0x3ba   :  { %v7444_v52 = vadd.f32 %v4397_v42, %v4317_v37  ;;  %v4318_v16 = vpop.f32.mrb[18].mxu1  ;;  %v4398_v22 = vpop.f32.mrb[34].mxu0 }
 0x3bb   :  { %v4319_v25 = vpop.f32.mrb[19].mxu1  ;;  %v4399_v0 = vpop.f32.mrb[35].mxu0 }
 0x3bc   :  { %v4320_v41 = vadd.f32 %v4319_v25, %v4318_v16  ;;  %v4400_v29 = vadd.f32 %v4399_v0, %v4398_v22 }
 0x3be   :  { %v7446_v26 = vadd.f32 %v4400_v29, %v4320_v41  ;;  %v4321_v15 = vpop.f32.mrb[20].mxu1  ;;  %v4401_v59 = vpop.f32.mrb[36].mxu0 }
 0x3bf   :  { %v4322_v56 = vpop.f32.mrb[21].mxu1  ;;  %v4402_v21 = vpop.f32.mrb[37].mxu0 }
 0x3c0   :  { %v4323_v13 = vadd.f32 %v4322_v56, %v4321_v15  ;;  %v4403_v31 = vadd.f32 %v4402_v21, %v4401_v59 }
 0x3c2   :  { %v7448_v38 = vadd.f32 %v4403_v31, %v4323_v13  ;;  %v4324_v50 = vpop.f32.mrb[22].mxu1  ;;  %v4404_v2 = vpop.f32.mrb[38].mxu0 }
 0x3c3   :  { %v4325_v57 = vpop.f32.mrb[23].mxu1  ;;  %v4405_v27 = vpop.f32.mrb[39].mxu0 }
 0x3c4   :  { %v4326_v62 = vadd.f32 %v4325_v57, %v4324_v50  ;;  %v4406_v32 = vadd.f32 %v4405_v27, %v4404_v2 }
 0x3c6   :  { %v7450_v20 = vadd.f32 %v4406_v32, %v4326_v62  ;;  %v4327_v45 = vpop.f32.mrb[24].mxu1  ;;  %v4407_v44 = vpop.f32.mrb[40].mxu0 }
 0x3c7   :  { %v4328_v6 = vpop.f32.mrb[25].mxu1  ;;  %v4408_v58 = vpop.f32.mrb[41].mxu0 }
 0x3c8   :  { %v4329_v3 = vadd.f32 %v4328_v6, %v4327_v45  ;;  %v4409_v10 = vadd.f32 %v4408_v58, %v4407_v44 }
 0x3ca   :  { %v7452_v35 = vadd.f32 %v4409_v10, %v4329_v3  ;;  %v4330_v7 = vpop.f32.mrb[26].mxu1  ;;  %v4410_v43 = vpop.f32.mrb[42].mxu0 }
 0x3cb   :  { %v4331_v63 = vpop.f32.mrb[27].mxu1  ;;  %v4411_v19 = vpop.f32.mrb[43].mxu0 }
 0x3cc   :  { %v4332_v40 = vadd.f32 %v4331_v63, %v4330_v7  ;;  %v4412_v47 = vadd.f32 %v4411_v19, %v4410_v43 }
 0x3ce   :  { %v7454_v51 = vadd.f32 %v4412_v47, %v4332_v40  ;;  %v4333_v9 = vpop.f32.mrb[28].mxu1  ;;  %v4413_v55 = vpop.f32.mrb[44].mxu0 }
 0x3cf   :  { %v4334_v18 = vpop.f32.mrb[29].mxu1  ;;  %v4414_v1 = vpop.f32.mrb[45].mxu0 }
 0x3d0   :  { %v4335_v5 = vadd.f32 %v4334_v18, %v4333_v9  ;;  %v4415_v61 = vadd.f32 %v4414_v1, %v4413_v55 }
 0x3d2   :  { %v7456_v60 = vadd.f32 %v4415_v61, %v4335_v5  ;;  %v4336_v8 = vpop.f32.mrb[30].mxu1  ;;  %v4416_v4 = vpop.f32.mrb[46].mxu0 }
 0x3d3   :  { %v4337_v14 = vpop.f32.mrb[31].mxu1  ;;  %v4417_v46 = vpop.f32.mrb[47].mxu0 }
 0x3d4   :  { %v4338_v23 = vadd.f32 %v4337_v14, %v4336_v8  ;;  %v4418_v30 = vadd.f32 %v4417_v46, %v4416_v4 }
 0x3d6   :  { %v7458_v12 = vadd.f32 %v4418_v30, %v4338_v23  ;;  %v4451_v39 = vpop.f32.mrb[32].mxu1  ;;  %v4531_v28 = vpop.f32.mrb[48].mxu0 }
 0x3d7   :  { %v4452_v53 = vpop.f32.mrb[33].mxu1  ;;  %v4532_v37 = vpop.f32.mrb[49].mxu0 }
 0x3d8   :  { %v4453_v42 = vadd.f32 %v4452_v53, %v4451_v39  ;;  %v4533_v16 = vadd.f32 %v4532_v37, %v4531_v28 }
 0x3da   :  { %v3595_v22 = vadd.f32 %v4453_v42, %v7428_v54  ;;  %v4454_v25 = vpop.f32.mrb[34].mxu1  ;;  %v4534_v0 = vpop.f32.mrb[50].mxu0 }
 0x3db   :  { %v4455_v41 = vpop.f32.mrb[35].mxu1  ;;  %v4535_v29 = vpop.f32.mrb[51].mxu0 }
 0x3dc   :  { %v4456_v15 = vadd.f32 %v4455_v41, %v4454_v25  ;;  %v4536_v59 = vadd.f32 %v4535_v29, %v4534_v0  ;;  %v7461_v56 = vadd.f32 %v4533_v16, %v3595_v22 }
 0x3de   :  { %v3600_v21 = vadd.f32 %v4456_v15, %v7430_v11  ;;  %v4457_v13 = vpop.f32.mrb[36].mxu1  ;;  %v4537_v31 = vpop.f32.mrb[52].mxu0 }
 0x3df   :  { %v4458_v50 = vpop.f32.mrb[37].mxu1  ;;  %v4538_v2 = vpop.f32.mrb[53].mxu0 }
 0x3e0   :  { %v4459_v57 = vadd.f32 %v4458_v50, %v4457_v13  ;;  %v4539_v27 = vadd.f32 %v4538_v2, %v4537_v31  ;;  %v7464_v62 = vadd.f32 %v4536_v59, %v3600_v21 }
 0x3e2   :  { %v3605_v54 = vadd.f32 %v4459_v57, %v7432_v17  ;;  %v4460_v32 = vpop.f32.mrb[38].mxu1  ;;  %v4540_v45 = vpop.f32.mrb[54].mxu0 }
 0x3e3   :  { %v4461_v44 = vpop.f32.mrb[39].mxu1  ;;  %v4541_v6 = vpop.f32.mrb[55].mxu0 }
 0x3e4   :  { %v4462_v58 = vadd.f32 %v4461_v44, %v4460_v32  ;;  %v4542_v3 = vadd.f32 %v4541_v6, %v4540_v45  ;;  %v7467_v10 = vadd.f32 %v4539_v27, %v3605_v54 }
 0x3e6   :  { %v3610_v11 = vadd.f32 %v4462_v58, %v7434_v24  ;;  %v4463_v7 = vpop.f32.mrb[40].mxu1  ;;  %v4543_v43 = vpop.f32.mrb[56].mxu0 }
 0x3e7   :  { %v4464_v63 = vpop.f32.mrb[41].mxu1  ;;  %v4544_v19 = vpop.f32.mrb[57].mxu0 }
 0x3e8   :  { %v4465_v40 = vadd.f32 %v4464_v63, %v4463_v7  ;;  %v4545_v47 = vadd.f32 %v4544_v19, %v4543_v43  ;;  %v7470_v9 = vadd.f32 %v4542_v3, %v3610_v11 }
 0x3ea   :  { %v3615_v17 = vadd.f32 %v4465_v40, %v7436_v49  ;;  %v4466_v55 = vpop.f32.mrb[42].mxu1  ;;  %v4546_v18 = vpop.f32.mrb[58].mxu0 }
 0x3eb   :  { %v4467_v1 = vpop.f32.mrb[43].mxu1  ;;  %v4547_v5 = vpop.f32.mrb[59].mxu0 }
 0x3ec   :  { %v4468_v61 = vadd.f32 %v4467_v1, %v4466_v55  ;;  %v4548_v8 = vadd.f32 %v4547_v5, %v4546_v18  ;;  %v7473_v4 = vadd.f32 %v4545_v47, %v3615_v17 }
 0x3ee   :  { %v3620_v24 = vadd.f32 %v4468_v61, %v7438_v48  ;;  %v4469_v14 = vpop.f32.mrb[44].mxu1  ;;  %v4549_v46 = vpop.f32.mrb[60].mxu0 }
 0x3ef   :  { %v4470_v23 = vpop.f32.mrb[45].mxu1  ;;  %v4550_v30 = vpop.f32.mrb[61].mxu0 }
 0x3f0   :  { %v4471_v39 = vadd.f32 %v4470_v23, %v4469_v14  ;;  %v4551_v28 = vadd.f32 %v4550_v30, %v4549_v46  ;;  %v7476_v53 = vadd.f32 %v4548_v8, %v3620_v24 }
 0x3f2   :  { %v3625_v49 = vadd.f32 %v4471_v39, %v7440_v33  ;;  %v4472_v37 = vpop.f32.mrb[46].mxu1  ;;  %v4552_v42 = vpop.f32.mrb[62].mxu0 }
 0x3f3   :  { %v4473_v16 = vpop.f32.mrb[47].mxu1  ;;  %v4553_v22 = vpop.f32.mrb[63].mxu0 }
 0x3f4   :  { %v4474_v25 = vadd.f32 %v4473_v16, %v4472_v37  ;;  %v4554_v0 = vadd.f32 %v4553_v22, %v4552_v42  ;;  %v7479_v41 = vadd.f32 %v4551_v28, %v3625_v49 }
 0x3f6   :  { %v3630_v48 = vadd.f32 %v4474_v25, %v7442_v34  ;;  %v4475_v29 = vpop.f32.mrb[48].mxu1  ;;  %v4555_v15 = vpop.f32.mrb[64].mxu0 }
 0x3f7   :  { %v4476_v59 = vpop.f32.mrb[49].mxu1  ;;  %v4556_v21 = vpop.f32.mrb[65].mxu0 }
 0x3f8   :  { %v4477_v13 = vadd.f32 %v4476_v59, %v4475_v29  ;;  %v4557_v31 = vadd.f32 %v4556_v21, %v4555_v15  ;;  %v7482_v50 = vadd.f32 %v4554_v0, %v3630_v48 }
 0x3fa   :  { %v3635_v33 = vadd.f32 %v4477_v13, %v7444_v52  ;;  %v4478_v2 = vpop.f32.mrb[50].mxu1  ;;  %v4558_v57 = vpop.f32.mrb[66].mxu0 }
 0x3fb   :  { %v4479_v27 = vpop.f32.mrb[51].mxu1  ;;  %v4559_v54 = vpop.f32.mrb[67].mxu0 }
 0x3fc   :  { %v4480_v32 = vadd.f32 %v4479_v27, %v4478_v2  ;;  %v4560_v45 = vadd.f32 %v4559_v54, %v4558_v57  ;;  %v7485_v44 = vadd.f32 %v4557_v31, %v3635_v33 }
 0x3fe   :  { %v3640_v34 = vadd.f32 %v4480_v32, %v7446_v26  ;;  %v4481_v6 = vpop.f32.mrb[52].mxu1  ;;  %v4561_v58 = vpop.f32.mrb[68].mxu0 }
 0x3ff   :  { %v4482_v3 = vpop.f32.mrb[53].mxu1  ;;  %v4562_v11 = vpop.f32.mrb[69].mxu0 }
 0x400   :  { %v4483_v7 = vadd.f32 %v4482_v3, %v4481_v6  ;;  %v4563_v43 = vadd.f32 %v4562_v11, %v4561_v58  ;;  %v7488_v63 = vadd.f32 %v4560_v45, %v3640_v34 }
 0x402   :  { %v3645_v52 = vadd.f32 %v4483_v7, %v7448_v38  ;;  %v4484_v19 = vpop.f32.mrb[54].mxu1  ;;  %v4564_v40 = vpop.f32.mrb[70].mxu0 }
 0x403   :  { %v4485_v47 = vpop.f32.mrb[55].mxu1  ;;  %v4565_v17 = vpop.f32.mrb[71].mxu0 }
 0x404   :  { %v4486_v55 = vadd.f32 %v4485_v47, %v4484_v19  ;;  %v4566_v18 = vadd.f32 %v4565_v17, %v4564_v40  ;;  %v7491_v1 = vadd.f32 %v4563_v43, %v3645_v52 }
 0x406   :  { %v3650_v26 = vadd.f32 %v4486_v55, %v7450_v20  ;;  %v4487_v5 = vpop.f32.mrb[56].mxu1  ;;  %v4567_v61 = vpop.f32.mrb[72].mxu0 }
 0x407   :  { %v4488_v8 = vpop.f32.mrb[57].mxu1  ;;  %v4568_v24 = vpop.f32.mrb[73].mxu0 }
 0x408   :  { %v4489_v14 = vadd.f32 %v4488_v8, %v4487_v5  ;;  %v4569_v46 = vadd.f32 %v4568_v24, %v4567_v61  ;;  %v3795_v23 = vadd.f32 %v4566_v18, %v3650_v26 }
 0x40a   :  { %v3655_v30 = vadd.f32 %v4489_v14, %v7452_v35  ;;  %v4490_v38 = vpop.f32.mrb[58].mxu1  ;;  %v4570_v39 = vpop.f32.mrb[74].mxu0 }
 0x40b   :  { %v4491_v28 = vpop.f32.mrb[59].mxu1  ;;  %v4571_v49 = vpop.f32.mrb[75].mxu0 }
 0x40c   :  { %v4492_v37 = vadd.f32 %v4491_v28, %v4490_v38  ;;  %v4572_v42 = vadd.f32 %v4571_v49, %v4570_v39  ;;  %v7495_v16 = vadd.f32 %v4569_v46, %v3655_v30 }
 0x40e   :  { %v3660_v22 = vadd.f32 %v4492_v37, %v7454_v51  ;;  %v4493_v20 = vpop.f32.mrb[60].mxu1  ;;  %v4573_v25 = vpop.f32.mrb[76].mxu0 }
 0x40f   :  { %v4494_v0 = vpop.f32.mrb[61].mxu1  ;;  %v4574_v48 = vpop.f32.mrb[77].mxu0 }
 0x410   :  { %v4495_v29 = vadd.f32 %v4494_v0, %v4493_v20  ;;  %v4575_v15 = vadd.f32 %v4574_v48, %v4573_v25  ;;  %v3805_v59 = vadd.f32 %v4572_v42, %v3660_v22 }
 0x412   :  { %v3665_v21 = vadd.f32 %v4495_v29, %v7456_v60  ;;  %v4496_v35 = vpop.f32.mrb[62].mxu1  ;;  %v4576_v13 = vpop.f32.mrb[78].mxu0 }
 0x413   :  { %v4497_v31 = vpop.f32.mrb[63].mxu1  ;;  %v4577_v33 = vpop.f32.mrb[79].mxu0 }
 0x414   :  { %v4498_v2 = vadd.f32 %v4497_v31, %v4496_v35  ;;  %v4578_v57 = vadd.f32 %v4577_v33, %v4576_v13  ;;  %v3810_v27 = vadd.f32 %v4575_v15, %v3665_v21 }
 0x416   :  { %v3670_v54 = vadd.f32 %v4498_v2, %v7458_v12  ;;  %v4679_v32 = vpop.f32.mrb[80].mxu0  ;;  %v4685_v51 = vpop.f32.mrb[64].mxu1 }
 0x417   :  { %v7501_v45 = vadd.f32 %v4679_v32, %v7464_v62  ;;  %v7504_v34 = vadd.f32 %v4685_v51, %v7476_v53  ;;  %v3884_v6 = vpop.f32.mrb[81].mxu0  ;;  %v3904_v58 = vpop.f32.mrb[65].mxu1 }
 0x418   :  { %v7507_v60 = vadd.f32 %v3884_v6, %v7461_v56  ;;  %v7510_v3 = vadd.f32 %v3904_v58, %v7473_v4  ;;  %v3815_v11 = vadd.f32 %v4578_v57, %v3670_v54 }
 0x419   :  { %v3987_v12 = vmul.f32 %v7501_v45, %v7501_v45  ;;  %v3991_v38 = vmul.f32 %v7504_v34, %v7504_v34 }
 0x41a   :  { %v3986_v7 = vmul.f32 %v7507_v60, %v7507_v60  ;;  %v4682_v62 = vpop.f32.mrb[82].mxu0  ;;  %v4688_v43 = vpop.f32.mrb[66].mxu1  ;;  %v3965_v4 = vadd.f32 %v7501_v45, %v7507_v60  ;;  %v3990_v8 = vmul.f32 %v7510_v3, %v7510_v3 }
 0x41b   :  { %v7517_v53 = vadd.f32 %v4682_v62, %v7470_v9  ;;  %v7520_v52 = vadd.f32 %v4688_v43, %v7482_v50  ;;  %v3894_v56 = vpop.f32.mrb[83].mxu0  ;;  %v3914_v19 = vpop.f32.mrb[67].mxu1 }
 0x41c   :  { %v7525_v40 = vadd.f32 %v3894_v56, %v7467_v10  ;;  %v7528_v47 = vadd.f32 %v3914_v19, %v7479_v41  ;;  %v4002_v17 = vadd.f32 %v3987_v12, %v3986_v7 }
 0x41d   :  { %v3989_v5 = vmul.f32 %v7517_v53, %v7517_v53  ;;  %v3993_v25 = vmul.f32 %v7520_v52, %v7520_v52 }
 0x41e   :  { %v3966_v55 = vadd.f32 %v3965_v4, %v7525_v40  ;;  %v3988_v9 = vmul.f32 %v7525_v40, %v7525_v40  ;;  %v4691_v18 = vpop.f32.mrb[68].mxu1  ;;  %v3992_v37 = vmul.f32 %v7528_v47, %v7528_v47 }
 0x41f   :  { %v7534_v50 = vadd.f32 %v4691_v18, %v7488_v63  ;;  %v3924_v26 = vpop.f32.mrb[69].mxu1 }
 0x420   :  { %v3967_v10 = vadd.f32 %v3966_v55, %v7517_v53  ;;  %v4003_v61 = vadd.f32 %v4002_v17, %v3988_v9  ;;  %v7540_v41 = vadd.f32 %v3924_v26, %v7485_v44 }
 0x421   :  { %v3995_v31 = vmul.f32 %v7534_v50, %v7534_v50 }
 0x422   :  { %v4004_v24 = vadd.f32 %v4003_v61, %v3989_v5  ;;  %v3968_v14 = vadd.f32 %v3967_v10, %v7510_v3  ;;  %v4694_v46 = vpop.f32.mrb[70].mxu1  ;;  %v3994_v15 = vmul.f32 %v7540_v41, %v7540_v41 }
 0x423   :  { %v7545_v30 = vadd.f32 %v4694_v46, %v3795_v23  ;;  %v3934_v63 = vpop.f32.mrb[71].mxu1 }
 0x424   :  { %v3969_v39 = vadd.f32 %v3968_v14, %v7504_v34  ;;  %v4005_v28 = vadd.f32 %v4004_v24, %v3990_v8  ;;  %v7551_v49 = vadd.f32 %v3934_v63, %v7491_v1 }
 0x425   :  { %v3997_v51 = vmul.f32 %v7545_v30, %v7545_v30 }
 0x426   :  { %v3970_v44 = vadd.f32 %v3969_v39, %v7528_v47  ;;  %v4006_v42 = vadd.f32 %v4005_v28, %v3991_v38  ;;  %v4697_v22 = vpop.f32.mrb[72].mxu1  ;;  %v3996_v54 = vmul.f32 %v7551_v49, %v7551_v49 }
 0x427   :  { %v7556_v20 = vadd.f32 %v4697_v22, %v3805_v59  ;;  %v3944_v23 = vpop.f32.mrb[73].mxu1 }
 0x428   :  { %v4007_v0 = vadd.f32 %v4006_v42, %v3992_v37  ;;  %v3971_v48 = vadd.f32 %v3970_v44, %v7520_v52  ;;  %v7562_v29 = vadd.f32 %v3944_v23, %v7495_v16 }
 0x42a   :  { %v3972_v1 = vadd.f32 %v3971_v48, %v7540_v41  ;;  %v4008_v21 = vadd.f32 %v4007_v0, %v3993_v25  ;;  %v4700_v35 = vpop.f32.mrb[74].mxu1  ;;  %v3998_v12 = vmul.f32 %v7562_v29, %v7562_v29  ;;  %v3963_v25 = vld [vmem:[%s7630_s5] sm:$0x1]  ;;  %s4960_s5 = smov [#allocation5]  }
 0x42b   :  { %v7567_v13 = vadd.f32 %v4700_v35, %v3815_v11  ;;  %v3954_v59 = vpop.f32.mrb[75].mxu1 }
 0x42c   :  { %v4009_v33 = vadd.f32 %v4008_v21, %v3994_v15  ;;  %v3973_v2 = vadd.f32 %v3972_v1, %v7534_v50  ;;  %v3955_v57 = vadd.f32 %v3954_v59, %v3810_v27  ;;  %v3999_v27 = vmul.f32 %v7556_v20, %v7556_v20  ;;  %v3964_v1 = vld [vmem:[%s7631_s6] sm:$0x1]  ;;  %s4113_s6 = sshll.u32 %s4960_s5, 4  ;;  %s4114_s6 = int_to_ptr.vmem [resolvable:$true] %s4113_s6 }
 0x42d   :  { %v4001_v17 = vmul.f32 %v7567_v13, %v7567_v13  ;;  %s4923_s26 = scalar_lea.vmem %s4114_s6, 2048  ;;  %p4928_p9 = scmp.lt.s32.totalorder %s4114_s6, %s4114_s6 }
 0x42e   :  { %v3974_v16 = vadd.f32 %v3973_v2, %v7551_v49  ;;  %v4010_v32 = vadd.f32 %v4009_v33, %v3995_v31  ;;  %v4000_v19 = vmul.f32 %v3955_v57, %v3955_v57  ;;  %p4924_p8 = scmp.ne.s32.totalorder %s4114_s6, %s4923_s26  ;;  %p4929_p10 = scmp.lt.s32.totalorder %s4923_s26, %s4923_s26 }
 0x430   :  { %v4011_v6 = vadd.f32 %v4010_v32, %v3996_v54  ;;  %v3975_v58 = vadd.f32 %v3974_v16, %v7545_v30  ;;  %p4930_p11 = por %p4929_p10, %p4928_p9 }
 0x432   :  { %v3976_v11 = vadd.f32 %v3975_v58, %v7562_v29  ;;  %v4012_v7 = vadd.f32 %v4011_v6, %v3997_v51  ;;  %p4931_p12 = pnand %p4930_p11, %p4924_p8 }
 0x434   :  { %v4013_v62 = vadd.f32 %v4012_v7, %v3998_v12  ;;  %v3977_v43 = vadd.f32 %v3976_v11, %v7556_v20 }
 0x436   :  { %v3978_v56 = vadd.f32 %v3977_v43, %v3955_v57  ;;  %v4014_v4 = vadd.f32 %v4013_v62, %v3999_v27 }
 0x438   :  { %v3979_v55 = vadd.f32 %v3978_v56, %v7567_v13  ;;  %v4015_v9 = vadd.f32 %v4014_v4, %v4000_v19 }
 0x43a   :  { %v3980_v18 = vrot.slane %v3979_v55, 4  ;;  %v4016_v26 = vadd.f32 %v4015_v9, %v4001_v17 }
 0x43c   :  { %v3981_v5 = vadd.f32 %v3980_v18, %v3979_v55  ;;  %v4017_v10 = vrot.slane %v4016_v26, 4 }
 0x43e   :  { %v3982_v61 = vrot.slane %v3981_v5, 2  ;;  %v4018_v8 = vadd.f32 %v4017_v10, %v4016_v26 }
 0x440   :  { %v3983_v24 = vadd.f32 %v3982_v61, %v3981_v5  ;;  %v4019_v14 = vrot.slane %v4018_v8, 2 }
 0x442   :  { %v3984_v46 = vrot.slane %v3983_v24, 1  ;;  %v4020_v63 = vadd.f32 %v4019_v14, %v4018_v8 }
 0x444   :  { %v3985_v38 = vadd.f32 %v3984_v46, %v3983_v24  ;;  %v4021_v39 = vrot.slane %v4020_v63, 1 }
 0x446   :  { %v4022_v28 = vadd.f32 %v4021_v39, %v4020_v63  ;;  %v4023_v44 = vmul.f32 0.0078125, %v3985_v38 }
 0x448   :  { %v4024_v37 = vmul.f32 0.0078125, %v4022_v28  ;;  %v4025_v42 = vmul.f32 %v4023_v44, %v4023_v44 }
 0x44a   :  { %v4026_v22 = vsub.f32 %v4024_v37, %v4025_v42 }
 0x44c   :  { %v4027_v23 = vadd.f32 1e-05, %v4026_v22 }
 0x44e   :  { %4899 = vrsqrt.f32 %v4027_v23 }
 0x458   :  { %v4900_v0 = vpop.eup %4899 }
 0x459   :  { %v4029_v48 = vmul.f32 %v4900_v0, %v3963_v25 }
 0x45b   :  { %v4030_v15 = vmul.f32 %v4029_v48, %v4023_v44  ;;  %v4036_v21 = vrot.slane %v4029_v48, %v6917_v36 }
 0x45d   :  { %v4031_v35 = vsub.f32 %v3964_v1, %v4030_v15  ;;  %v4052_v59 = vmul.f32 %v4036_v21, %v3955_v57  ;;  %v4038_v31 = vmul.f32 %v4036_v21, %v7507_v60  ;;  %v4039_v33 = vmul.f32 %v4036_v21, %v7501_v45 }
 0x45e   :  { %v4040_v2 = vmul.f32 %v4036_v21, %v7525_v40  ;;  %v4041_v16 = vmul.f32 %v4036_v21, %v7517_v53  ;;  %v4042_v54 = vmul.f32 %v4036_v21, %v7510_v3  ;;  %v4043_v32 = vmul.f32 %v4036_v21, %v7504_v34 }
 0x45f   :  { %v4058_v51 = vrot.slane %v4031_v35, %v6917_v36  ;;  %v4044_v6 = vmul.f32 %v4036_v21, %v7528_v47  ;;  %v4045_v58 = vmul.f32 %v4036_v21, %v7520_v52  ;;  %v4046_v57 = vmul.f32 %v4036_v21, %v7540_v41 }
 0x460   :  { %v4047_v60 = vmul.f32 %v4036_v21, %v7534_v50  ;;  %v4048_v45 = vmul.f32 %v4036_v21, %v7551_v49  ;;  %v4049_v40 = vmul.f32 %v4036_v21, %v7545_v30  ;;  %v4050_v53 = vmul.f32 %v4036_v21, %v7562_v29 }
 0x461   :  { %v4074_v11 = vadd.f32 %v4058_v51, %v4052_v59  ;;  %v4051_v3 = vmul.f32 %v4036_v21, %v7556_v20  ;;  %v4053_v34 = vmul.f32 %v4036_v21, %v7567_v13  ;;  %v4060_v36 = vadd.f32 %v4058_v51, %v4038_v31 }
 0x462   :  { %v4061_v12 = vadd.f32 %v4058_v51, %v4039_v33  ;;  %v4062_v47 = vadd.f32 %v4058_v51, %v4040_v2  ;;  %v4063_v7 = vadd.f32 %v4058_v51, %v4041_v16  ;;  %v4064_v52 = vadd.f32 %v4058_v51, %v4042_v54 }
 0x463   :  { %v4090_v27 = vmax.f32 %v4074_v11, 0.0  ;;  %v4065_v41 = vadd.f32 %v4058_v51, %v4043_v32  ;;  %v4066_v62 = vadd.f32 %v4058_v51, %v4044_v6  ;;  %v4067_v50 = vadd.f32 %v4058_v51, %v4045_v58 }
 0x464   :  { %v4068_v43 = vadd.f32 %v4058_v51, %v4046_v57  ;;  %v4069_v49 = vadd.f32 %v4058_v51, %v4047_v60  ;;  %v4070_v56 = vadd.f32 %v4058_v51, %v4048_v45  ;;  %v4071_v30 = vadd.f32 %v4058_v51, %v4049_v40 }
 0x465   :  { %4106 = vst [vmem:[#allocation5 + $0x70] sm:$0xff] %v4090_v27  ;;  %v4072_v29 = vadd.f32 %v4058_v51, %v4050_v53  ;;  %v4073_v19 = vadd.f32 %v4058_v51, %v4051_v3  ;;  %v4075_v4 = vadd.f32 %v4058_v51, %v4053_v34  ;;  %v4076_v20 = vmax.f32 %v4060_v36, 0.0 }
 0x466   :  { %v4077_v17 = vmax.f32 %v4061_v12, 0.0  ;;  %v4078_v13 = vmax.f32 %v4062_v47, 0.0  ;;  %v4079_v55 = vmax.f32 %v4063_v7, 0.0  ;;  %v4080_v9 = vmax.f32 %v4064_v52, 0.0 }
 0x467   :  { %v4081_v18 = vmax.f32 %v4065_v41, 0.0  ;;  %v4082_v26 = vmax.f32 %v4066_v62, 0.0  ;;  %v4083_v5 = vmax.f32 %v4067_v50, 0.0  ;;  %v4084_v10 = vmax.f32 %v4068_v43, 0.0  ;;  %4092 = vst [vmem:[#allocation5] sm:$0xff] %v4076_v20 }
 0x468   :  { %v4085_v61 = vmax.f32 %v4069_v49, 0.0  ;;  %v4086_v8 = vmax.f32 %v4070_v56, 0.0  ;;  %v4087_v24 = vmax.f32 %v4071_v30, 0.0  ;;  %v4088_v14 = vmax.f32 %v4072_v29, 0.0  ;;  %4093 = vst [vmem:[#allocation5 + $0x8] sm:$0xff] %v4077_v17  ;;  %4094 = vst [vmem:[#allocation5 + $0x10] sm:$0xff] %v4078_v13 }
 0x469   :  { %4095 = vst [vmem:[#allocation5 + $0x18] sm:$0xff] %v4079_v55  ;;  %4096 = vst [vmem:[#allocation5 + $0x20] sm:$0xff] %v4080_v9  ;;  %v4089_v46 = vmax.f32 %v4073_v19, 0.0  ;;  %v4091_v63 = vmax.f32 %v4075_v4, 0.0 }
 0x46a   :  { %4097 = vst [vmem:[#allocation5 + $0x28] sm:$0xff] %v4081_v18  ;;  %4098 = vst [vmem:[#allocation5 + $0x30] sm:$0xff] %v4082_v26 }
 0x46b   :  { %4099 = vst [vmem:[#allocation5 + $0x38] sm:$0xff] %v4083_v5  ;;  %4100 = vst [vmem:[#allocation5 + $0x40] sm:$0xff] %v4084_v10 }
 0x46c   :  { %4101 = vst [vmem:[#allocation5 + $0x48] sm:$0xff] %v4085_v61  ;;  %4102 = vst [vmem:[#allocation5 + $0x50] sm:$0xff] %v4086_v8 }
 0x46d   :  { %4103 = vst [vmem:[#allocation5 + $0x58] sm:$0xff] %v4087_v24  ;;  %4104 = vst [vmem:[#allocation5 + $0x60] sm:$0xff] %v4088_v14 }
 0x46e   :  { %4105 = vst [vmem:[#allocation5 + $0x68] sm:$0xff] %v4089_v46  ;;  %4107 = vst [vmem:[#allocation5 + $0x78] sm:$0xff] %v4091_v63 }
 0x46f   :  { %4934 = shalt.err (!%p4931_p12)
}
 0x470   :  { %s4935_s10 = scalar_lea.hbm %s7632_s7, 2048 }
 0x471   :  { %p4936_p13 = scmp.ne.s32.totalorder %s7632_s7, %s4935_s10  ;;  %p4939_p0 = scmp.lt.u32.totalorder %s4935_s10, %s7632_s7 }
 0x473   :  { %p4941_p1 = pnand %p4939_p0, %p4936_p13 }
 0x475   :  { %4944 = shalt.err (!%p4941_p1)
}
 0x476   :  { %4119 = dma.vmem_to_hbm [thread:$0]  %s4114_s6, 2048, %s7632_s7, [#allocation4], %s4950_s11, %s4950_s11, %s4951_s12  }
 0x477   :  { %4947 = dma.done.wait [#allocation4], 2048  }
 0x478   :  { %4948 = vsyncadd [#allocation4], 4294965248 }
 0x479   :  { %4123 = vsyncpa [#allocation3], 1 }
 0x47a   :  { %4124 = vsyncpa [#allocation4], 1 }

</bundles_post_ra>
